<compile_context>
chip_gen: v7x
topology: tpu7x:2x2x1
jax: 0.10.0
libtpu: 0.0.40
codegen_flags: <defaults>
</compile_context>

<pallas_src>
import functools

import jax
import jax.numpy as jnp
import numpy as np
from jax.experimental import pallas as pl
from jax.experimental.pallas import tpu as pltpu

_LANE = 128


def _round_up(x, m):
    return ((x + m - 1) // m) * m


def _default_merge_lr():
    """Merged [agg|x]@[Wl;Wr] (K=2H) suits the 256-wide MXU on v6e/v7x; on
    v5e's 128x128 MXU two K=H dots avoid the concat copy instead."""
    try:
        kind = jax.devices()[0].device_kind.lower()
    except Exception:
        return True
    return "v5" not in kind


# ------------------------------ fused kernel ------------------------------- #

def _fused_recurrent_kernel(a_ref, f0_hbm_ref, mesh_ref, w0l_ref, w0r_ref,
                            b0_ref, wr_ref, br_ref, wlin_ref, blin_ref,
                            o_ref, fwin_ref, f0_sem, *,
                            n_prev, n_rest, f_pad, m_pad, h_pad,
                            merge_lr, compute_dtype):
    t = pl.program_id(0)
    cd = compute_dtype

    # t == 0: DMA the initial window from HBM into the persistent VMEM scratch
    # (f0 is read exactly once; it never has to be VMEM-resident per step).
    @pl.when(t == 0)
    def _init():
        cp = pltpu.make_async_copy(f0_hbm_ref, fwin_ref, f0_sem)
        cp.start()
        cp.wait()

    a = a_ref[...]            # [N_pad, N_pad] row-normalized mean adjacency
    mesh = mesh_ref[...]      # [N_pad, M_pad]

    # Circular previous-timestep window (no per-step VMEM shift copies):
    # window position i  <->  slot (t + i) % n_prev   (i = n_prev-1 is newest).
    newest = (t + n_prev - 1) % n_prev
    x_prev = fwin_ref[newest]                           # [N_pad, F_pad] f32

    # ---- layer 0: project-then-aggregate ---------------------------------- #
    #   h0 = relu( A @ (x0 @ Wl0) + x0 @ Wr0 + b0 )
    # x0 @ W is computed slab-by-slab (window slabs + meshfield) so the O(N^2)
    # adjacency matmul contracts over h_pad instead of n_prev*f_pad + m_pad,
    # and the [N_pad, c0] concat of the rolling window disappears.
    mesh_off = n_prev * f_pad
    xl = jnp.dot(mesh, w0l_ref[pl.ds(mesh_off, m_pad), :],
                 preferred_element_type=jnp.float32)
    xr = jnp.dot(mesh, w0r_ref[pl.ds(mesh_off, m_pad), :],
                 preferred_element_type=jnp.float32)
    for i in range(n_prev):                             # small static count
        xi = fwin_ref[(t + i) % n_prev].astype(cd)
        xl = xl + jnp.dot(xi, w0l_ref[pl.ds(i * f_pad, f_pad), :],
                          preferred_element_type=jnp.float32)
        xr = xr + jnp.dot(xi, w0r_ref[pl.ds(i * f_pad, f_pad), :],
                          preferred_element_type=jnp.float32)
    agg0 = jnp.dot(a, xl.astype(cd), preferred_element_type=jnp.float32)
    # NOTE: padded node rows only ever see relu(bias); this cannot leak into
    # real rows because A's padded columns are zero and lin_r is row-local.
    h = jnp.maximum(agg0 + xr + b0_ref[...], 0.0).astype(cd)

    # ---- remaining encoder + decoder GraphSAGE layers ---------------------- #
    if n_rest > 0:
        def layer(l, hh):
            w = wr_ref[l]                               # [2*H_pad, H_pad]
            b = br_ref[l]                               # [1, H_pad]
            agg = jnp.dot(a, hh, preferred_element_type=jnp.float32)
            if merge_lr:
                # one K=2*H_pad MXU pass (fills the 256-wide MXU on v6e/v7x)
                x_cat = jnp.concatenate([agg.astype(cd), hh], axis=-1)
                pre = jnp.dot(x_cat, w,
                              preferred_element_type=jnp.float32) + b
            else:
                # two K=H_pad passes, no concat copy (preferred on v5e)
                pre = (jnp.dot(agg.astype(cd), w[:h_pad],
                               preferred_element_type=jnp.float32)
                       + jnp.dot(hh, w[h_pad:],
                                 preferred_element_type=jnp.float32)
                       + b)
            return jnp.maximum(pre, 0.0).astype(cd)

        unroll = True if n_rest <= 4 else 2             # bound vreg pressure
        h = jax.lax.fori_loop(0, n_rest, layer, h, unroll=unroll)

    # ---- final residual linear head ---------------------------------------- #
    out_t = (x_prev
             + jnp.dot(h, wlin_ref[...], preferred_element_type=jnp.float32)
             + blin_ref[...])
    o_ref[0] = out_t

    # new field replaces the oldest slot of the circular window
    fwin_ref[t % n_prev] = out_t


# ------------------------------ model wrapper ------------------------------ #

def forward_instance(params, adjacency, f0, meshfield, n_timesteps, *,
                     compute_dtype=jnp.bfloat16, merge_lr=None):
    """Mirrors RecurrentFormulationNet.forward_instance (time_dim=1)."""
    if merge_lr is None:
        merge_lr = _default_merge_lr()

    n_nodes, n_prev, n_fields = f0.shape
    n_mesh = meshfield.shape[1]
    hidden = params["encoder"][0][0].shape[1]

    n_pad = _round_up(n_nodes, _LANE)
    f_pad = _round_up(n_fields, _LANE)
    m_pad = _round_up(n_mesh, _LANE)
    h_pad = _round_up(hidden, _LANE)
    c0 = n_prev * f_pad + m_pad          # padded layer-0 input width

    # ---- pack / zero-pad parameters to lane-dense layout (host-side, once) --
    # layer 0: scatter original input rows into the padded [fwin slabs | mesh]
    # layout; lin_l and lin_r stay separate (project-then-aggregate).
    row_map = np.concatenate(
        [np.arange(n_fields) + ti * f_pad for ti in range(n_prev)]
        + [n_prev * f_pad + np.arange(n_mesh)])
    wl0, wr0, b0 = params["encoder"][0]
    w0l = np.zeros((c0, h_pad), np.float32)
    w0l[row_map, :hidden] = np.asarray(wl0)
    w0r = np.zeros((c0, h_pad), np.float32)
    w0r[row_map, :hidden] = np.asarray(wr0)
    b0p = np.zeros((1, h_pad), np.float32)
    b0p[:, :hidden] = np.asarray(b0)

    rest = list(params["encoder"][1:]) + list(params["decoder"])
    n_rest = len(rest)
    if n_rest > 0:
        wrest = np.zeros((n_rest, 2 * h_pad, h_pad), np.float32)
        brest = np.zeros((n_rest, 1, h_pad), np.float32)
        for i, (wl, wr, b) in enumerate(rest):
            wrest[i, :hidden, :hidden] = np.asarray(wl)
            wrest[i, h_pad:h_pad + hidden, :hidden] = np.asarray(wr)
            brest[i, :, :hidden] = np.asarray(b)
    else:                                # tiny unused placeholders (never read)
        wrest = np.zeros((1, 8, _LANE), np.float32)
        brest = np.zeros((1, 1, _LANE), np.float32)

    wlin = np.zeros((h_pad, f_pad), np.float32)
    wlin[:hidden, :n_fields] = np.asarray(params["lin_w"])
    blin = np.zeros((1, f_pad), np.float32)
    blin[:, :n_fields] = np.asarray(params["lin_b"])

    a_p = np.zeros((n_pad, n_pad), np.float32)
    a_p[:n_nodes, :n_nodes] = np.asarray(adjacency)

    f0_p = np.zeros((n_prev, n_pad, f_pad), np.float32)
    f0_p[:, :n_nodes, :n_fields] = np.transpose(np.asarray(f0), (1, 0, 2))
    mesh_p = np.zeros((n_pad, m_pad), np.float32)
    mesh_p[:n_nodes, :n_mesh] = np.asarray(meshfield)

    cd = compute_dtype
    a_j = jnp.asarray(a_p, cd)
    mesh_j = jnp.asarray(mesh_p, cd)
    w0l_j = jnp.asarray(w0l, cd)
    w0r_j = jnp.asarray(w0r, cd)
    wrest_j = jnp.asarray(wrest, cd)
    wlin_j = jnp.asarray(wlin, cd)
    b0_j = jnp.asarray(b0p)              # biases / state stay f32
    brest_j = jnp.asarray(brest)
    blin_j = jnp.asarray(blin)
    f0_j = jnp.asarray(f0_p)

    # ---- VMEM budget / cost estimate ----------------------------------------
    item = jnp.dtype(cd).itemsize
    const_bytes = ((a_p.size + mesh_p.size + w0l.size + w0r.size
                    + wrest.size + wlin.size) * item
                   + (b0p.size + brest.size + blin.size) * 4)
    scratch_bytes = n_prev * n_pad * f_pad * 4
    out_bytes = 2 * n_pad * f_pad * 4
    vmem_limit = int(1.5 * (2 * const_bytes + scratch_bytes + out_bytes)) + (4 << 20)
    vmem_limit = max(vmem_limit, 16 << 20)
    vmem_limit = min(vmem_limit, 112 << 20)

    macs_step = (2 * n_pad * c0 * h_pad               # layer-0 projections
                 + n_pad * n_pad * h_pad              # A @ (x0 @ Wl0)
                 + n_rest * (n_pad * n_pad * h_pad + 2 * n_pad * h_pad * h_pad)
                 + n_pad * h_pad * f_pad)             # residual head
    cost = pl.CostEstimate(
        flops=2 * macs_step * n_timesteps,
        transcendentals=0,
        bytes_accessed=int(const_bytes + f0_p.size * 4
                           + n_timesteps * n_pad * f_pad * 4))

    kernel = functools.partial(
        _fused_recurrent_kernel, n_prev=n_prev, n_rest=n_rest,
        f_pad=f_pad, m_pad=m_pad, h_pad=h_pad,
        merge_lr=merge_lr, compute_dtype=cd)

    def build_and_run(single_buffer):
        def const_spec(shape):
            nd = len(shape)
            kw = {"pipeline_mode": pl.Buffered(1)} if single_buffer else {}
            return pl.BlockSpec(shape, lambda t, _nd=nd: (0,) * _nd, **kw)

        in_specs = [
            const_spec((n_pad, n_pad)),                  # adjacency
            pl.BlockSpec(memory_space=pl.ANY),           # f0: HBM, DMA at t==0
            const_spec((n_pad, m_pad)),                  # meshfield
            const_spec((c0, h_pad)),                     # layer-0 Wl
            const_spec((c0, h_pad)),                     # layer-0 Wr
            const_spec((1, h_pad)),                      # layer-0 bias
            const_spec(wrest.shape),                     # stacked [Wl;Wr] rest
            const_spec(brest.shape),                     # stacked biases rest
            const_spec((h_pad, f_pad)),                  # lin head W
            const_spec((1, f_pad)),                      # lin head b
        ]
        return pl.pallas_call(
            kernel,
            out_shape=jax.ShapeDtypeStruct((n_timesteps, n_pad, f_pad),
                                           jnp.float32),
            grid=(n_timesteps,),
            in_specs=in_specs,
            out_specs=pl.BlockSpec((1, n_pad, f_pad), lambda t: (t, 0, 0)),
            scratch_shapes=[pltpu.VMEM((n_prev, n_pad, f_pad), jnp.float32),
                            pltpu.SemaphoreType.DMA(())],
            compiler_params=pltpu.CompilerParams(
                dimension_semantics=("arbitrary",),      # recurrence: keep seq.
                vmem_limit_bytes=vmem_limit),
            cost_estimate=cost,
        )(a_j, f0_j, mesh_j, w0l_j, w0r_j, b0_j, wrest_j, brest_j,
          wlin_j, blin_j)

    try:
        out_padded = build_and_run(True)
    except Exception:
        # pl.Buffered(1) unsupported in this jax build -> default buffering.
        out_padded = build_and_run(False)

    # drop node / lane padding, back to [N, T, n_fields]
    return jnp.transpose(out_padded[:, :n_nodes, :n_fields], (1, 0, 2))


# --------------------------- params / graph setup --------------------------- #

def init_params(key, n_fields, n_meshfields, hidden_size, n_layers, n_prev):
    """Deterministic synthetic parameters matching the module's shapes."""
    def lin(key, cin, cout):
        return jax.random.normal(key, (cin, cout), jnp.float32) * 0.1

    enc_in = n_fields * n_prev + n_meshfields
    params = {"encoder": [], "decoder": []}
    keys = jax.random.split(key, 4 * 2 * n_layers + 2)
    k = 0
    cin = enc_in
    for _ in range(n_layers):                       # encoder GraphSAGE
        wl = lin(keys[k], cin, hidden_size); k += 1
        wr = lin(keys[k], cin, hidden_size); k += 1
        b = jnp.zeros((1, hidden_size), jnp.float32)
        params["encoder"].append((wl, wr, b))
        cin = hidden_size
    cin = hidden_size
    for _ in range(n_layers):                       # decoder GraphSAGE
        wl = lin(keys[k], cin, hidden_size); k += 1
        wr = lin(keys[k], cin, hidden_size); k += 1
        b = jnp.zeros((1, hidden_size), jnp.float32)
        params["decoder"].append((wl, wr, b))
        cin = hidden_size
    params["lin_w"] = lin(keys[k], hidden_size, n_fields); k += 1
    params["lin_b"] = jnp.zeros((1, n_fields), jnp.float32)
    return params


def build_dense_adjacency(edge_index, n_nodes):
    """A[i, j] = 1/deg_in(i) for edge j -> i (PyG mean aggregation)."""
    src, dst = np.asarray(edge_index)
    a = np.zeros((n_nodes, n_nodes), np.float32)
    a[dst, src] = 1.0
    deg = a.sum(axis=1, keepdims=True)
    a = a / np.maximum(deg, 1.0)
    return jnp.asarray(a)


# pure-jnp reference for the sanity checks
def _ref_forward(params, adjacency, f0, meshfield, n_timesteps):
    f_prev = f0
    outs = []
    for _ in range(n_timesteps):
        x_prev = f_prev[:, -1]
        h = jnp.concatenate([f_prev.reshape(f_prev.shape[0], -1), meshfield],
                            axis=1)
        for (wl, wr, b) in params["encoder"] + params["decoder"]:
            h = jnp.maximum((adjacency @ h) @ wl + h @ wr + b, 0.0)
        out = x_prev + h @ params["lin_w"] + params["lin_b"]
        outs.append(out[:, None, :])
        f_prev = jnp.concatenate([f_prev[:, 1:, :], out[:, None, :]], axis=1)
    return jnp.concatenate(outs, axis=1)


if __name__ == "__main__":
    # small shapes consistent with the module
    N_NODES = 16          # graph nodes (1-D chain / tree)
    N_FIELDS = 3
    N_MESHFIELDS = 2
    HIDDEN = 32
    N_LAYERS = 2
    N_PREV = 2            # n_previous_timesteps
    N_TIMESTEPS = 3

    key = jax.random.PRNGKey(0)
    k_param, k_f0, k_mesh = jax.random.split(key, 3)

    params = init_params(k_param, N_FIELDS, N_MESHFIELDS, HIDDEN, N_LAYERS,
                         N_PREV)

    # 1-D tree (bidirectional chain) edge_index [2, E]
    src = np.concatenate([np.arange(N_NODES - 1), np.arange(1, N_NODES)])
    dst = np.concatenate([np.arange(1, N_NODES), np.arange(N_NODES - 1)])
    adjacency = build_dense_adjacency((src, dst), N_NODES)

    f0 = jax.random.normal(k_f0, (N_NODES, N_PREV, N_FIELDS), jnp.float32)
    meshfield = jax.random.normal(k_mesh, (N_NODES, N_MESHFIELDS), jnp.float32)

    ref = _ref_forward(params, adjacency, f0, meshfield, N_TIMESTEPS)

    # f32 matmuls -> tight check against the pure-jnp reference (tolerance
    # slightly loosened vs exact because layer 0 reassociates A@(x@W)).
    out = forward_instance(params, adjacency, f0, meshfield, N_TIMESTEPS,
                           compute_dtype=jnp.float32)
    out = jax.block_until_ready(out)
    assert out.shape == (N_NODES, N_TIMESTEPS, N_FIELDS)
    np.testing.assert_allclose(np.asarray(out), np.asarray(ref),
                               rtol=1e-4, atol=1e-4)

    # bf16 operands / f32 accumulation (default perf path) -> loose check
    out_bf16 = forward_instance(params, adjacency, f0, meshfield, N_TIMESTEPS)
    out_bf16 = jax.block_until_ready(out_bf16)
    assert out_bf16.shape == out.shape
    assert bool(jnp.all(jnp.isfinite(out_bf16)))
    np.testing.assert_allclose(np.asarray(out_bf16), np.asarray(ref),
                               rtol=1e-1, atol=1e-1)

    print("KERNEL_OK")
</pallas_src>

<mosaic_0001>
module attributes {stable_mosaic.version = 11 : i64} {
  func.func @_fused_recurrent_kernel(%arg0: i32, %arg1: memref<128x128xf32, #tpu.memory_space<vmem>>, %arg2: memref<2x128x128xf32, #tpu.memory_space<any>>, %arg3: memref<128x128xf32, #tpu.memory_space<vmem>>, %arg4: memref<384x128xf32, #tpu.memory_space<vmem>>, %arg5: memref<384x128xf32, #tpu.memory_space<vmem>>, %arg6: memref<1x128xf32, #tpu.memory_space<vmem>>, %arg7: memref<3x256x128xf32, #tpu.memory_space<vmem>>, %arg8: memref<3x1x128xf32, #tpu.memory_space<vmem>>, %arg9: memref<128x128xf32, #tpu.memory_space<vmem>>, %arg10: memref<1x128xf32, #tpu.memory_space<vmem>>, %arg11: memref<1x128x128xf32, #tpu.memory_space<vmem>>, %arg12: memref<2x128x128xf32, #tpu.memory_space<vmem>>, %arg13: memref<!tpu.dma_semaphore, #tpu.memory_space<semaphore_mem>>) attributes {dimension_semantics = [#tpu.dimension_semantics<arbitrary>], iteration_bounds = array<i64: 3>, scalar_prefetch = 0 : i64, scratch_operands = 2 : i64, tpu.core_type = #tpu.core_type<tc>, window_params = [{pipeline_mode = #tpu.pipeline_mode<synchronous>, transform_indices = @transform_0, window_bounds = array<i64: 128, 128>}, {}, {pipeline_mode = #tpu.pipeline_mode<synchronous>, transform_indices = @transform_2, window_bounds = array<i64: 128, 128>}, {pipeline_mode = #tpu.pipeline_mode<synchronous>, transform_indices = @transform_3, window_bounds = array<i64: 384, 128>}, {pipeline_mode = #tpu.pipeline_mode<synchronous>, transform_indices = @transform_4, window_bounds = array<i64: 384, 128>}, {pipeline_mode = #tpu.pipeline_mode<synchronous>, transform_indices = @transform_5, window_bounds = array<i64: 1, 128>}, {pipeline_mode = #tpu.pipeline_mode<synchronous>, transform_indices = @transform_6, window_bounds = array<i64: 3, 256, 128>}, {pipeline_mode = #tpu.pipeline_mode<synchronous>, transform_indices = @transform_7, window_bounds = array<i64: 3, 1, 128>}, {pipeline_mode = #tpu.pipeline_mode<synchronous>, transform_indices = @transform_8, window_bounds = array<i64: 128, 128>}, {pipeline_mode = #tpu.pipeline_mode<synchronous>, transform_indices = @transform_9, window_bounds = array<i64: 1, 128>}, {transform_indices = @transform_10, window_bounds = array<i64: 1, 128, 128>}]} {
    %c0_i32 = arith.constant 0 : i32
    %0 = arith.cmpi eq, %arg0, %c0_i32 : i32
    %1 = arith.extui %0 : i1 to i32
    %c0_i32_0 = arith.constant 0 : i32
    %2 = arith.cmpi ne, %1, %c0_i32_0 : i32
    scf.if %2 {
      tpu.enqueue_dma source(%arg2 : memref<2x128x128xf32, #tpu.memory_space<any>>) target(%arg12 : memref<2x128x128xf32, #tpu.memory_space<vmem>>) target_semaphore(%arg13 : memref<!tpu.dma_semaphore, #tpu.memory_space<semaphore_mem>>)
      tpu.wait_dma2 semaphore(%arg13 : memref<!tpu.dma_semaphore, #tpu.memory_space<semaphore_mem>>) src(%arg2 : memref<2x128x128xf32, #tpu.memory_space<any>>) dst(%arg12 : memref<2x128x128xf32, #tpu.memory_space<vmem>>)
    } else {
    }
    %c0 = arith.constant 0 : index
    %c0_1 = arith.constant 0 : index
    %3 = vector.load %arg1[%c0, %c0_1] : memref<128x128xf32, #tpu.memory_space<vmem>>, vector<128x128xf32>
    %c0_2 = arith.constant 0 : index
    %c0_3 = arith.constant 0 : index
    %4 = vector.load %arg3[%c0_2, %c0_3] : memref<128x128xf32, #tpu.memory_space<vmem>>, vector<128x128xf32>
    %c2_i32 = arith.constant 2 : i32
    %5 = arith.addi %arg0, %c2_i32 : i32
    %c1_i32 = arith.constant 1 : i32
    %6 = arith.subi %5, %c1_i32 : i32
    %c2_i32_4 = arith.constant 2 : i32
    %c0_i32_5 = arith.constant 0 : i32
    %7 = arith.cmpi eq, %c2_i32_4, %c0_i32_5 : i32
    %c1_i32_6 = arith.constant 1 : i32
    %8 = arith.select %7, %c1_i32_6, %c2_i32_4 : i32
    %9 = arith.remsi %6, %8 : i32
    %c0_i32_7 = arith.constant 0 : i32
    %10 = arith.cmpi ne, %9, %c0_i32_7 : i32
    %c0_i32_8 = arith.constant 0 : i32
    %11 = arith.cmpi slt, %9, %c0_i32_8 : i32
    %c0_i32_9 = arith.constant 0 : i32
    %12 = arith.cmpi slt, %8, %c0_i32_9 : i32
    %13 = arith.xori %11, %12 : i1
    %14 = arith.andi %13, %10 : i1
    %15 = arith.addi %9, %8 : i32
    %16 = arith.select %14, %15, %9 : i32
    %17 = arith.index_cast %16 : i32 to index
    %c0_10 = arith.constant 0 : index
    %c0_11 = arith.constant 0 : index
    %18 = vector.load %arg12[%17, %c0_10, %c0_11] : memref<2x128x128xf32, #tpu.memory_space<vmem>>, vector<1x128x128xf32>
    %19 = vector.shape_cast %18 : vector<1x128x128xf32> to vector<128x128xf32>
    %c256 = arith.constant 256 : index
    %c0_12 = arith.constant 0 : index
    %20 = vector.load %arg4[%c256, %c0_12] : memref<384x128xf32, #tpu.memory_space<vmem>>, vector<128x128xf32>
    %cst = arith.constant dense<0.000000e+00> : vector<128x128xf32>
    %21 = tpu.matmul %4, %20, %cst {dimension_numbers = #tpu.dot_dimension_numbers<[1], [0], [0], [1], [0, 0, 1, 1], [], []>} : vector<128x128xf32>, vector<128x128xf32>, vector<128x128xf32> -> vector<128x128xf32>
    %c256_13 = arith.constant 256 : index
    %c0_14 = arith.constant 0 : index
    %22 = vector.load %arg5[%c256_13, %c0_14] : memref<384x128xf32, #tpu.memory_space<vmem>>, vector<128x128xf32>
    %cst_15 = arith.constant dense<0.000000e+00> : vector<128x128xf32>
    %23 = tpu.matmul %4, %22, %cst_15 {dimension_numbers = #tpu.dot_dimension_numbers<[1], [0], [0], [1], [0, 0, 1, 1], [], []>} : vector<128x128xf32>, vector<128x128xf32>, vector<128x128xf32> -> vector<128x128xf32>
    %c0_i32_16 = arith.constant 0 : i32
    %24 = arith.addi %arg0, %c0_i32_16 : i32
    %c2_i32_17 = arith.constant 2 : i32
    %c0_i32_18 = arith.constant 0 : i32
    %25 = arith.cmpi eq, %c2_i32_17, %c0_i32_18 : i32
    %c1_i32_19 = arith.constant 1 : i32
    %26 = arith.select %25, %c1_i32_19, %c2_i32_17 : i32
    %27 = arith.remsi %24, %26 : i32
    %c0_i32_20 = arith.constant 0 : i32
    %28 = arith.cmpi ne, %27, %c0_i32_20 : i32
    %c0_i32_21 = arith.constant 0 : i32
    %29 = arith.cmpi slt, %27, %c0_i32_21 : i32
    %c0_i32_22 = arith.constant 0 : i32
    %30 = arith.cmpi slt, %26, %c0_i32_22 : i32
    %31 = arith.xori %29, %30 : i1
    %32 = arith.andi %31, %28 : i1
    %33 = arith.addi %27, %26 : i32
    %34 = arith.select %32, %33, %27 : i32
    %35 = arith.index_cast %34 : i32 to index
    %c0_23 = arith.constant 0 : index
    %c0_24 = arith.constant 0 : index
    %36 = vector.load %arg12[%35, %c0_23, %c0_24] : memref<2x128x128xf32, #tpu.memory_space<vmem>>, vector<1x128x128xf32>
    %37 = vector.shape_cast %36 : vector<1x128x128xf32> to vector<128x128xf32>
    %c0_25 = arith.constant 0 : index
    %c0_26 = arith.constant 0 : index
    %38 = vector.load %arg4[%c0_25, %c0_26] : memref<384x128xf32, #tpu.memory_space<vmem>>, vector<128x128xf32>
    %cst_27 = arith.constant dense<0.000000e+00> : vector<128x128xf32>
    %39 = tpu.matmul %37, %38, %cst_27 {dimension_numbers = #tpu.dot_dimension_numbers<[1], [0], [0], [1], [0, 0, 1, 1], [], []>} : vector<128x128xf32>, vector<128x128xf32>, vector<128x128xf32> -> vector<128x128xf32>
    %40 = arith.addf %21, %39 : vector<128x128xf32>
    %c0_28 = arith.constant 0 : index
    %c0_29 = arith.constant 0 : index
    %41 = vector.load %arg5[%c0_28, %c0_29] : memref<384x128xf32, #tpu.memory_space<vmem>>, vector<128x128xf32>
    %cst_30 = arith.constant dense<0.000000e+00> : vector<128x128xf32>
    %42 = tpu.matmul %37, %41, %cst_30 {dimension_numbers = #tpu.dot_dimension_numbers<[1], [0], [0], [1], [0, 0, 1, 1], [], []>} : vector<128x128xf32>, vector<128x128xf32>, vector<128x128xf32> -> vector<128x128xf32>
    %43 = arith.addf %23, %42 : vector<128x128xf32>
    %c1_i32_31 = arith.constant 1 : i32
    %44 = arith.addi %arg0, %c1_i32_31 : i32
    %c2_i32_32 = arith.constant 2 : i32
    %c0_i32_33 = arith.constant 0 : i32
    %45 = arith.cmpi eq, %c2_i32_32, %c0_i32_33 : i32
    %c1_i32_34 = arith.constant 1 : i32
    %46 = arith.select %45, %c1_i32_34, %c2_i32_32 : i32
    %47 = arith.remsi %44, %46 : i32
    %c0_i32_35 = arith.constant 0 : i32
    %48 = arith.cmpi ne, %47, %c0_i32_35 : i32
    %c0_i32_36 = arith.constant 0 : i32
    %49 = arith.cmpi slt, %47, %c0_i32_36 : i32
    %c0_i32_37 = arith.constant 0 : i32
    %50 = arith.cmpi slt, %46, %c0_i32_37 : i32
    %51 = arith.xori %49, %50 : i1
    %52 = arith.andi %51, %48 : i1
    %53 = arith.addi %47, %46 : i32
    %54 = arith.select %52, %53, %47 : i32
    %55 = arith.index_cast %54 : i32 to index
    %c0_38 = arith.constant 0 : index
    %c0_39 = arith.constant 0 : index
    %56 = vector.load %arg12[%55, %c0_38, %c0_39] : memref<2x128x128xf32, #tpu.memory_space<vmem>>, vector<1x128x128xf32>
    %57 = vector.shape_cast %56 : vector<1x128x128xf32> to vector<128x128xf32>
    %c128 = arith.constant 128 : index
    %c0_40 = arith.constant 0 : index
    %58 = vector.load %arg4[%c128, %c0_40] : memref<384x128xf32, #tpu.memory_space<vmem>>, vector<128x128xf32>
    %cst_41 = arith.constant dense<0.000000e+00> : vector<128x128xf32>
    %59 = tpu.matmul %57, %58, %cst_41 {dimension_numbers = #tpu.dot_dimension_numbers<[1], [0], [0], [1], [0, 0, 1, 1], [], []>} : vector<128x128xf32>, vector<128x128xf32>, vector<128x128xf32> -> vector<128x128xf32>
    %60 = arith.addf %40, %59 : vector<128x128xf32>
    %c128_42 = arith.constant 128 : index
    %c0_43 = arith.constant 0 : index
    %61 = vector.load %arg5[%c128_42, %c0_43] : memref<384x128xf32, #tpu.memory_space<vmem>>, vector<128x128xf32>
    %cst_44 = arith.constant dense<0.000000e+00> : vector<128x128xf32>
    %62 = tpu.matmul %57, %61, %cst_44 {dimension_numbers = #tpu.dot_dimension_numbers<[1], [0], [0], [1], [0, 0, 1, 1], [], []>} : vector<128x128xf32>, vector<128x128xf32>, vector<128x128xf32> -> vector<128x128xf32>
    %63 = arith.addf %43, %62 : vector<128x128xf32>
    %cst_45 = arith.constant dense<0.000000e+00> : vector<128x128xf32>
    %64 = tpu.matmul %3, %60, %cst_45 {dimension_numbers = #tpu.dot_dimension_numbers<[1], [0], [0], [1], [0, 0, 1, 1], [], []>} : vector<128x128xf32>, vector<128x128xf32>, vector<128x128xf32> -> vector<128x128xf32>
    %65 = arith.addf %64, %63 : vector<128x128xf32>
    %c0_46 = arith.constant 0 : index
    %c0_47 = arith.constant 0 : index
    %66 = vector.load %arg6[%c0_46, %c0_47] : memref<1x128xf32, #tpu.memory_space<vmem>>, vector<1x128xf32>
    %67 = vector.broadcast %66 : vector<1x128xf32> to vector<128x128xf32>
    %68 = arith.addf %65, %67 : vector<128x128xf32>
    %cst_48 = arith.constant 0.000000e+00 : f32
    %69 = vector.broadcast %cst_48 : f32 to vector<128x128xf32>
    %70 = arith.maximumf %68, %69 : vector<128x128xf32>
    %c0_i32_49 = arith.constant 0 : i32
    %71 = arith.index_cast %c0_i32_49 : i32 to index
    %c0_50 = arith.constant 0 : index
    %c0_51 = arith.constant 0 : index
    %72 = vector.load %arg7[%71, %c0_50, %c0_51] : memref<3x256x128xf32, #tpu.memory_space<vmem>>, vector<1x256x128xf32>
    %73 = vector.shape_cast %72 : vector<1x256x128xf32> to vector<256x128xf32>
    %74 = arith.index_cast %c0_i32_49 : i32 to index
    %c0_52 = arith.constant 0 : index
    %c0_53 = arith.constant 0 : index
    %75 = vector.load %arg8[%74, %c0_52, %c0_53] : memref<3x1x128xf32, #tpu.memory_space<vmem>>, vector<1x1x128xf32>
    %76 = vector.shape_cast %75 : vector<1x1x128xf32> to vector<1x128xf32>
    %cst_54 = arith.constant dense<0.000000e+00> : vector<128x128xf32>
    %77 = tpu.matmul %3, %70, %cst_54 {dimension_numbers = #tpu.dot_dimension_numbers<[1], [0], [0], [1], [0, 0, 1, 1], [], []>} : vector<128x128xf32>, vector<128x128xf32>, vector<128x128xf32> -> vector<128x128xf32>
    %78 = tpu.concatenate %77, %70 in 1 : vector<128x128xf32>, vector<128x128xf32> -> vector<128x256xf32>
    %cst_55 = arith.constant dense<0.000000e+00> : vector<128x128xf32>
    %79 = tpu.matmul %78, %73, %cst_55 {dimension_numbers = #tpu.dot_dimension_numbers<[1], [0], [0], [1], [0, 0, 1, 1], [], []>} : vector<128x256xf32>, vector<256x128xf32>, vector<128x128xf32> -> vector<128x128xf32>
    %80 = vector.broadcast %76 : vector<1x128xf32> to vector<128x128xf32>
    %81 = arith.addf %79, %80 : vector<128x128xf32>
    %cst_56 = arith.constant 0.000000e+00 : f32
    %82 = vector.broadcast %cst_56 : f32 to vector<128x128xf32>
    %83 = arith.maximumf %81, %82 : vector<128x128xf32>
    %c1_i32_57 = arith.constant 1 : i32
    %84 = arith.index_cast %c1_i32_57 : i32 to index
    %c0_58 = arith.constant 0 : index
    %c0_59 = arith.constant 0 : index
    %85 = vector.load %arg7[%84, %c0_58, %c0_59] : memref<3x256x128xf32, #tpu.memory_space<vmem>>, vector<1x256x128xf32>
    %86 = vector.shape_cast %85 : vector<1x256x128xf32> to vector<256x128xf32>
    %87 = arith.index_cast %c1_i32_57 : i32 to index
    %c0_60 = arith.constant 0 : index
    %c0_61 = arith.constant 0 : index
    %88 = vector.load %arg8[%87, %c0_60, %c0_61] : memref<3x1x128xf32, #tpu.memory_space<vmem>>, vector<1x1x128xf32>
    %89 = vector.shape_cast %88 : vector<1x1x128xf32> to vector<1x128xf32>
    %cst_62 = arith.constant dense<0.000000e+00> : vector<128x128xf32>
    %90 = tpu.matmul %3, %83, %cst_62 {dimension_numbers = #tpu.dot_dimension_numbers<[1], [0], [0], [1], [0, 0, 1, 1], [], []>} : vector<128x128xf32>, vector<128x128xf32>, vector<128x128xf32> -> vector<128x128xf32>
    %91 = tpu.concatenate %90, %83 in 1 : vector<128x128xf32>, vector<128x128xf32> -> vector<128x256xf32>
    %cst_63 = arith.constant dense<0.000000e+00> : vector<128x128xf32>
    %92 = tpu.matmul %91, %86, %cst_63 {dimension_numbers = #tpu.dot_dimension_numbers<[1], [0], [0], [1], [0, 0, 1, 1], [], []>} : vector<128x256xf32>, vector<256x128xf32>, vector<128x128xf32> -> vector<128x128xf32>
    %93 = vector.broadcast %89 : vector<1x128xf32> to vector<128x128xf32>
    %94 = arith.addf %92, %93 : vector<128x128xf32>
    %cst_64 = arith.constant 0.000000e+00 : f32
    %95 = vector.broadcast %cst_64 : f32 to vector<128x128xf32>
    %96 = arith.maximumf %94, %95 : vector<128x128xf32>
    %c2_i32_65 = arith.constant 2 : i32
    %97 = arith.index_cast %c2_i32_65 : i32 to index
    %c0_66 = arith.constant 0 : index
    %c0_67 = arith.constant 0 : index
    %98 = vector.load %arg7[%97, %c0_66, %c0_67] : memref<3x256x128xf32, #tpu.memory_space<vmem>>, vector<1x256x128xf32>
    %99 = vector.shape_cast %98 : vector<1x256x128xf32> to vector<256x128xf32>
    %100 = arith.index_cast %c2_i32_65 : i32 to index
    %c0_68 = arith.constant 0 : index
    %c0_69 = arith.constant 0 : index
    %101 = vector.load %arg8[%100, %c0_68, %c0_69] : memref<3x1x128xf32, #tpu.memory_space<vmem>>, vector<1x1x128xf32>
    %102 = vector.shape_cast %101 : vector<1x1x128xf32> to vector<1x128xf32>
    %cst_70 = arith.constant dense<0.000000e+00> : vector<128x128xf32>
    %103 = tpu.matmul %3, %96, %cst_70 {dimension_numbers = #tpu.dot_dimension_numbers<[1], [0], [0], [1], [0, 0, 1, 1], [], []>} : vector<128x128xf32>, vector<128x128xf32>, vector<128x128xf32> -> vector<128x128xf32>
    %104 = tpu.concatenate %103, %96 in 1 : vector<128x128xf32>, vector<128x128xf32> -> vector<128x256xf32>
    %cst_71 = arith.constant dense<0.000000e+00> : vector<128x128xf32>
    %105 = tpu.matmul %104, %99, %cst_71 {dimension_numbers = #tpu.dot_dimension_numbers<[1], [0], [0], [1], [0, 0, 1, 1], [], []>} : vector<128x256xf32>, vector<256x128xf32>, vector<128x128xf32> -> vector<128x128xf32>
    %106 = vector.broadcast %102 : vector<1x128xf32> to vector<128x128xf32>
    %107 = arith.addf %105, %106 : vector<128x128xf32>
    %cst_72 = arith.constant 0.000000e+00 : f32
    %108 = vector.broadcast %cst_72 : f32 to vector<128x128xf32>
    %109 = arith.maximumf %107, %108 : vector<128x128xf32>
    %c3_i32 = arith.constant 3 : i32
    %c0_73 = arith.constant 0 : index
    %c0_74 = arith.constant 0 : index
    %110 = vector.load %arg9[%c0_73, %c0_74] : memref<128x128xf32, #tpu.memory_space<vmem>>, vector<128x128xf32>
    %cst_75 = arith.constant dense<0.000000e+00> : vector<128x128xf32>
    %111 = tpu.matmul %109, %110, %cst_75 {dimension_numbers = #tpu.dot_dimension_numbers<[1], [0], [0], [1], [0, 0, 1, 1], [], []>} : vector<128x128xf32>, vector<128x128xf32>, vector<128x128xf32> -> vector<128x128xf32>
    %112 = arith.addf %19, %111 : vector<128x128xf32>
    %c0_76 = arith.constant 0 : index
    %c0_77 = arith.constant 0 : index
    %113 = vector.load %arg10[%c0_76, %c0_77] : memref<1x128xf32, #tpu.memory_space<vmem>>, vector<1x128xf32>
    %114 = vector.broadcast %113 : vector<1x128xf32> to vector<128x128xf32>
    %115 = arith.addf %112, %114 : vector<128x128xf32>
    %c0_78 = arith.constant 0 : index
    %c0_79 = arith.constant 0 : index
    %c0_80 = arith.constant 0 : index
    %116 = vector.load %arg11[%c0_78, %c0_79, %c0_80] : memref<1x128x128xf32, #tpu.memory_space<vmem>>, vector<1x128x128xf32>
    %117 = vector.shape_cast %116 : vector<1x128x128xf32> to vector<128x128xf32>
    %118 = vector.shape_cast %115 : vector<128x128xf32> to vector<1x128x128xf32>
    tpu.vector_store %arg11[%c0_78, %c0_79, %c0_80], %118 {strides = array<i32>} : memref<1x128x128xf32, #tpu.memory_space<vmem>>, vector<1x128x128xf32>,
    %c2_i32_81 = arith.constant 2 : i32
    %c0_i32_82 = arith.constant 0 : i32
    %119 = arith.cmpi eq, %c2_i32_81, %c0_i32_82 : i32
    %c1_i32_83 = arith.constant 1 : i32
    %120 = arith.select %119, %c1_i32_83, %c2_i32_81 : i32
    %121 = arith.remsi %arg0, %120 : i32
    %c0_i32_84 = arith.constant 0 : i32
    %122 = arith.cmpi ne, %121, %c0_i32_84 : i32
    %c0_i32_85 = arith.constant 0 : i32
    %123 = arith.cmpi slt, %121, %c0_i32_85 : i32
    %c0_i32_86 = arith.constant 0 : i32
    %124 = arith.cmpi slt, %120, %c0_i32_86 : i32
    %125 = arith.xori %123, %124 : i1
    %126 = arith.andi %125, %122 : i1
    %127 = arith.addi %121, %120 : i32
    %128 = arith.select %126, %127, %121 : i32
    %129 = arith.index_cast %128 : i32 to index
    %c0_87 = arith.constant 0 : index
    %c0_88 = arith.constant 0 : index
    %130 = vector.load %arg12[%129, %c0_87, %c0_88] : memref<2x128x128xf32, #tpu.memory_space<vmem>>, vector<1x128x128xf32>
    %131 = vector.shape_cast %130 : vector<1x128x128xf32> to vector<128x128xf32>
    %132 = vector.shape_cast %115 : vector<128x128xf32> to vector<1x128x128xf32>
    tpu.vector_store %arg12[%129, %c0_87, %c0_88], %132 {strides = array<i32>} : memref<2x128x128xf32, #tpu.memory_space<vmem>>, vector<1x128x128xf32>,
    return
  }
  func.func @transform_0(%arg0: i32) -> (i32, i32) {
    %c0_i32 = arith.constant 0 : i32
    %c0_i32_0 = arith.constant 0 : i32
    %c0_i32_1 = arith.constant 0 : i32
    return %c0_i32, %c0_i32_0 : i32, i32
  }
  func.func @transform_2(%arg0: i32) -> (i32, i32) {
    %c0_i32 = arith.constant 0 : i32
    %c0_i32_0 = arith.constant 0 : i32
    %c0_i32_1 = arith.constant 0 : i32
    return %c0_i32, %c0_i32_0 : i32, i32
  }
  func.func @transform_3(%arg0: i32) -> (i32, i32) {
    %c0_i32 = arith.constant 0 : i32
    %c0_i32_0 = arith.constant 0 : i32
    %c0_i32_1 = arith.constant 0 : i32
    return %c0_i32, %c0_i32_0 : i32, i32
  }
  func.func @transform_4(%arg0: i32) -> (i32, i32) {
    %c0_i32 = arith.constant 0 : i32
    %c0_i32_0 = arith.constant 0 : i32
    %c0_i32_1 = arith.constant 0 : i32
    return %c0_i32, %c0_i32_0 : i32, i32
  }
  func.func @transform_5(%arg0: i32) -> (i32, i32) {
    %c0_i32 = arith.constant 0 : i32
    %c0_i32_0 = arith.constant 0 : i32
    %c0_i32_1 = arith.constant 0 : i32
    return %c0_i32, %c0_i32_0 : i32, i32
  }
  func.func @transform_6(%arg0: i32) -> (i32, i32, i32) {
    %c0_i32 = arith.constant 0 : i32
    %c0_i32_0 = arith.constant 0 : i32
    %c0_i32_1 = arith.constant 0 : i32
    %c0_i32_2 = arith.constant 0 : i32
    return %c0_i32, %c0_i32_0, %c0_i32_1 : i32, i32, i32
  }
  func.func @transform_7(%arg0: i32) -> (i32, i32, i32) {
    %c0_i32 = arith.constant 0 : i32
    %c0_i32_0 = arith.constant 0 : i32
    %c0_i32_1 = arith.constant 0 : i32
    %c0_i32_2 = arith.constant 0 : i32
    return %c0_i32, %c0_i32_0, %c0_i32_1 : i32, i32, i32
  }
  func.func @transform_8(%arg0: i32) -> (i32, i32) {
    %c0_i32 = arith.constant 0 : i32
    %c0_i32_0 = arith.constant 0 : i32
    %c0_i32_1 = arith.constant 0 : i32
    return %c0_i32, %c0_i32_0 : i32, i32
  }
  func.func @transform_9(%arg0: i32) -> (i32, i32) {
    %c0_i32 = arith.constant 0 : i32
    %c0_i32_0 = arith.constant 0 : i32
    %c0_i32_1 = arith.constant 0 : i32
    return %c0_i32, %c0_i32_0 : i32, i32
  }
  func.func @transform_10(%arg0: i32) -> (i32, i32, i32) {
    %c0_i32 = arith.constant 0 : i32
    %c0_i32_0 = arith.constant 0 : i32
    %c0_i32_1 = arith.constant 0 : i32
    return %arg0, %c0_i32, %c0_i32_0 : i32, i32, i32
  }
}

module attributes {stable_mosaic.version = 11 : i64} {
  func.func @_fused_recurrent_kernel(%arg0: i32, %arg1: memref<128x128xf32, #tpu.memory_space<vmem>>, %arg2: memref<2x128x128xf32, #tpu.memory_space<any>>, %arg3: memref<128x128xf32, #tpu.memory_space<vmem>>, %arg4: memref<384x128xf32, #tpu.memory_space<vmem>>, %arg5: memref<384x128xf32, #tpu.memory_space<vmem>>, %arg6: memref<1x128xf32, #tpu.memory_space<vmem>>, %arg7: memref<3x256x128xf32, #tpu.memory_space<vmem>>, %arg8: memref<3x1x128xf32, #tpu.memory_space<vmem>>, %arg9: memref<128x128xf32, #tpu.memory_space<vmem>>, %arg10: memref<1x128xf32, #tpu.memory_space<vmem>>, %arg11: memref<1x128x128xf32, #tpu.memory_space<vmem>>, %arg12: memref<2x128x128xf32, #tpu.memory_space<vmem>>, %arg13: memref<!tpu.dma_semaphore, #tpu.memory_space<semaphore_mem>>) attributes {dimension_semantics = [#tpu.dimension_semantics<arbitrary>], iteration_bounds = array<i64: 3>, scalar_prefetch = 0 : i64, scratch_operands = 2 : i64, tpu.core_type = #tpu.core_type<tc>, window_params = [{pipeline_mode = #tpu.pipeline_mode<synchronous>, transform_indices = @transform_0, window_bounds = array<i64: 128, 128>}, {}, {pipeline_mode = #tpu.pipeline_mode<synchronous>, transform_indices = @transform_2, window_bounds = array<i64: 128, 128>}, {pipeline_mode = #tpu.pipeline_mode<synchronous>, transform_indices = @transform_3, window_bounds = array<i64: 384, 128>}, {pipeline_mode = #tpu.pipeline_mode<synchronous>, transform_indices = @transform_4, window_bounds = array<i64: 384, 128>}, {pipeline_mode = #tpu.pipeline_mode<synchronous>, transform_indices = @transform_5, window_bounds = array<i64: 1, 128>}, {pipeline_mode = #tpu.pipeline_mode<synchronous>, transform_indices = @transform_6, window_bounds = array<i64: 3, 256, 128>}, {pipeline_mode = #tpu.pipeline_mode<synchronous>, transform_indices = @transform_7, window_bounds = array<i64: 3, 1, 128>}, {pipeline_mode = #tpu.pipeline_mode<synchronous>, transform_indices = @transform_8, window_bounds = array<i64: 128, 128>}, {pipeline_mode = #tpu.pipeline_mode<synchronous>, transform_indices = @transform_9, window_bounds = array<i64: 1, 128>}, {transform_indices = @transform_10, window_bounds = array<i64: 1, 128, 128>}]} {
    %c0_i32 = arith.constant 0 : i32
    %0 = arith.cmpi eq, %arg0, %c0_i32 : i32
    %1 = arith.extui %0 : i1 to i32
    %c0_i32_0 = arith.constant 0 : i32
    %2 = arith.cmpi ne, %1, %c0_i32_0 : i32
    scf.if %2 {
      tpu.enqueue_dma source(%arg2 : memref<2x128x128xf32, #tpu.memory_space<any>>) target(%arg12 : memref<2x128x128xf32, #tpu.memory_space<vmem>>) target_semaphore(%arg13 : memref<!tpu.dma_semaphore, #tpu.memory_space<semaphore_mem>>)
      tpu.wait_dma2 semaphore(%arg13 : memref<!tpu.dma_semaphore, #tpu.memory_space<semaphore_mem>>) src(%arg2 : memref<2x128x128xf32, #tpu.memory_space<any>>) dst(%arg12 : memref<2x128x128xf32, #tpu.memory_space<vmem>>)
    } else {
    }
    %c0 = arith.constant 0 : index
    %c0_1 = arith.constant 0 : index
    %3 = vector.load %arg1[%c0, %c0_1] : memref<128x128xf32, #tpu.memory_space<vmem>>, vector<128x128xf32>
    %c0_2 = arith.constant 0 : index
    %c0_3 = arith.constant 0 : index
    %4 = vector.load %arg3[%c0_2, %c0_3] : memref<128x128xf32, #tpu.memory_space<vmem>>, vector<128x128xf32>
    %c2_i32 = arith.constant 2 : i32
    %5 = arith.addi %arg0, %c2_i32 : i32
    %c1_i32 = arith.constant 1 : i32
    %6 = arith.subi %5, %c1_i32 : i32
    %c2_i32_4 = arith.constant 2 : i32
    %c0_i32_5 = arith.constant 0 : i32
    %7 = arith.cmpi eq, %c2_i32_4, %c0_i32_5 : i32
    %c1_i32_6 = arith.constant 1 : i32
    %8 = arith.select %7, %c1_i32_6, %c2_i32_4 : i32
    %9 = arith.remsi %6, %8 : i32
    %c0_i32_7 = arith.constant 0 : i32
    %10 = arith.cmpi ne, %9, %c0_i32_7 : i32
    %c0_i32_8 = arith.constant 0 : i32
    %11 = arith.cmpi slt, %9, %c0_i32_8 : i32
    %c0_i32_9 = arith.constant 0 : i32
    %12 = arith.cmpi slt, %8, %c0_i32_9 : i32
    %13 = arith.xori %11, %12 : i1
    %14 = arith.andi %13, %10 : i1
    %15 = arith.addi %9, %8 : i32
    %16 = arith.select %14, %15, %9 : i32
    %17 = arith.index_cast %16 : i32 to index
    %c0_10 = arith.constant 0 : index
    %c0_11 = arith.constant 0 : index
    %18 = vector.load %arg12[%17, %c0_10, %c0_11] : memref<2x128x128xf32, #tpu.memory_space<vmem>>, vector<1x128x128xf32>
    %19 = vector.shape_cast %18 : vector<1x128x128xf32> to vector<128x128xf32>
    %c256 = arith.constant 256 : index
    %c0_12 = arith.constant 0 : index
    %20 = vector.load %arg4[%c256, %c0_12] : memref<384x128xf32, #tpu.memory_space<vmem>>, vector<128x128xf32>
    %cst = arith.constant dense<0.000000e+00> : vector<128x128xf32>
    %21 = tpu.matmul %4, %20, %cst {dimension_numbers = #tpu.dot_dimension_numbers<[1], [0], [0], [1], [0, 0, 1, 1], [], []>} : vector<128x128xf32>, vector<128x128xf32>, vector<128x128xf32> -> vector<128x128xf32>
    %c256_13 = arith.constant 256 : index
    %c0_14 = arith.constant 0 : index
    %22 = vector.load %arg5[%c256_13, %c0_14] : memref<384x128xf32, #tpu.memory_space<vmem>>, vector<128x128xf32>
    %cst_15 = arith.constant dense<0.000000e+00> : vector<128x128xf32>
    %23 = tpu.matmul %4, %22, %cst_15 {dimension_numbers = #tpu.dot_dimension_numbers<[1], [0], [0], [1], [0, 0, 1, 1], [], []>} : vector<128x128xf32>, vector<128x128xf32>, vector<128x128xf32> -> vector<128x128xf32>
    %c0_i32_16 = arith.constant 0 : i32
    %24 = arith.addi %arg0, %c0_i32_16 : i32
    %c2_i32_17 = arith.constant 2 : i32
    %c0_i32_18 = arith.constant 0 : i32
    %25 = arith.cmpi eq, %c2_i32_17, %c0_i32_18 : i32
    %c1_i32_19 = arith.constant 1 : i32
    %26 = arith.select %25, %c1_i32_19, %c2_i32_17 : i32
    %27 = arith.remsi %24, %26 : i32
    %c0_i32_20 = arith.constant 0 : i32
    %28 = arith.cmpi ne, %27, %c0_i32_20 : i32
    %c0_i32_21 = arith.constant 0 : i32
    %29 = arith.cmpi slt, %27, %c0_i32_21 : i32
    %c0_i32_22 = arith.constant 0 : i32
    %30 = arith.cmpi slt, %26, %c0_i32_22 : i32
    %31 = arith.xori %29, %30 : i1
    %32 = arith.andi %31, %28 : i1
    %33 = arith.addi %27, %26 : i32
    %34 = arith.select %32, %33, %27 : i32
    %35 = arith.index_cast %34 : i32 to index
    %c0_23 = arith.constant 0 : index
    %c0_24 = arith.constant 0 : index
    %36 = vector.load %arg12[%35, %c0_23, %c0_24] : memref<2x128x128xf32, #tpu.memory_space<vmem>>, vector<1x128x128xf32>
    %37 = vector.shape_cast %36 : vector<1x128x128xf32> to vector<128x128xf32>
    %c0_25 = arith.constant 0 : index
    %c0_26 = arith.constant 0 : index
    %38 = vector.load %arg4[%c0_25, %c0_26] : memref<384x128xf32, #tpu.memory_space<vmem>>, vector<128x128xf32>
    %cst_27 = arith.constant dense<0.000000e+00> : vector<128x128xf32>
    %39 = tpu.matmul %37, %38, %cst_27 {dimension_numbers = #tpu.dot_dimension_numbers<[1], [0], [0], [1], [0, 0, 1, 1], [], []>} : vector<128x128xf32>, vector<128x128xf32>, vector<128x128xf32> -> vector<128x128xf32>
    %40 = arith.addf %21, %39 : vector<128x128xf32>
    %c0_28 = arith.constant 0 : index
    %c0_29 = arith.constant 0 : index
    %41 = vector.load %arg5[%c0_28, %c0_29] : memref<384x128xf32, #tpu.memory_space<vmem>>, vector<128x128xf32>
    %cst_30 = arith.constant dense<0.000000e+00> : vector<128x128xf32>
    %42 = tpu.matmul %37, %41, %cst_30 {dimension_numbers = #tpu.dot_dimension_numbers<[1], [0], [0], [1], [0, 0, 1, 1], [], []>} : vector<128x128xf32>, vector<128x128xf32>, vector<128x128xf32> -> vector<128x128xf32>
    %43 = arith.addf %23, %42 : vector<128x128xf32>
    %c1_i32_31 = arith.constant 1 : i32
    %44 = arith.addi %arg0, %c1_i32_31 : i32
    %c2_i32_32 = arith.constant 2 : i32
    %c0_i32_33 = arith.constant 0 : i32
    %45 = arith.cmpi eq, %c2_i32_32, %c0_i32_33 : i32
    %c1_i32_34 = arith.constant 1 : i32
    %46 = arith.select %45, %c1_i32_34, %c2_i32_32 : i32
    %47 = arith.remsi %44, %46 : i32
    %c0_i32_35 = arith.constant 0 : i32
    %48 = arith.cmpi ne, %47, %c0_i32_35 : i32
    %c0_i32_36 = arith.constant 0 : i32
    %49 = arith.cmpi slt, %47, %c0_i32_36 : i32
    %c0_i32_37 = arith.constant 0 : i32
    %50 = arith.cmpi slt, %46, %c0_i32_37 : i32
    %51 = arith.xori %49, %50 : i1
    %52 = arith.andi %51, %48 : i1
    %53 = arith.addi %47, %46 : i32
    %54 = arith.select %52, %53, %47 : i32
    %55 = arith.index_cast %54 : i32 to index
    %c0_38 = arith.constant 0 : index
    %c0_39 = arith.constant 0 : index
    %56 = vector.load %arg12[%55, %c0_38, %c0_39] : memref<2x128x128xf32, #tpu.memory_space<vmem>>, vector<1x128x128xf32>
    %57 = vector.shape_cast %56 : vector<1x128x128xf32> to vector<128x128xf32>
    %c128 = arith.constant 128 : index
    %c0_40 = arith.constant 0 : index
    %58 = vector.load %arg4[%c128, %c0_40] : memref<384x128xf32, #tpu.memory_space<vmem>>, vector<128x128xf32>
    %cst_41 = arith.constant dense<0.000000e+00> : vector<128x128xf32>
    %59 = tpu.matmul %57, %58, %cst_41 {dimension_numbers = #tpu.dot_dimension_numbers<[1], [0], [0], [1], [0, 0, 1, 1], [], []>} : vector<128x128xf32>, vector<128x128xf32>, vector<128x128xf32> -> vector<128x128xf32>
    %60 = arith.addf %40, %59 : vector<128x128xf32>
    %c128_42 = arith.constant 128 : index
    %c0_43 = arith.constant 0 : index
    %61 = vector.load %arg5[%c128_42, %c0_43] : memref<384x128xf32, #tpu.memory_space<vmem>>, vector<128x128xf32>
    %cst_44 = arith.constant dense<0.000000e+00> : vector<128x128xf32>
    %62 = tpu.matmul %57, %61, %cst_44 {dimension_numbers = #tpu.dot_dimension_numbers<[1], [0], [0], [1], [0, 0, 1, 1], [], []>} : vector<128x128xf32>, vector<128x128xf32>, vector<128x128xf32> -> vector<128x128xf32>
    %63 = arith.addf %43, %62 : vector<128x128xf32>
    %cst_45 = arith.constant dense<0.000000e+00> : vector<128x128xf32>
    %64 = tpu.matmul %3, %60, %cst_45 {dimension_numbers = #tpu.dot_dimension_numbers<[1], [0], [0], [1], [0, 0, 1, 1], [], []>} : vector<128x128xf32>, vector<128x128xf32>, vector<128x128xf32> -> vector<128x128xf32>
    %65 = arith.addf %64, %63 : vector<128x128xf32>
    %c0_46 = arith.constant 0 : index
    %c0_47 = arith.constant 0 : index
    %66 = vector.load %arg6[%c0_46, %c0_47] : memref<1x128xf32, #tpu.memory_space<vmem>>, vector<1x128xf32>
    %67 = vector.broadcast %66 : vector<1x128xf32> to vector<128x128xf32>
    %68 = arith.addf %65, %67 : vector<128x128xf32>
    %cst_48 = arith.constant 0.000000e+00 : f32
    %69 = vector.broadcast %cst_48 : f32 to vector<128x128xf32>
    %70 = arith.maximumf %68, %69 : vector<128x128xf32>
    %c0_i32_49 = arith.constant 0 : i32
    %71 = arith.index_cast %c0_i32_49 : i32 to index
    %c0_50 = arith.constant 0 : index
    %c0_51 = arith.constant 0 : index
    %72 = vector.load %arg7[%71, %c0_50, %c0_51] : memref<3x256x128xf32, #tpu.memory_space<vmem>>, vector<1x256x128xf32>
    %73 = vector.shape_cast %72 : vector<1x256x128xf32> to vector<256x128xf32>
    %74 = arith.index_cast %c0_i32_49 : i32 to index
    %c0_52 = arith.constant 0 : index
    %c0_53 = arith.constant 0 : index
    %75 = vector.load %arg8[%74, %c0_52, %c0_53] : memref<3x1x128xf32, #tpu.memory_space<vmem>>, vector<1x1x128xf32>
    %76 = vector.shape_cast %75 : vector<1x1x128xf32> to vector<1x128xf32>
    %cst_54 = arith.constant dense<0.000000e+00> : vector<128x128xf32>
    %77 = tpu.matmul %3, %70, %cst_54 {dimension_numbers = #tpu.dot_dimension_numbers<[1], [0], [0], [1], [0, 0, 1, 1], [], []>} : vector<128x128xf32>, vector<128x128xf32>, vector<128x128xf32> -> vector<128x128xf32>
    %78 = tpu.concatenate %77, %70 in 1 : vector<128x128xf32>, vector<128x128xf32> -> vector<128x256xf32>
    %cst_55 = arith.constant dense<0.000000e+00> : vector<128x128xf32>
    %79 = tpu.matmul %78, %73, %cst_55 {dimension_numbers = #tpu.dot_dimension_numbers<[1], [0], [0], [1], [0, 0, 1, 1], [], []>} : vector<128x256xf32>, vector<256x128xf32>, vector<128x128xf32> -> vector<128x128xf32>
    %80 = vector.broadcast %76 : vector<1x128xf32> to vector<128x128xf32>
    %81 = arith.addf %79, %80 : vector<128x128xf32>
    %cst_56 = arith.constant 0.000000e+00 : f32
    %82 = vector.broadcast %cst_56 : f32 to vector<128x128xf32>
    %83 = arith.maximumf %81, %82 : vector<128x128xf32>
    %c1_i32_57 = arith.constant 1 : i32
    %84 = arith.index_cast %c1_i32_57 : i32 to index
    %c0_58 = arith.constant 0 : index
    %c0_59 = arith.constant 0 : index
    %85 = vector.load %arg7[%84, %c0_58, %c0_59] : memref<3x256x128xf32, #tpu.memory_space<vmem>>, vector<1x256x128xf32>
    %86 = vector.shape_cast %85 : vector<1x256x128xf32> to vector<256x128xf32>
    %87 = arith.index_cast %c1_i32_57 : i32 to index
    %c0_60 = arith.constant 0 : index
    %c0_61 = arith.constant 0 : index
    %88 = vector.load %arg8[%87, %c0_60, %c0_61] : memref<3x1x128xf32, #tpu.memory_space<vmem>>, vector<1x1x128xf32>
    %89 = vector.shape_cast %88 : vector<1x1x128xf32> to vector<1x128xf32>
    %cst_62 = arith.constant dense<0.000000e+00> : vector<128x128xf32>
    %90 = tpu.matmul %3, %83, %cst_62 {dimension_numbers = #tpu.dot_dimension_numbers<[1], [0], [0], [1], [0, 0, 1, 1], [], []>} : vector<128x128xf32>, vector<128x128xf32>, vector<128x128xf32> -> vector<128x128xf32>
    %91 = tpu.concatenate %90, %83 in 1 : vector<128x128xf32>, vector<128x128xf32> -> vector<128x256xf32>
    %cst_63 = arith.constant dense<0.000000e+00> : vector<128x128xf32>
    %92 = tpu.matmul %91, %86, %cst_63 {dimension_numbers = #tpu.dot_dimension_numbers<[1], [0], [0], [1], [0, 0, 1, 1], [], []>} : vector<128x256xf32>, vector<256x128xf32>, vector<128x128xf32> -> vector<128x128xf32>
    %93 = vector.broadcast %89 : vector<1x128xf32> to vector<128x128xf32>
    %94 = arith.addf %92, %93 : vector<128x128xf32>
    %cst_64 = arith.constant 0.000000e+00 : f32
    %95 = vector.broadcast %cst_64 : f32 to vector<128x128xf32>
    %96 = arith.maximumf %94, %95 : vector<128x128xf32>
    %c2_i32_65 = arith.constant 2 : i32
    %97 = arith.index_cast %c2_i32_65 : i32 to index
    %c0_66 = arith.constant 0 : index
    %c0_67 = arith.constant 0 : index
    %98 = vector.load %arg7[%97, %c0_66, %c0_67] : memref<3x256x128xf32, #tpu.memory_space<vmem>>, vector<1x256x128xf32>
    %99 = vector.shape_cast %98 : vector<1x256x128xf32> to vector<256x128xf32>
    %100 = arith.index_cast %c2_i32_65 : i32 to index
    %c0_68 = arith.constant 0 : index
    %c0_69 = arith.constant 0 : index
    %101 = vector.load %arg8[%100, %c0_68, %c0_69] : memref<3x1x128xf32, #tpu.memory_space<vmem>>, vector<1x1x128xf32>
    %102 = vector.shape_cast %101 : vector<1x1x128xf32> to vector<1x128xf32>
    %cst_70 = arith.constant dense<0.000000e+00> : vector<128x128xf32>
    %103 = tpu.matmul %3, %96, %cst_70 {dimension_numbers = #tpu.dot_dimension_numbers<[1], [0], [0], [1], [0, 0, 1, 1], [], []>} : vector<128x128xf32>, vector<128x128xf32>, vector<128x128xf32> -> vector<128x128xf32>
    %104 = tpu.concatenate %103, %96 in 1 : vector<128x128xf32>, vector<128x128xf32> -> vector<128x256xf32>
    %cst_71 = arith.constant dense<0.000000e+00> : vector<128x128xf32>
    %105 = tpu.matmul %104, %99, %cst_71 {dimension_numbers = #tpu.dot_dimension_numbers<[1], [0], [0], [1], [0, 0, 1, 1], [], []>} : vector<128x256xf32>, vector<256x128xf32>, vector<128x128xf32> -> vector<128x128xf32>
    %106 = vector.broadcast %102 : vector<1x128xf32> to vector<128x128xf32>
    %107 = arith.addf %105, %106 : vector<128x128xf32>
    %cst_72 = arith.constant 0.000000e+00 : f32
    %108 = vector.broadcast %cst_72 : f32 to vector<128x128xf32>
    %109 = arith.maximumf %107, %108 : vector<128x128xf32>
    %c3_i32 = arith.constant 3 : i32
    %c0_73 = arith.constant 0 : index
    %c0_74 = arith.constant 0 : index
    %110 = vector.load %arg9[%c0_73, %c0_74] : memref<128x128xf32, #tpu.memory_space<vmem>>, vector<128x128xf32>
    %cst_75 = arith.constant dense<0.000000e+00> : vector<128x128xf32>
    %111 = tpu.matmul %109, %110, %cst_75 {dimension_numbers = #tpu.dot_dimension_numbers<[1], [0], [0], [1], [0, 0, 1, 1], [], []>} : vector<128x128xf32>, vector<128x128xf32>, vector<128x128xf32> -> vector<128x128xf32>
    %112 = arith.addf %19, %111 : vector<128x128xf32>
    %c0_76 = arith.constant 0 : index
    %c0_77 = arith.constant 0 : index
    %113 = vector.load %arg10[%c0_76, %c0_77] : memref<1x128xf32, #tpu.memory_space<vmem>>, vector<1x128xf32>
    %114 = vector.broadcast %113 : vector<1x128xf32> to vector<128x128xf32>
    %115 = arith.addf %112, %114 : vector<128x128xf32>
    %c0_78 = arith.constant 0 : index
    %c0_79 = arith.constant 0 : index
    %c0_80 = arith.constant 0 : index
    %116 = vector.load %arg11[%c0_78, %c0_79, %c0_80] : memref<1x128x128xf32, #tpu.memory_space<vmem>>, vector<1x128x128xf32>
    %117 = vector.shape_cast %116 : vector<1x128x128xf32> to vector<128x128xf32>
    %118 = vector.shape_cast %115 : vector<128x128xf32> to vector<1x128x128xf32>
    tpu.vector_store %arg11[%c0_78, %c0_79, %c0_80], %118 {strides = array<i32>} : memref<1x128x128xf32, #tpu.memory_space<vmem>>, vector<1x128x128xf32>,
    %c2_i32_81 = arith.constant 2 : i32
    %c0_i32_82 = arith.constant 0 : i32
    %119 = arith.cmpi eq, %c2_i32_81, %c0_i32_82 : i32
    %c1_i32_83 = arith.constant 1 : i32
    %120 = arith.select %119, %c1_i32_83, %c2_i32_81 : i32
    %121 = arith.remsi %arg0, %120 : i32
    %c0_i32_84 = arith.constant 0 : i32
    %122 = arith.cmpi ne, %121, %c0_i32_84 : i32
    %c0_i32_85 = arith.constant 0 : i32
    %123 = arith.cmpi slt, %121, %c0_i32_85 : i32
    %c0_i32_86 = arith.constant 0 : i32
    %124 = arith.cmpi slt, %120, %c0_i32_86 : i32
    %125 = arith.xori %123, %124 : i1
    %126 = arith.andi %125, %122 : i1
    %127 = arith.addi %121, %120 : i32
    %128 = arith.select %126, %127, %121 : i32
    %129 = arith.index_cast %128 : i32 to index
    %c0_87 = arith.constant 0 : index
    %c0_88 = arith.constant 0 : index
    %130 = vector.load %arg12[%129, %c0_87, %c0_88] : memref<2x128x128xf32, #tpu.memory_space<vmem>>, vector<1x128x128xf32>
    %131 = vector.shape_cast %130 : vector<1x128x128xf32> to vector<128x128xf32>
    %132 = vector.shape_cast %115 : vector<128x128xf32> to vector<1x128x128xf32>
    tpu.vector_store %arg12[%129, %c0_87, %c0_88], %132 {strides = array<i32>} : memref<2x128x128xf32, #tpu.memory_space<vmem>>, vector<1x128x128xf32>,
    return
  }
  func.func @transform_0(%arg0: i32) -> (i32, i32) {
    %c0_i32 = arith.constant 0 : i32
    %c0_i32_0 = arith.constant 0 : i32
    %c0_i32_1 = arith.constant 0 : i32
    return %c0_i32, %c0_i32_0 : i32, i32
  }
  func.func @transform_2(%arg0: i32) -> (i32, i32) {
    %c0_i32 = arith.constant 0 : i32
    %c0_i32_0 = arith.constant 0 : i32
    %c0_i32_1 = arith.constant 0 : i32
    return %c0_i32, %c0_i32_0 : i32, i32
  }
  func.func @transform_3(%arg0: i32) -> (i32, i32) {
    %c0_i32 = arith.constant 0 : i32
    %c0_i32_0 = arith.constant 0 : i32
    %c0_i32_1 = arith.constant 0 : i32
    return %c0_i32, %c0_i32_0 : i32, i32
  }
  func.func @transform_4(%arg0: i32) -> (i32, i32) {
    %c0_i32 = arith.constant 0 : i32
    %c0_i32_0 = arith.constant 0 : i32
    %c0_i32_1 = arith.constant 0 : i32
    return %c0_i32, %c0_i32_0 : i32, i32
  }
  func.func @transform_5(%arg0: i32) -> (i32, i32) {
    %c0_i32 = arith.constant 0 : i32
    %c0_i32_0 = arith.constant 0 : i32
    %c0_i32_1 = arith.constant 0 : i32
    return %c0_i32, %c0_i32_0 : i32, i32
  }
  func.func @transform_6(%arg0: i32) -> (i32, i32, i32) {
    %c0_i32 = arith.constant 0 : i32
    %c0_i32_0 = arith.constant 0 : i32
    %c0_i32_1 = arith.constant 0 : i32
    %c0_i32_2 = arith.constant 0 : i32
    return %c0_i32, %c0_i32_0, %c0_i32_1 : i32, i32, i32
  }
  func.func @transform_7(%arg0: i32) -> (i32, i32, i32) {
    %c0_i32 = arith.constant 0 : i32
    %c0_i32_0 = arith.constant 0 : i32
    %c0_i32_1 = arith.constant 0 : i32
    %c0_i32_2 = arith.constant 0 : i32
    return %c0_i32, %c0_i32_0, %c0_i32_1 : i32, i32, i32
  }
  func.func @transform_8(%arg0: i32) -> (i32, i32) {
    %c0_i32 = arith.constant 0 : i32
    %c0_i32_0 = arith.constant 0 : i32
    %c0_i32_1 = arith.constant 0 : i32
    return %c0_i32, %c0_i32_0 : i32, i32
  }
  func.func @transform_9(%arg0: i32) -> (i32, i32) {
    %c0_i32 = arith.constant 0 : i32
    %c0_i32_0 = arith.constant 0 : i32
    %c0_i32_1 = arith.constant 0 : i32
    return %c0_i32, %c0_i32_0 : i32, i32
  }
  func.func @transform_10(%arg0: i32) -> (i32, i32, i32) {
    %c0_i32 = arith.constant 0 : i32
    %c0_i32_0 = arith.constant 0 : i32
    %c0_i32_1 = arith.constant 0 : i32
    return %arg0, %c0_i32, %c0_i32_0 : i32, i32, i32
  }
}

</mosaic_0001>

<bundles_post_ra>
// kernel: tpu_custom_call.1
= control target key start
LH: loop header
LB: loop body
LE: loop exit
PB: predicated region body
PF: predicated region fallthrough
CT: control target
= control target key end

     0   :  { %s6448_s0 = inlined_call_operand.hbm [shape: f32[128,128], index: 0, kind: input, shape index: {}]   ;;  %s6449_s1 = inlined_call_operand.hbm [shape: f32[2,128,128], index: 1, kind: input, shape index: {}]   ;;  %s6450_s2 = inlined_call_operand.hbm [shape: f32[128,128], index: 2, kind: input, shape index: {}]   ;;  %s6451_s3 = inlined_call_operand.hbm [shape: f32[384,128], index: 3, kind: input, shape index: {}]   ;;  %s6452_s4 = inlined_call_operand.hbm [shape: f32[384,128], index: 4, kind: input, shape index: {}]   ;;  %s6453_s5 = inlined_call_operand.vmem [shape: f32[1,128], index: 5, kind: input, shape index: {}]   ;;  %s6454_s6 = inlined_call_operand.hbm [shape: f32[3,256,128], index: 6, kind: input, shape index: {}]   ;;  %s6455_s7 = inlined_call_operand.vmem [shape: f32[3,1,128], index: 7, kind: input, shape index: {}]   ;;  %s6456_s8 = inlined_call_operand.hbm [shape: f32[128,128], index: 8, kind: input, shape index: {}]   ;;  %s6457_s9 = inlined_call_operand.vmem [shape: f32[1,128], index: 9, kind: input, shape index: {}]   ;;  %s6458_s10 = inlined_call_operand.hbm [shape: f32[3,128,128], index: 10, kind: output, shape index: {}]  }
   0x1   :  { %6471 = sst [smem:[#allocation32_spill]] %s6450_s2 }
   0x2   :  { %15 = vsyncpa [#allocation5], 0 }
   0x3   :  { %16 = vsyncpa [#allocation8], 0 }
   0x4   :  { %17 = vsyncpa [#allocation11], 0 }
   0x5   :  { %18 = vsyncpa [#allocation14], 0 }
   0x6   :  { %19 = vsyncpa [#allocation6], 0 }
   0x7   :  { %21 = vsyncpa [#allocation6 + $0x1], 0  ;;  %s5359_s13 = smov 0   ;;  %s5361_s14 = smov 0  }
   0x8   :  { %s5363_s15 = smov 0   ;;  %s5365_s16 = smov 0  }
   0x9 LB: > { %6472 = sst [smem:[#allocation26_spill]] %s5278_s13  ;;  %s5380_s17 = sadd.s32 4294967295, %s5290_s16   ;;  %s5290_s16 = sphi %s5365_s16, %s6506_s16   ;;  %s5286_s15 = sphi %s5363_s15, %s6508_s15   ;;  %s5282_s14 = sphi %s5361_s14, %s6510_s14   ;;  %s5278_s13 = sphi %s5359_s13, %s6509_s13  }
   0xa   : > { %6473 = sst [smem:[#allocation27_spill]] %s5286_s15  ;;  %s3099_s18 = sadd.s32 4294967294, %s5290_s16  }
   0xb   : > { %6474 = sst [smem:[#allocation28_spill]] %s5290_s16  ;;  %s5384_s19 = sadd.s32 1, %s5290_s16  }
   0xc   : > { %6475 = sst [smem:[#allocation29_spill]] %s5384_s19  ;;  %s223_s20 = sadd.s32 1, %s5286_s15 }
   0xd   : > { %s220_s21 = ssub.s32 %s5290_s16, %s5384_s19  ;;  %p233_p0 = scmp.ne.s32.totalorder %s5286_s15, %s5282_s14 }
   0xe   : > { %p221_p1 = scmp.eq.s32.totalorder %s220_s21, 0  ;;  %p234_p2 = scmp.eq.s32.totalorder %s5380_s17, 2 }
   0xf   : > { %p239_p3 = scmp.ne.s32.totalorder %s5282_s14, %s5278_s13  ;;  %p240_p4 = scmp.eq.s32.totalorder %s3099_s18, 2 }
  0x10   : > { %s5395_s22 = scalar_select %p221_p1, %s5286_s15, %s223_s20  }
  0x11   : > { %p5397_p5 = por %p234_p2, %p233_p0  ;;  %p5401_p6 = por %p240_p4, %p239_p3 }
  0x12   : > { %6476 = sst [smem:[#allocation30_spill]] %s5395_s22  ;;  %p3100_p7 = scmp.ge.s32.totalorder %s5290_s16, 1 }
  0x13   : > { %s6477_s23 = scalar_select %p5397_p5, 1, 0 }
  0x14   : > { %s6478_s24 = scalar_select %p5401_p6, 1, 0 }
  0x15   : > { %p247_p8 = scmp.lt.s32.totalorder %s5290_s16, 4  ;;  %p6460_p9 = scmp.eq.s32.totalorder %s5380_s17, 0 }
  0x16   : > { %6479 = sst [smem:[#allocation31_spill]] %s6478_s24  ;;  %s5292_s26 = smov [#allocation7]  }
  0x17   : > { %p5408_p10 = pnand %p3100_p7, %p247_p8  ;;  %s272_s27 = sshll.u32 %s5292_s26, 4  ;;  %s5414_s27 = int_to_ptr.vmem [resolvable:$true] %s272_s27 }
  0x18   : > { %s5293_s29 = smov [#allocation10]   ;;  %s5294_s11 = smov [#allocation4]  }
  0x19   : > { %s6480_s25 = scalar_select %p5408_p10, 1, 0 }
  0x1a   : > { %p4903_p11 = pneg %p5408_p10  ;;  %s298_s30 = sshll.u32 %s5293_s29, 4  ;;  %s5422_s30 = int_to_ptr.vmem [resolvable:$true] %s298_s30 }
  0x1b   : > { %s5424_s12 = sshll.u32 %s5294_s11, 4  ;;  %s6482_s2 = sld [smem:[#allocation32_spill]]  ;;  %s260_s12 = int_to_ptr.vmem [resolvable:$true] %s5424_s12 }
  0x1c   : > { %p5418_p12 = pnand %p6460_p9, %p4903_p11 }
  0x1e   : > { %p5434_p0 = pneg %p5418_p12 }
  0x21   : > { %s5014_s21 = scalar_lea.hbm %s6482_s2, 2048 }
  0x22   : > { %p5015_p13 = scmp.ne.s32.totalorder %s6482_s2, %s5014_s21  ;;  %p5021_p3 = scmp.lt.u32.totalorder %s5014_s21, %s6482_s2 }
  0x24   : > { %p5017_p1 = pnand %p5434_p0, %p5015_p13 }
  0x26   : > { %p5018_p2 = pneg %p5017_p1 }
  0x28   : > { %p5023_p4 = pnand %p5021_p3, %p5018_p2 }
  0x2a   : > { %5026 = shalt.err (!%p5023_p4)
}
  0x2b   : > { %s5027_s22 = scalar_lea.vmem %s5414_s27, 2048  ;;  %p5035_p9 = scmp.lt.s32.totalorder %s5414_s27, %s5414_s27 }
  0x2c   : > { %p5028_p7 = scmp.ne.s32.totalorder %s5414_s27, %s5027_s22  ;;  %p5036_p6 = scmp.lt.s32.totalorder %s5027_s22, %s5027_s22 }
  0x2e   : > { %p5030_p8 = pnand %p5028_p7, %p5434_p0  ;;  %p5037_p13 = por %p5036_p6, %p5035_p9 }
  0x30   : > { %p5031_p11 = pneg %p5030_p8 }
  0x32   : > { %p5038_p1 = pnand %p5037_p13, %p5031_p11 }
  0x34   : > { %5041 = shalt.err (!%p5038_p1)
}
  0x35   : > { %s5295_s18 = smov 128   ;;  %s5296_s20 = smov 8  }
  0x36   : > { %4909 = dma.hbm_to_vmem [thread:$0]  (!%p5418_p12), %s6482_s2, 2048, %s5414_s27, [#allocation8], %s5295_s18, %s5295_s18, %s5296_s20  }
  0x37   : > { %s5042_s22 = scalar_lea.hbm %s6452_s4, 6144 }
  0x38   : > { %p5043_p6 = scmp.ne.s32.totalorder %s6452_s4, %s5042_s22  ;;  %p5049_p3 = scmp.lt.u32.totalorder %s5042_s22, %s6452_s4 }
  0x3a   : > { %p5045_p9 = pnand %p5043_p6, %p5434_p0 }
  0x3c   : > { %p5046_p2 = pneg %p5045_p9 }
  0x3e   : > { %p5051_p4 = pnand %p5049_p3, %p5046_p2 }
  0x40   : > { %5054 = shalt.err (!%p5051_p4)
}
  0x41   : > { %s5055_s27 = scalar_lea.vmem %s5422_s30, 6144  ;;  %p5063_p13 = scmp.lt.s32.totalorder %s5422_s30, %s5422_s30 }
  0x42   : > { %p5056_p7 = scmp.ne.s32.totalorder %s5422_s30, %s5055_s27  ;;  %p5064_p1 = scmp.lt.s32.totalorder %s5055_s27, %s5055_s27 }
  0x44   : > { %p5058_p8 = pnand %p5056_p7, %p5434_p0  ;;  %p5065_p6 = por %p5064_p1, %p5063_p13 }
  0x46   : > { %p5059_p11 = pneg %p5058_p8 }
  0x48   : > { %p5066_p9 = pnand %p5065_p6, %p5059_p11 }
  0x4a   : > { %5069 = shalt.err (!%p5066_p9)
}
  0x4b   : > { %4915 = dma.hbm_to_vmem [thread:$0]  (!%p5418_p12), %s6452_s4, 6144, %s5422_s30, [#allocation11], %s5295_s18, %s5295_s18, %s5296_s20  }
  0x4c   : > { %s5070_s21 = scalar_lea.hbm %s6448_s0, 2048 }
  0x4d   : > { %p5071_p2 = scmp.ne.s32.totalorder %s6448_s0, %s5070_s21  ;;  %p5077_p7 = scmp.lt.u32.totalorder %s5070_s21, %s6448_s0 }
  0x4f   : > { %p5073_p3 = pnand %p5071_p2, %p5434_p0 }
  0x51   : > { %p5074_p4 = pneg %p5073_p3 }
  0x53   : > { %p5079_p8 = pnand %p5077_p7, %p5074_p4 }
  0x55   : > { %5082 = shalt.err (!%p5079_p8)
}
  0x56   : > { %s5083_s27 = scalar_lea.vmem %s260_s12, 2048  ;;  %p5091_p6 = scmp.lt.s32.totalorder %s260_s12, %s260_s12 }
  0x57   : > { %p5084_p11 = scmp.ne.s32.totalorder %s260_s12, %s5083_s27  ;;  %p5092_p9 = scmp.lt.s32.totalorder %s5083_s27, %s5083_s27 }
  0x59   : > { %p5086_p13 = pnand %p5084_p11, %p5434_p0  ;;  %p5093_p5 = por %p5092_p9, %p5091_p6 }
  0x5b   : > { %p5087_p1 = pneg %p5086_p13 }
  0x5d   : > { %p5094_p10 = pnand %p5093_p5, %p5087_p1 }
  0x5f   : > { %5097 = shalt.err (!%p5094_p10)
}
  0x60   : > { %4906 = dma.hbm_to_vmem [thread:$0]  (!%p5418_p12), %s6448_s0, 2048, %s260_s12, [#allocation5], %s5295_s18, %s5295_s18, %s5296_s20  }
  0x61   : > { %s5297_s16 = smov [#allocation9]   ;;  %s5298_s24 = smov [#allocation12]  }
  0x62   : > { %s285_s19 = sshll.u32 %s5297_s16, 4  ;;  %s314_s21 = sshll.u32 %s5298_s24, 4  ;;  %s286_s19 = int_to_ptr.vmem [resolvable:$true] %s285_s19  ;;  %s315_s21 = int_to_ptr.vmem [resolvable:$true] %s314_s21 }
  0x63   : > { %s5098_s11 = scalar_lea.hbm %s6451_s3, 6144 }
  0x64   : > { %p5099_p5 = scmp.ne.s32.totalorder %s6451_s3, %s5098_s11  ;;  %p5105_p3 = scmp.lt.u32.totalorder %s5098_s11, %s6451_s3 }
  0x66   : > { %p5101_p10 = pnand %p5099_p5, %p5434_p0 }
  0x68   : > { %p5102_p2 = pneg %p5101_p10 }
  0x6a   : > { %p5107_p4 = pnand %p5105_p3, %p5102_p2 }
  0x6c   : > { %5110 = shalt.err (!%p5107_p4)
}
  0x6d   : > { %s5111_s12 = scalar_lea.vmem %s286_s19, 6144  ;;  %p5119_p13 = scmp.lt.s32.totalorder %s286_s19, %s286_s19 }
  0x6e   : > { %p5112_p7 = scmp.ne.s32.totalorder %s286_s19, %s5111_s12  ;;  %p5120_p1 = scmp.lt.s32.totalorder %s5111_s12, %s5111_s12 }
  0x70   : > { %p5114_p8 = pnand %p5112_p7, %p5434_p0  ;;  %p5121_p6 = por %p5120_p1, %p5119_p13 }
  0x72   : > { %p5115_p11 = pneg %p5114_p8 }
  0x74   : > { %p5122_p9 = pnand %p5121_p6, %p5115_p11 }
  0x76   : > { %5125 = shalt.err (!%p5122_p9)
}
  0x77   : > { %4912 = dma.hbm_to_vmem [thread:$0]  (!%p5418_p12), %s6451_s3, 6144, %s286_s19, [#allocation8], %s5295_s18, %s5295_s18, %s5296_s20  }
  0x78   : > { %s5126_s26 = scalar_lea.hbm %s6454_s6, 12288 }
  0x79   : > { %p5127_p5 = scmp.ne.s32.totalorder %s6454_s6, %s5126_s26  ;;  %p5133_p3 = scmp.lt.u32.totalorder %s5126_s26, %s6454_s6 }
  0x7b   : > { %p5129_p10 = pnand %p5127_p5, %p5434_p0 }
  0x7d   : > { %p5130_p2 = pneg %p5129_p10 }
  0x7f   : > { %p5135_p4 = pnand %p5133_p3, %p5130_p2 }
  0x81   : > { %5138 = shalt.err (!%p5135_p4)
}
  0x82   : > { %s5139_s30 = scalar_lea.vmem %s315_s21, 12288  ;;  %p5147_p13 = scmp.lt.s32.totalorder %s315_s21, %s315_s21 }
  0x83   : > { %p5140_p7 = scmp.ne.s32.totalorder %s315_s21, %s5139_s30  ;;  %p5148_p1 = scmp.lt.s32.totalorder %s5139_s30, %s5139_s30 }
  0x85   : > { %p5142_p8 = pnand %p5140_p7, %p5434_p0  ;;  %p5149_p6 = por %p5148_p1, %p5147_p13 }
  0x87   : > { %p5143_p11 = pneg %p5142_p8 }
  0x89   : > { %p5150_p9 = pnand %p5149_p6, %p5143_p11 }
  0x8b   : > { %5153 = shalt.err (!%p5150_p9)
}
  0x8c   : > { %4918 = dma.hbm_to_vmem [thread:$0]  (!%p5418_p12), %s6454_s6, 12288, %s315_s21, [#allocation11], %s5295_s18, %s5295_s18, %s5296_s20  }
  0x8d   : > { %s5299_s2 = smov [#allocation13]   ;;  %s5154_s26 = scalar_lea.hbm %s6456_s8, 2048 }
  0x8e   : > { %s330_s13 = sshll.u32 %s5299_s2, 4  ;;  %p5155_p5 = scmp.ne.s32.totalorder %s6456_s8, %s5154_s26  ;;  %s331_s13 = int_to_ptr.vmem [resolvable:$true] %s330_s13 }
  0x8f   : > { %p5161_p3 = scmp.lt.u32.totalorder %s5154_s26, %s6456_s8 }
  0x90   : > { %p5157_p10 = pnand %p5155_p5, %p5434_p0 }
  0x92   : > { %p5158_p2 = pneg %p5157_p10 }
  0x94   : > { %p5163_p4 = pnand %p5161_p3, %p5158_p2 }
  0x96   : > { %5166 = shalt.err (!%p5163_p4)
}
  0x97   : > { %s5167_s21 = scalar_lea.vmem %s331_s13, 2048  ;;  %p5175_p13 = scmp.lt.s32.totalorder %s331_s13, %s331_s13 }
  0x98   : > { %p5168_p7 = scmp.ne.s32.totalorder %s331_s13, %s5167_s21  ;;  %p5176_p1 = scmp.lt.s32.totalorder %s5167_s21, %s5167_s21 }
  0x9a   : > { %p5170_p8 = pnand %p5168_p7, %p5434_p0  ;;  %p5177_p6 = por %p5176_p1, %p5175_p13 }
  0x9c   : > { %p5171_p11 = pneg %p5170_p8 }
  0x9e   : > { %p5178_p9 = pnand %p5177_p6, %p5171_p11 }
  0xa0   : > { %5181 = shalt.err (!%p5178_p9)
}
  0xa1   : > { %4921 = dma.hbm_to_vmem [thread:$0]  (!%p5418_p12), %s6456_s8, 2048, %s331_s13, [#allocation14], %s5295_s18, %s5295_s18, %s5296_s20  }
  0xa2   : > { %p6484_p5 = scmp.ne.s32.totalorder %s6480_s25, 0 }
  0xa3   : > { %p6485_p0 = scmp.eq.s32.totalorder (!%p6484_p5), %s5380_s17, 0 }
  0xa4   : > { %349 = sbr.rel (%p6484_p5) target bundleno = 2561 (0xa01), region = 56 }
  0xab   : > { %5253 = dma.done.wait (%p6485_p0), [#allocation5], 2048   ;;  %p6486_p10 = pmov %p6485_p0 }
  0xac   : > { %p6487_p2 = pmov %p6485_p0 }
  0xad   : > { %5255 = vsyncadd (%p6486_p10), [#allocation5], 4294965248 }
  0xae   : > { %5257 = dma.done.wait (%p6487_p2), [#allocation8], 8192   ;;  %p6488_p3 = pmov %p6485_p0 }
  0xaf   : > { %p6489_p4 = pmov %p6485_p0 }
  0xb0   : > { %5259 = vsyncadd (%p6488_p3), [#allocation8], 4294959104 }
  0xb1   : > { %5261 = dma.done.wait (%p6489_p4), [#allocation11], 18432   ;;  %p6490_p12 = pmov %p6485_p0 }
  0xb2   : > { %p6491_p7 = pmov %p6485_p0 }
  0xb3   : > { %5263 = vsyncadd (%p6490_p12), [#allocation11], 4294948864 }
  0xb4   : > { %5265 = dma.done.wait (%p6491_p7), [#allocation14], 2048   ;;  %p6492_p8 = pmov %p6485_p0 }
  0xb5   : > { %s397_s15 = sand.u32 1, %s5282_s14   ;;  %s5300_s28 = smov [#allocation2]  }
  0xb6   : > { %5267 = vsyncadd (%p6492_p8), [#allocation14], 4294965248  ;;  %s3114_s25 = sshll.u32 %s397_s15, 7  ;;  %s411_s18 = sshll.u32 %s5300_s28, 4  ;;  %s412_s18 = int_to_ptr.vmem [resolvable:$true] %s411_s18 }
  0xb7   : > { %s5182_s2 = scalar_lea.hbm %s6449_s1, 4096  ;;  %p6493_p13 = pmov %p6485_p0 }
  0xb8   : > { %p5183_p11 = scmp.ne.s32.totalorder %s6449_s1, %s5182_s2  ;;  %p5188_p9 = scmp.lt.u32.totalorder %s5182_s2, %s6449_s1 }
  0xba   : > { %p5184_p1 = pnand %p5183_p11, %p6493_p13 }
  0xbc   : > { %p5185_p6 = pneg %p5184_p1 }
  0xbe   : > { %p5190_p5 = pnand %p5188_p9, %p5185_p6 }
  0xc0   : > { %5193 = shalt.err (!%p5190_p5)  }
  0xc1   : > { %s5194_s29 = scalar_lea.vmem %s412_s18, 4096  ;;  %p6494_p10 = pmov %p6487_p2 }
  0xc2   : > { %p5195_p0 = scmp.ne.s32.totalorder %s412_s18, %s5194_s29  ;;  %p5201_p4 = scmp.lt.s32.totalorder %s412_s18, %s412_s18 }
  0xc3   : > { %p5202_p12 = scmp.lt.s32.totalorder %s5194_s29, %s5194_s29 }
  0xc4   : > { %p5196_p2 = pnand %p5195_p0, %p6494_p10 }
  0xc5   : > { %p5203_p7 = por %p5202_p12, %p5201_p4 }
  0xc6   : > { %p5197_p3 = pneg %p5196_p2 }
  0xc8   : > { %p5204_p8 = pnand %p5203_p7, %p5197_p3 }
  0xca   : > { %5207 = shalt.err (!%p5204_p8)  }
  0xcb   : > { %p6495_p11 = pmov %p6494_p10  ;;  %s5608_s27 = scalar_lea.vmem [#allocation15], %s3114_s25 }
  0xcc   : > { %p6496_p13 = pmov %p6494_p10 }
  0xcd   : > { %4899 = dma.hbm_to_vmem [thread:$0]  (%p6495_p11), %s6449_s1, 4096, %s412_s18, [#allocation3] }
  0xce   : > { %5269 = dma.done.wait (%p6496_p13), [#allocation3], 4096  ;;  %p6497_p1 = pmov %p6494_p10 }
  0xcf   : > { %p514_p6 = scmp.lt.s32.totalorder %s5380_s17, 0  ;;  %s515_s21 = ssub.s32 0, %s5380_s17  ;;  %v544_v0 = vld [vmem:[#allocation9] sm:$0xff]  ;;  %v545_v1 = vld [vmem:[#allocation9 + $0x8] sm:$0xff]  ;;  %v546_v2 = vld [vmem:[#allocation9 + $0x10] sm:$0xff] }
  0xd0   : > { %5271 = vsyncadd (%p6497_p1), [#allocation3], 4294963200  ;;  %s3120_s30 = smin.u32 %s5380_s17, %s515_s21  ;;  %v4346_v3 = vpack.c.bf16 %v545_v1, %v544_v0  ;;  %v547_v4 = vld [vmem:[#allocation9 + $0x18] sm:$0xff]  ;;  %v548_v6 = vld [vmem:[#allocation9 + $0x20] sm:$0xff]  ;;  %s5680_s12 = sadd.s32 1, %s5380_s17 }
  0xd1   : > { %s517_s19 = sand.u32 1, %s3120_s30   ;;  %v4350_v5 = vpack.c.bf16 %v547_v4, %v546_v2  ;;  %v549_v7 = vld [vmem:[#allocation9 + $0x28] sm:$0xff]  ;;  %v550_v10 = vld [vmem:[#allocation9 + $0x30] sm:$0xff]  ;;  %v551_v11 = vld [vmem:[#allocation9 + $0x38] sm:$0xff]  ;;  %s453_s2 = ssub.s32 0, %s5680_s12 }
  0xd2   : > { %s518_s28 = ssub.s32 0, %s517_s19  ;;  %4347 = vmatprep.subr.bf16.mxu0 %v4346_v3  ;;  %v4354_v8 = vpack.c.bf16 %v549_v7, %v548_v6  ;;  %v4358_v12 = vpack.c.bf16 %v551_v11, %v550_v10  ;;  %v552_v13 = vld [vmem:[#allocation9 + $0x40] sm:$0xff]  ;;  %v553_v14 = vld [vmem:[#allocation9 + $0x48] sm:$0xff]  ;;  %v554_v16 = vld [vmem:[#allocation9 + $0x50] sm:$0xff]  ;;  %s5692_s13 = smin.u32 %s453_s2, %s5680_s12 }
  0xd3   : > { %s6512_s28 = smov (!%p514_p6, %s518_s28), %s517_s19  ;;  %4349 = vmatpush3.bf16.msra.mxu0 %v4346_v3  ;;  %v4362_v15 = vpack.c.bf16 %v553_v14, %v552_v13  ;;  %v555_v17 = vld [vmem:[#allocation9 + $0x58] sm:$0xff]  ;;  %v556_v19 = vld [vmem:[#allocation9 + $0x60] sm:$0xff]  ;;  %v557_v20 = vld [vmem:[#allocation9 + $0x68] sm:$0xff]  ;;  %s455_s16 = sand.u32 1, %s5692_s13  }
  0xd4   : > { %p3122_p9 = scmp.lt.s32.totalorder %s6512_s28, 0  ;;  %s524_s20 = sadd.s32 2, %s6512_s28  ;;  %4351 = vmatprep.subr.bf16.mxu0 %v4350_v5  ;;  %v4366_v18 = vpack.c.bf16 %v555_v17, %v554_v16  ;;  %v4370_v21 = vpack.c.bf16 %v557_v20, %v556_v19  ;;  %v558_v22 = vld [vmem:[#allocation9 + $0x70] sm:$0xff]  ;;  %v559_v23 = vld [vmem:[#allocation9 + $0x78] sm:$0xff]  ;;  %v482_v25 = vld [vmem:[#allocation9 + $0x100] sm:$0xff] }
  0xd5   : > { %v4374_v24 = vpack.c.bf16 %v559_v23, %v558_v22  ;;  %v483_v26 = vld [vmem:[#allocation9 + $0x108] sm:$0xff]  ;;  %v484_v28 = vld [vmem:[#allocation9 + $0x110] sm:$0xff]  ;;  %v485_v29 = vld [vmem:[#allocation9 + $0x118] sm:$0xff]  ;;  %p452_p5 = scmp.lt.s32.totalorder %s5680_s12, 0  ;;  %s456_s24 = ssub.s32 0, %s455_s16 }
  0xd6   : > { %s6514_s20 = smov (!%p3122_p9, %s524_s20), %s6512_s28  ;;  %v4378_v27 = vpack.c.bf16 %v483_v26, %v482_v25  ;;  %v850_v31 = vld [vmem:[#allocation10] sm:$0xff]  ;;  %v851_v32 = vld [vmem:[#allocation10 + $0x8] sm:$0xff]  ;;  %v852_v33 = vld [vmem:[#allocation10 + $0x10] sm:$0xff]  ;;  %v4382_v35 = vpack.c.bf16 %v485_v29, %v484_v28  ;;  %p6501_p2 = scmp.ne.s32.totalorder %s6477_s23, 0 }
  0xd7   : > { %s3123_s25 = sshll.u32 %s6514_s20, 7  ;;  %4353 = vmatpush3.bf16.msra.mxu0 %v4350_v5  ;;  %v4410_v36 = vpack.c.bf16 %v851_v32, %v850_v31  ;;  %v853_v37 = vld [vmem:[#allocation10 + $0x18] sm:$0xff]  ;;  %v486_v38 = vld [vmem:[#allocation9 + $0x120] sm:$0xff]  ;;  %v487_v39 = vld [vmem:[#allocation9 + $0x128] sm:$0xff]  ;;  %s6516_s24 = smov (!%p452_p5, %s456_s24), %s455_s16 }
  0xd8   : > { %s5617_s18 = scalar_lea.vmem [#allocation2], %s3123_s25  ;;  %4355 = vmatprep.subr.bf16.mxu0 %v4354_v8  ;;  %v4414_v40 = vpack.c.bf16 %v853_v37, %v852_v33  ;;  %v854_v41 = vld [vmem:[#allocation10 + $0x20] sm:$0xff]  ;;  %v855_v42 = vld [vmem:[#allocation10 + $0x28] sm:$0xff]  ;;  %v4386_v45 = vpack.c.bf16 %v487_v39, %v486_v38  ;;  %v488_v46 = vld [vmem:[#allocation9 + $0x130] sm:$0xff]  ;;  %p3118_p0 = scmp.lt.s32.totalorder %s6516_s24, 0 }
  0xd9   : > { %v528_v9 = vld [vmem:[%s5617_s18] sm:$0xff]  ;;  %v5621_v30 = vld [vmem:[%s5617_s18 + $0x8] sm:$0xff]  ;;  %v5624_v34 = vld [vmem:[%s5617_s18 + $0x10] sm:$0xff]  ;;  %4411 = vmatprep.subr.bf16.mxu1 %v4410_v36  ;;  %v4418_v48 = vpack.c.bf16 %v855_v42, %v854_v41  ;;  %s462_s26 = sadd.s32 2, %s6516_s24  ;;  %s3137_s16 = sshll.u32 %s5380_s17, 11 }
  0xda   : > { %3762 = vmatprep.mubr.f32.mxu0 %v528_v9  ;;  %3874 = vmatprep.mubr.f32.mxu1 %v528_v9  ;;  %v5629_v43 = vld [vmem:[%s5617_s18 + $0x18] sm:$0xff]  ;;  %v5632_v44 = vld [vmem:[%s5617_s18 + $0x20] sm:$0xff]  ;;  %v856_v49 = vld [vmem:[#allocation10 + $0x30] sm:$0xff]  ;;  %s6518_s26 = smov (!%p3118_p0, %s462_s26), %s6516_s24  ;;  %s2979_s24 = sshll.u32 %s5608_s27, 4  ;;  %s6398_s24 = int_to_ptr.vmem [resolvable:$true] %s2979_s24 }
  0xdb   : > { %4357 = vmatpush3.bf16.msra.mxu0 %v4354_v8  ;;  %4413 = vmatpush3.bf16.msra.mxu1 %v4410_v36  ;;  %v489_v47 = vld [vmem:[#allocation9 + $0x138] sm:$0xff]  ;;  %v5637_v51 = vld [vmem:[%s5617_s18 + $0x28] sm:$0xff]  ;;  %v5640_v52 = vld [vmem:[%s5617_s18 + $0x30] sm:$0xff]  ;;  %s3119_s29 = sshll.u32 %s6518_s26, 7  ;;  %s6396_s22 = scalar_lea.hbm %s6458_s10, %s3137_s16 }
  0xdc   : > { %4359 = vmatprep.subr.bf16.mxu0 %v4358_v12  ;;  %4415 = vmatprep.subr.bf16.mxu1 %v4414_v40  ;;  %v857_v50 = vld [vmem:[#allocation10 + $0x38] sm:$0xff]  ;;  %v4390_v53 = vpack.c.bf16 %v489_v47, %v488_v46  ;;  %v490_v54 = vld [vmem:[#allocation9 + $0x140] sm:$0xff]  ;;  %v491_v55 = vld [vmem:[#allocation9 + $0x148] sm:$0xff]  ;;  %s5760_s11 = scalar_lea.vmem [#allocation2], %s3119_s29  ;;  %s6407_s17 = scalar_lea.sflag [#allocation6], %s397_s15 }
  0xdd   : > { %v4422_v56 = vpack.c.bf16 %v857_v50, %v856_v49  ;;  %v858_v57 = vld [vmem:[#allocation10 + $0x40] sm:$0xff]  ;;  %v859_v58 = vld [vmem:[#allocation10 + $0x48] sm:$0xff]  ;;  %v5645_v59 = vld [vmem:[%s5617_s18 + $0x38] sm:$0xff]  ;;  %v4394_v61 = vpack.c.bf16 %v491_v55, %v490_v54  ;;  %s5301_s21 = smov [#allocation15]  }
  0xde   : > { %v5648_v60 = vld [vmem:[%s5617_s18 + $0x40] sm:$0xff]  ;;  %v492_v62 = vld [vmem:[#allocation9 + $0x150] sm:$0xff]  ;;  %v493_v63 = vld [vmem:[#allocation9 + $0x158] sm:$0xff]  ;;  %v4426_v0 = vpack.c.bf16 %v859_v58, %v858_v57  ;;  %s5212_s30 = sshll.u32 %s5301_s21, 4  ;;  %s5213_s30 = int_to_ptr.vmem [resolvable:$false] %s5212_s30 }
  0xdf   : > { %4361 = vmatpush3.bf16.msra.mxu0 %v4358_v12  ;;  %4417 = vmatpush3.bf16.msra.mxu1 %v4414_v40  ;;  %v860_v1 = vld [vmem:[#allocation10 + $0x50] sm:$0xff]  ;;  %v861_v2 = vld [vmem:[#allocation10 + $0x58] sm:$0xff]  ;;  %v5653_v3 = vld [vmem:[%s5617_s18 + $0x48] sm:$0xff]  ;;  %v4398_v5 = vpack.c.bf16 %v493_v63, %v492_v62  ;;  %s5214_s19 = scalar_lea.vmem %s5213_s30, 4096  ;;  %p5215_p12 = scmp.lt.s32.totalorder %s6398_s24, %s5213_s30 }
  0xe0   : > { %4363 = vmatprep.subr.bf16.mxu0 %v4362_v15  ;;  %4419 = vmatprep.subr.bf16.mxu1 %v4418_v48  ;;  %v5656_v4 = vld [vmem:[%s5617_s18 + $0x50] sm:$0xff]  ;;  %v494_v6 = vld [vmem:[#allocation9 + $0x160] sm:$0xff]  ;;  %v495_v7 = vld [vmem:[#allocation9 + $0x168] sm:$0xff]  ;;  %v4430_v8 = vpack.c.bf16 %v861_v2, %v860_v1 }
  0xe1   : > { %v862_v9 = vld [vmem:[#allocation10 + $0x60] sm:$0xff]  ;;  %v863_v10 = vld [vmem:[#allocation10 + $0x68] sm:$0xff]  ;;  %v5661_v11 = vld [vmem:[%s5617_s18 + $0x58] sm:$0xff]  ;;  %v4402_v13 = vpack.c.bf16 %v495_v7, %v494_v6 }
  0xe2   : > { %v5664_v12 = vld [vmem:[%s5617_s18 + $0x60] sm:$0xff]  ;;  %v496_v14 = vld [vmem:[#allocation9 + $0x170] sm:$0xff]  ;;  %v4434_v16 = vpack.c.bf16 %v863_v10, %v862_v9  ;;  %v5669_v19 = vld [vmem:[%s5617_s18 + $0x68] sm:$0xff] }
  0xe3   : > { %4365 = vmatpush3.bf16.msra.mxu0 %v4362_v15  ;;  %4421 = vmatpush3.bf16.msra.mxu1 %v4418_v48  ;;  %v497_v15 = vld [vmem:[#allocation9 + $0x178] sm:$0xff]  ;;  %v864_v17 = vld [vmem:[#allocation10 + $0x70] sm:$0xff]  ;;  %v1156_v22 = vld [vmem:[#allocation9 + $0x80] sm:$0xff] }
  0xe4   : > { %4367 = vmatprep.subr.bf16.mxu0 %v4366_v18  ;;  %4423 = vmatprep.subr.bf16.mxu1 %v4422_v56  ;;  %v5672_v20 = vld [vmem:[%s5617_s18 + $0x70] sm:$0xff]  ;;  %v1157_v23 = vld [vmem:[#allocation9 + $0x88] sm:$0xff]  ;;  %v498_v25 = vld [vmem:[#allocation10 + $0x100] sm:$0xff] }
  0xe5   : > { %v499_v26 = vld [vmem:[#allocation10 + $0x108] sm:$0xff]  ;;  %v5682_v28 = vld [vmem:[#allocation7] sm:$0xff]  ;;  %v4474_v29 = vpack.c.bf16 %v1157_v23, %v1156_v22  ;;  %v1158_v31 = vld [vmem:[#allocation9 + $0x90] sm:$0xff] }
  0xe6   : > { %v1159_v32 = vld [vmem:[#allocation9 + $0x98] sm:$0xff]  ;;  %v4442_v33 = vpack.c.bf16 %v499_v26, %v498_v25  ;;  %v500_v36 = vld [vmem:[#allocation10 + $0x110] sm:$0xff]  ;;  %v1160_v40 = vld [vmem:[#allocation9 + $0xa0] sm:$0xff] }
  0xe7   : > { %4369 = vmatpush3.bf16.msra.mxu0 %v4366_v18  ;;  %4425 = vmatpush3.bf16.msra.mxu1 %v4422_v56  ;;  %v865_v18 = vld [vmem:[#allocation10 + $0x78] sm:$0xff]  ;;  %v5689_v38 = vld [vmem:[#allocation7 + $0x10] sm:$0xff]  ;;  %v4478_v39 = vpack.c.bf16 %v1159_v32, %v1158_v31  ;;  %v1161_v41 = vld [vmem:[#allocation9 + $0xa8] sm:$0xff] }
  0xe8   : > { %4371 = vmatprep.subr.bf16.mxu0 %v4370_v21  ;;  %4427 = vmatprep.subr.bf16.mxu1 %v4426_v0  ;;  %v501_v37 = vld [vmem:[#allocation10 + $0x118] sm:$0xff]  ;;  %v502_v46 = vld [vmem:[#allocation10 + $0x120] sm:$0xff]  ;;  %v503_v47 = vld [vmem:[#allocation10 + $0x128] sm:$0xff]  ;;  %v4482_v49 = vpack.c.bf16 %v1161_v41, %v1160_v40 }
  0xe9   : > { %v4446_v42 = vpack.c.bf16 %v501_v37, %v500_v36  ;;  %v5698_v48 = vld [vmem:[#allocation7 + $0x20] sm:$0xff]  ;;  %v1162_v50 = vld [vmem:[#allocation9 + $0xb0] sm:$0xff]  ;;  %v4450_v54 = vpack.c.bf16 %v503_v47, %v502_v46  ;;  %v5706_v55 = vld [vmem:[#allocation7 + $0x28] sm:$0xff] }
  0xea   : > { %v504_v56 = vld [vmem:[#allocation10 + $0x130] sm:$0xff]  ;;  %v505_v57 = vld [vmem:[#allocation10 + $0x138] sm:$0xff]  ;;  %v5720_v1 = vld [vmem:[#allocation7 + $0x40] sm:$0xff] }
  0xeb   : > { %4373 = vmatpush3.bf16.msra.mxu0 %v4370_v21  ;;  %4429 = vmatpush3.bf16.msra.mxu1 %v4426_v0  ;;  %v4406_v21 = vpack.c.bf16 %v497_v15, %v496_v14  ;;  %v4454_v62 = vpack.c.bf16 %v505_v57, %v504_v56  ;;  %v5718_v63 = vld [vmem:[#allocation7 + $0x38] sm:$0xff]  ;;  %v506_v0 = vld [vmem:[#allocation10 + $0x140] sm:$0xff]  ;;  %v1166_v2 = vld [vmem:[#allocation9 + $0xd0] sm:$0xff] }
  0xec   : > { %4375 = vmatprep.subr.bf16.mxu0 %v4374_v24  ;;  %4431 = vmatprep.subr.bf16.mxu1 %v4430_v8  ;;  %v5727_v7 = vld [vmem:[#allocation7 + $0x48] sm:$0xff]  ;;  %v5730_v9 = vld [vmem:[#allocation7 + $0x50] sm:$0xff]  ;;  %v5741_v15 = vld [vmem:[#allocation7 + $0x58] sm:$0xff] }
  0xed   : > { %v5750_v23 = vld [vmem:[#allocation7 + $0x68] sm:$0xff]  ;;  %v513_v25 = vld [vmem:[#allocation10 + $0x178] sm:$0xff]  ;;  %v5752_v26 = vld [vmem:[#allocation7 + $0x70] sm:$0xff] }
  0xee   : > { %v1333_v31 = vld [vmem:[#allocation10 + $0x80] sm:$0xff]  ;;  %v1334_v32 = vld [vmem:[#allocation10 + $0x88] sm:$0xff]  ;;  %v1335_v36 = vld [vmem:[#allocation10 + $0x90] sm:$0xff] }
  0xef   : > { %4377 = vmatpush3.bf16.msra.mxu0 %v4374_v24  ;;  %4433 = vmatpush3.bf16.msra.mxu1 %v4430_v8  ;;  %v4438_v24 = vpack.c.bf16 %v865_v18, %v864_v17  ;;  %v508_v8 = vld [vmem:[#allocation10 + $0x150] sm:$0xff]  ;;  %v5743_v17 = vld [vmem:[#allocation7 + $0x60] sm:$0xff]  ;;  %v1336_v37 = vld [vmem:[#allocation10 + $0x98] sm:$0xff] }
  0xf0   : > { %4379 = vmatprep.subr.bf16.mxu0 %v4378_v27  ;;  %4435 = vmatprep.subr.bf16.mxu1 %v4434_v16  ;;  %v1337_v40 = vld [vmem:[#allocation10 + $0xa0] sm:$0xff]  ;;  %v1338_v41 = vld [vmem:[#allocation10 + $0xa8] sm:$0xff]  ;;  %v1339_v46 = vld [vmem:[#allocation10 + $0xb0] sm:$0xff] }
  0xf1   : > { %v1340_v47 = vld [vmem:[#allocation10 + $0xb8] sm:$0xff]  ;;  %v1343_v56 = vld [vmem:[#allocation10 + $0xd0] sm:$0xff] }
  0xf2   : > { %3763 = vmatmul.mubr.f32.vlgmr.msra.gmra.mrb[0].mxu0 %v5621_v30  ;;  %v1344_v57 = vld [vmem:[#allocation10 + $0xd8] sm:$0xff] }
  0xf3   : > { %4381 = vmatpush3.bf16.msra.mxu0 %v4378_v27  ;;  %3765 = vmatprep.mubr.f32.mxu0 %v5624_v34  ;;  %v5677_v27 = vld [vmem:[%s5617_s18 + $0x78] sm:$0xff] }
  0xf4   : > { %4383 = vmatprep.subr.bf16.mxu0 %v4382_v35  ;;  %4437 = vmatpush3.bf16.msra.mxu1 %v4434_v16  ;;  %v510_v16 = vld [vmem:[#allocation10 + $0x160] sm:$0xff] }
  0xf5   : > { %4439 = vmatprep.subr.bf16.mxu1 %v4438_v24 }
  0xf6   : > { %3766 = vmatmul.mubr.f32.gmra.mrb[2].mxu0 %v5629_v43 }
  0xf7   : > { %4385 = vmatpush3.bf16.msra.mxu0 %v4382_v35  ;;  %3768 = vmatprep.mubr.f32.mxu0 %v5632_v44  ;;  %v5687_v35 = vld [vmem:[#allocation7 + $0x8] sm:$0xff] }
  0xf8   : > { %4387 = vmatprep.subr.bf16.mxu0 %v4386_v45  ;;  %4441 = vmatpush3.bf16.msra.mxu1 %v4438_v24  ;;  %v512_v24 = vld [vmem:[#allocation10 + $0x170] sm:$0xff] }
  0xf9   : > { %4443 = vmatprep.subr.bf16.mxu1 %v4442_v33 }
  0xfa   : > { %3769 = vmatmul.mubr.f32.gmra.mrb[4].mxu0 %v5637_v51 }
  0xfb   : > { %4389 = vmatpush3.bf16.msra.mxu0 %v4386_v45  ;;  %3771 = vmatprep.mubr.f32.mxu0 %v5640_v52  ;;  %v5696_v45 = vld [vmem:[#allocation7 + $0x18] sm:$0xff] }
  0xfc   : > { %4391 = vmatprep.subr.bf16.mxu0 %v4390_v53  ;;  %3875 = vmatmul.mubr.f32.vlgmr.msra.gmra.mrb[0].mxu1 %v5621_v30  ;;  %v5708_v30 = vld [vmem:[#allocation7 + $0x30] sm:$0xff] }
  0xfd   : > { %4445 = vmatpush3.bf16.msra.mxu1 %v4442_v33  ;;  %3877 = vmatprep.mubr.f32.mxu1 %v5624_v34  ;;  %v1164_v34 = vld [vmem:[#allocation9 + $0xc0] sm:$0xff]  ;;  %v5770_v33 = vld [vmem:[%s5760_s11 + $0x8] sm:$0xff] }
  0xfe   : > { %3772 = vmatmul.mubr.f32.gmra.mrb[6].mxu0 %v5645_v59  ;;  %4447 = vmatprep.subr.bf16.mxu1 %v4446_v42 }
  0xff   : > { %4393 = vmatpush3.bf16.msra.mxu0 %v4390_v53  ;;  %3774 = vmatprep.mubr.f32.mxu0 %v5648_v60  ;;  %v1163_v53 = vld [vmem:[#allocation9 + $0xb8] sm:$0xff] }
 0x100   : > { %4395 = vmatprep.subr.bf16.mxu0 %v4394_v61  ;;  %v4486_v58 = vpack.c.bf16 %v1163_v53, %v1162_v50  ;;  %3878 = vmatmul.mubr.f32.gmra.mrb[2].mxu1 %v5629_v43  ;;  %v507_v43 = vld [vmem:[#allocation10 + $0x148] sm:$0xff]  ;;  %v1341_v50 = vld [vmem:[#allocation10 + $0xc0] sm:$0xff] }
 0x101   : > { %4449 = vmatpush3.bf16.msra.mxu1 %v4446_v42  ;;  %3880 = vmatprep.mubr.f32.mxu1 %v5632_v44  ;;  %v4458_v6 = vpack.c.bf16 %v507_v43, %v506_v0  ;;  %v5783_v42 = vld [vmem:[%s5760_s11 + $0x20] sm:$0xff]  ;;  %v1342_v53 = vld [vmem:[#allocation10 + $0xc8] sm:$0xff]  ;;  %v480_v43 = vld [vmem:[%s5760_s11 + $0x70] sm:$0xff] }
 0x102   : > { %3775 = vmatmul.mubr.f32.gmra.mrb[8].mxu0 %v5653_v3  ;;  %4451 = vmatprep.subr.bf16.mxu1 %v4450_v54  ;;  %v479_v0 = vld [vmem:[%s5760_s11 + $0x68] sm:$0xff] }
 0x103   : > { %4397 = vmatpush3.bf16.msra.mxu0 %v4394_v61  ;;  %3777 = vmatprep.mubr.f32.mxu0 %v5656_v4  ;;  %v1165_v61 = vld [vmem:[#allocation9 + $0xc8] sm:$0xff] }
 0x104   : > { %4399 = vmatprep.subr.bf16.mxu0 %v4398_v5  ;;  %v4490_v44 = vpack.c.bf16 %v1165_v61, %v1164_v34  ;;  %3881 = vmatmul.mubr.f32.gmra.mrb[4].mxu1 %v5637_v51  ;;  %v509_v51 = vld [vmem:[#allocation10 + $0x158] sm:$0xff]  ;;  %v1345_v34 = vld [vmem:[#allocation10 + $0xe0] sm:$0xff]  ;;  %v1346_v61 = vld [vmem:[#allocation10 + $0xe8] sm:$0xff] }
 0x105   : > { %4453 = vmatpush3.bf16.msra.mxu1 %v4450_v54  ;;  %3883 = vmatprep.mubr.f32.mxu1 %v5640_v52  ;;  %v1168_v52 = vld [vmem:[#allocation9 + $0xe0] sm:$0xff]  ;;  %v4462_v14 = vpack.c.bf16 %v509_v51, %v508_v8 }
 0x106   : > { %3778 = vmatmul.mubr.f32.gmra.mrb[10].mxu0 %v5661_v11  ;;  %4455 = vmatprep.subr.bf16.mxu1 %v4454_v62  ;;  %v474_v54 = vld [vmem:[%s5760_s11 + $0x40] sm:$0xff] }
 0x107   : > { %4401 = vmatpush3.bf16.msra.mxu0 %v4398_v5  ;;  %3780 = vmatprep.mubr.f32.mxu0 %v5664_v12  ;;  %v1167_v5 = vld [vmem:[#allocation9 + $0xd8] sm:$0xff] }
 0x108   : > { %4403 = vmatprep.subr.bf16.mxu0 %v4402_v13  ;;  %v4494_v10 = vpack.c.bf16 %v1167_v5, %v1166_v2  ;;  %3884 = vmatmul.mubr.f32.gmra.mrb[6].mxu1 %v5645_v59  ;;  %v511_v59 = vld [vmem:[#allocation10 + $0x168] sm:$0xff]  ;;  %v1348_v2 = vld [vmem:[#allocation10 + $0xf8] sm:$0xff] }
 0x109   : > { %4457 = vmatpush3.bf16.msra.mxu1 %v4454_v62  ;;  %3886 = vmatprep.mubr.f32.mxu1 %v5648_v60  ;;  %v1170_v60 = vld [vmem:[#allocation9 + $0xf0] sm:$0xff]  ;;  %v4466_v22 = vpack.c.bf16 %v511_v59, %v510_v16  ;;  %v478_v62 = vld [vmem:[%s5760_s11 + $0x60] sm:$0xff] }
 0x10a   : > { %3781 = vmatmul.mubr.f32.gmra.mrb[12].mxu0 %v5669_v19  ;;  %4459 = vmatprep.subr.bf16.mxu1 %v4458_v6 }
 0x10b   : > { %4405 = vmatpush3.bf16.msra.mxu0 %v4402_v13  ;;  %3783 = vmatprep.mubr.f32.mxu0 %v5672_v20  ;;  %v1169_v13 = vld [vmem:[#allocation9 + $0xe8] sm:$0xff] }
 0x10c   : > { %4407 = vmatprep.subr.bf16.mxu0 %v4406_v21  ;;  %v4498_v18 = vpack.c.bf16 %v1169_v13, %v1168_v52  ;;  %3887 = vmatmul.mubr.f32.gmra.mrb[8].mxu1 %v5653_v3 }
 0x10d   : > { %4461 = vmatpush3.bf16.msra.mxu1 %v4458_v6  ;;  %3889 = vmatprep.mubr.f32.mxu1 %v5656_v4  ;;  %v4470_v4 = vpack.c.bf16 %v513_v25, %v512_v24  ;;  %v5826_v6 = vld [vmem:[#allocation4] sm:$0xff] }
 0x10e   : > { %3784 = vmatmul.mubr.f32.gmra.mrb[14].mxu0 %v5677_v27  ;;  %4463 = vmatprep.subr.bf16.mxu1 %v4462_v14 }
 0x10f   : > { %4409 = vmatpush3.bf16.msra.mxu0 %v4406_v21  ;;  %3818 = vmatprep.mubr.f32.mxu0 %v5682_v28  ;;  %v1171_v21 = vld [vmem:[#allocation9 + $0xf8] sm:$0xff] }
 0x110   : > { %4475 = vmatprep.subr.bf16.mxu0 %v4474_v29  ;;  %v4502_v3 = vpack.c.bf16 %v1171_v21, %v1170_v60  ;;  %3890 = vmatmul.mubr.f32.gmra.mrb[10].mxu1 %v5661_v11  ;;  %v5763_v11 = vld [vmem:[%s5760_s11] sm:$0xff] }
 0x111   : > { %4465 = vmatpush3.bf16.msra.mxu1 %v4462_v14  ;;  %3892 = vmatprep.mubr.f32.mxu1 %v5664_v12  ;;  %v4506_v12 = vpack.c.bf16 %v1334_v32, %v1333_v31  ;;  %v5830_v32 = vld [vmem:[#allocation4 + $0x8] sm:$0xff] }
 0x112   : > { %3819 = vmatmul.mubr.f32.vlgmr.msra.gmra.mrb[0].mxu0 %v5687_v35  ;;  %4467 = vmatprep.subr.bf16.mxu1 %v4466_v22 }
 0x113   : > { %4477 = vmatpush3.bf16.msra.mxu0 %v4474_v29  ;;  %3821 = vmatprep.mubr.f32.mxu0 %v5689_v38  ;;  %v5758_v29 = vld [vmem:[#allocation7 + $0x78] sm:$0xff] }
 0x114   : > { %4479 = vmatprep.subr.bf16.mxu0 %v4478_v39  ;;  %3893 = vmatmul.mubr.f32.gmra.mrb[12].mxu1 %v5669_v19  ;;  %v4510_v19 = vpack.c.bf16 %v1336_v37, %v1335_v36  ;;  %v5842_v36 = vld [vmem:[#allocation4 + $0x28] sm:$0xff]  ;;  %v5844_v37 = vld [vmem:[#allocation4 + $0x30] sm:$0xff] }
 0x115   : > { %4469 = vmatpush3.bf16.msra.mxu1 %v4466_v22  ;;  %3895 = vmatprep.mubr.f32.mxu1 %v5672_v20  ;;  %v5780_v20 = vld [vmem:[%s5760_s11 + $0x18] sm:$0xff] }
 0x116   : > { %3822 = vmatmul.mubr.f32.gmra.mrb[2].mxu0 %v5696_v45  ;;  %4471 = vmatprep.subr.bf16.mxu1 %v4470_v4 }
 0x117   : > { %4481 = vmatpush3.bf16.msra.mxu0 %v4478_v39  ;;  %3824 = vmatprep.mubr.f32.mxu0 %v5698_v48  ;;  %v5773_v39 = vld [vmem:[%s5760_s11 + $0x10] sm:$0xff] }
 0x118   : > { %4483 = vmatprep.subr.bf16.mxu0 %v4482_v49  ;;  %3896 = vmatmul.mubr.f32.gmra.mrb[14].mxu1 %v5677_v27  ;;  %v4514_v27 = vpack.c.bf16 %v1338_v41, %v1337_v40  ;;  %v5856_v40 = vld [vmem:[#allocation4 + $0x50] sm:$0xff]  ;;  %v5860_v41 = vld [vmem:[#allocation4 + $0x58] sm:$0xff] }
 0x119   : > { %4473 = vmatpush3.bf16.msra.mxu1 %v4470_v4  ;;  %3930 = vmatprep.mubr.f32.mxu1 %v5682_v28  ;;  %v5790_v28 = vld [vmem:[%s5760_s11 + $0x28] sm:$0xff] }
 0x11a   : > { %3825 = vmatmul.mubr.f32.gmra.mrb[4].mxu0 %v5706_v55  ;;  %4507 = vmatprep.subr.bf16.mxu1 %v4506_v12 }
 0x11b   : > { %4485 = vmatpush3.bf16.msra.mxu0 %v4482_v49  ;;  %3827 = vmatprep.mubr.f32.mxu0 %v5708_v30  ;;  %v5793_v49 = vld [vmem:[%s5760_s11 + $0x30] sm:$0xff] }
 0x11c   : > { %4487 = vmatprep.subr.bf16.mxu0 %v4486_v58  ;;  %3931 = vmatmul.mubr.f32.vlgmr.msra.gmra.mrb[0].mxu1 %v5687_v35  ;;  %v4518_v35 = vpack.c.bf16 %v1340_v47, %v1339_v46  ;;  %v5872_v46 = vld [vmem:[#allocation4 + $0x78] sm:$0xff]  ;;  %v5879_v47 = vld [vmem:[%s6453_s5] ss:$0 sm:$0xff] }
 0x11d   : > { %4509 = vmatpush3.bf16.msra.mxu1 %v4506_v12  ;;  %3933 = vmatprep.mubr.f32.mxu1 %v5689_v38  ;;  %v473_v38 = vld [vmem:[%s5760_s11 + $0x38] sm:$0xff] }
 0x11e   : > { %3828 = vmatmul.mubr.f32.gmra.mrb[6].mxu0 %v5718_v63  ;;  %4511 = vmatprep.subr.bf16.mxu1 %v4510_v19  ;;  %v5836_v12 = vld [vmem:[#allocation4 + $0x18] sm:$0xff] }
 0x11f   : > { %4489 = vmatpush3.bf16.msra.mxu0 %v4486_v58  ;;  %3830 = vmatprep.mubr.f32.mxu0 %v5720_v1  ;;  %v476_v58 = vld [vmem:[%s5760_s11 + $0x50] sm:$0xff] }
 0x120   : > { %4491 = vmatprep.subr.bf16.mxu0 %v4490_v44  ;;  %3934 = vmatmul.mubr.f32.gmra.mrb[2].mxu1 %v5696_v45  ;;  %v4522_v45 = vpack.c.bf16 %v1342_v53, %v1341_v50 }
 0x121   : > { %4513 = vmatpush3.bf16.msra.mxu1 %v4510_v19  ;;  %3936 = vmatprep.mubr.f32.mxu1 %v5698_v48  ;;  %v475_v48 = vld [vmem:[%s5760_s11 + $0x48] sm:$0xff]  ;;  %v5850_v19 = vld [vmem:[#allocation4 + $0x40] sm:$0xff] }
 0x122   : > { %3831 = vmatmul.mubr.f32.gmra.mrb[8].mxu0 %v5727_v7  ;;  %4515 = vmatprep.subr.bf16.mxu1 %v4514_v27 }
 0x123   : > { %4493 = vmatpush3.bf16.msra.mxu0 %v4490_v44  ;;  %3833 = vmatprep.mubr.f32.mxu0 %v5730_v9  ;;  %v1347_v44 = vld [vmem:[#allocation10 + $0xf0] sm:$0xff] }
 0x124   : > { %4495 = vmatprep.subr.bf16.mxu0 %v4494_v10  ;;  %3937 = vmatmul.mubr.f32.gmra.mrb[4].mxu1 %v5706_v55  ;;  %v4526_v55 = vpack.c.bf16 %v1344_v57, %v1343_v56  ;;  %v4534_v5 = vpack.c.bf16 %v1348_v2, %v1347_v44 }
 0x125   : > { %4517 = vmatpush3.bf16.msra.mxu1 %v4514_v27  ;;  %3939 = vmatprep.mubr.f32.mxu1 %v5708_v30  ;;  %v477_v30 = vld [vmem:[%s5760_s11 + $0x58] sm:$0xff]  ;;  %v5866_v27 = vld [vmem:[#allocation4 + $0x68] sm:$0xff] }
 0x126   : > { %3834 = vmatmul.mubr.f32.gmra.mrb[10].mxu0 %v5741_v15  ;;  %4519 = vmatprep.subr.bf16.mxu1 %v4518_v35 }
 0x127   : > { %4497 = vmatpush3.bf16.msra.mxu0 %v4494_v10  ;;  %3836 = vmatprep.mubr.f32.mxu0 %v5743_v17 }
 0x128   : > { %4499 = vmatprep.subr.bf16.mxu0 %v4498_v18  ;;  %3940 = vmatmul.mubr.f32.gmra.mrb[6].mxu1 %v5718_v63  ;;  %v4530_v63 = vpack.c.bf16 %v1346_v61, %v1345_v34 }
 0x129   : > { %4521 = vmatpush3.bf16.msra.mxu1 %v4518_v35  ;;  %3942 = vmatprep.mubr.f32.mxu1 %v5720_v1  ;;  %v481_v1 = vld [vmem:[%s5760_s11 + $0x78] sm:$0xff] }
 0x12a   : > { %3837 = vmatmul.mubr.f32.gmra.mrb[12].mxu0 %v5750_v23  ;;  %4523 = vmatprep.subr.bf16.mxu1 %v4522_v45 }
 0x12b   : > { %4501 = vmatpush3.bf16.msra.mxu0 %v4498_v18  ;;  %3839 = vmatprep.mubr.f32.mxu0 %v5752_v26 }
 0x12c   : > { %4503 = vmatprep.subr.bf16.mxu0 %v4502_v3  ;;  %3943 = vmatmul.mubr.f32.gmra.mrb[8].mxu1 %v5727_v7 }
 0x12d   : > { %4525 = vmatpush3.bf16.msra.mxu1 %v4522_v45  ;;  %3945 = vmatprep.mubr.f32.mxu1 %v5730_v9 }
 0x12e   : > { %3840 = vmatmul.mubr.f32.gmra.mrb[14].mxu0 %v5758_v29  ;;  %4527 = vmatprep.subr.bf16.mxu1 %v4526_v55 }
 0x12f   : > { %4505 = vmatpush3.bf16.msra.mxu0 %v4502_v3  ;;  %3986 = vmatprep.mubr.f32.mxu0 %v5763_v11 }
 0x130   : > { %3946 = vmatmul.mubr.f32.gmra.mrb[10].mxu1 %v5741_v15 }
 0x131   : > { %4529 = vmatpush3.bf16.msra.mxu1 %v4526_v55  ;;  %3948 = vmatprep.mubr.f32.mxu1 %v5743_v17 }
 0x132   : > { %3987 = vmatmul.mubr.f32.vlgmr.msra.gmra.mrb[0].mxu0 %v5770_v33  ;;  %4531 = vmatprep.subr.bf16.mxu1 %v4530_v63 }
 0x133   : > { %3989 = vmatprep.mubr.f32.mxu0 %v5773_v39 }
 0x134   : > { %3949 = vmatmul.mubr.f32.gmra.mrb[12].mxu1 %v5750_v23 }
 0x135   : > { %4533 = vmatpush3.bf16.msra.mxu1 %v4530_v63  ;;  %3951 = vmatprep.mubr.f32.mxu1 %v5752_v26 }
 0x136   : > { %3990 = vmatmul.mubr.f32.gmra.mrb[2].mxu0 %v5780_v20  ;;  %4535 = vmatprep.subr.bf16.mxu1 %v4534_v5 }
 0x137   : > { %3992 = vmatprep.mubr.f32.mxu0 %v5783_v42 }
 0x138   : > { %3952 = vmatmul.mubr.f32.gmra.mrb[14].mxu1 %v5758_v29 }
 0x139   : > { %4042 = vmatprep.mubr.f32.mxu1 %v5763_v11  ;;  %4537 = vmatpush3.bf16.msra.mxu1 %v4534_v5  ;;  %v5832_v11 = vld [vmem:[#allocation4 + $0x10] sm:$0xff] }
 0x13a   : > { %3993 = vmatmul.mubr.f32.gmra.mrb[4].mxu0 %v5790_v28 }
 0x13b   : > { %3995 = vmatprep.mubr.f32.mxu0 %v5793_v49 }
 0x13c   : > { %4043 = vmatmul.mubr.f32.vlgmr.msra.gmra.mrb[0].mxu1 %v5770_v33  ;;  %v5838_v33 = vld [vmem:[#allocation4 + $0x20] sm:$0xff] }
 0x13d   : > { %4045 = vmatprep.mubr.f32.mxu1 %v5773_v39  ;;  %v5848_v39 = vld [vmem:[#allocation4 + $0x38] sm:$0xff] }
 0x13e   : > { %3996 = vmatmul.mubr.f32.gmra.mrb[6].mxu0 %v473_v38 }
 0x13f   : > { %3998 = vmatprep.mubr.f32.mxu0 %v474_v54 }
 0x140   : > { %4046 = vmatmul.mubr.f32.gmra.mrb[2].mxu1 %v5780_v20  ;;  %v5854_v20 = vld [vmem:[#allocation4 + $0x48] sm:$0xff] }
 0x141   : > { %4048 = vmatprep.mubr.f32.mxu1 %v5783_v42  ;;  %v5862_v42 = vld [vmem:[#allocation4 + $0x60] sm:$0xff] }
 0x142   : > { %3999 = vmatmul.mubr.f32.gmra.mrb[8].mxu0 %v475_v48 }
 0x143   : > { %4001 = vmatprep.mubr.f32.mxu0 %v476_v58 }
 0x144   : > { %4049 = vmatmul.mubr.f32.gmra.mrb[4].mxu1 %v5790_v28  ;;  %v5868_v28 = vld [vmem:[#allocation4 + $0x70] sm:$0xff] }
 0x145   : > { %4051 = vmatprep.mubr.f32.mxu1 %v5793_v49 }
 0x146   : > { %4002 = vmatmul.mubr.f32.gmra.mrb[10].mxu0 %v477_v30 }
 0x147   : > { %4004 = vmatprep.mubr.f32.mxu0 %v478_v62 }
 0x148   : > { %4052 = vmatmul.mubr.f32.gmra.mrb[6].mxu1 %v473_v38 }
 0x149   : > { %4054 = vmatprep.mubr.f32.mxu1 %v474_v54 }
 0x14a   : > { %4005 = vmatmul.mubr.f32.gmra.mrb[12].mxu0 %v479_v0 }
 0x14b   : > { %4007 = vmatprep.mubr.f32.mxu0 %v480_v43 }
 0x14c   : > { %4055 = vmatmul.mubr.f32.gmra.mrb[8].mxu1 %v475_v48 }
 0x14d   : > { %4057 = vmatprep.mubr.f32.mxu1 %v476_v58 }
 0x14e   : > { %4008 = vmatmul.mubr.f32.gmra.mrb[14].mxu0 %v481_v1 }
 0x14f   : > { %4154 = vmatprep.mubr.f32.mxu0 %v5826_v6 }
 0x150   : > { %4058 = vmatmul.mubr.f32.gmra.mrb[10].mxu1 %v477_v30 }
 0x151   : > { %4060 = vmatprep.mubr.f32.mxu1 %v478_v62 }
 0x154   : > { %4061 = vmatmul.mubr.f32.gmra.mrb[12].mxu1 %v479_v0 }
 0x155   : > { %4063 = vmatprep.mubr.f32.mxu1 %v480_v43 }
 0x158   : > { %4064 = vmatmul.mubr.f32.gmra.mrb[14].mxu1 %v481_v1 }
 0x159   : > { %4098 = vmatprep.mubr.f32.mxu1 %v5826_v6 }
 0x205   : > { %v3988_v7 = vpop.f32.mrb[0].mxu0 }
 0x206   : > { %v1238_v8 = vpop.f32.mrb[1].mxu0 }
 0x207   : > { %v4538_v51 = vpack.c.bf16 %v3988_v7, %v1238_v8 }
 0x209   : > { %v3991_v9 = vpop.f32.mrb[2].mxu0  ;;  %4539 = vmatprep.subr.bf16.mxu1 %v4538_v51 }
 0x20a   : > { %v1248_v10 = vpop.f32.mrb[3].mxu0  ;;  %4541 = vmatpush3.bf16.msra.mxu1 %v4538_v51 }
 0x20b   : > { %v4542_v52 = vpack.c.bf16 %v3991_v9, %v1248_v10 }
 0x20d   : > { %v3994_v13 = vpop.f32.mrb[4].mxu0  ;;  %4543 = vmatprep.subr.bf16.mxu1 %v4542_v52 }
 0x20e   : > { %v1258_v14 = vpop.f32.mrb[5].mxu0  ;;  %4545 = vmatpush3.bf16.msra.mxu1 %v4542_v52 }
 0x20f   : > { %v4546_v15 = vpack.c.bf16 %v3994_v13, %v1258_v14 }
 0x211   : > { %v3997_v16 = vpop.f32.mrb[6].mxu0  ;;  %4547 = vmatprep.subr.bf16.mxu1 %v4546_v15 }
 0x212   : > { %v1268_v59 = vpop.f32.mrb[7].mxu0  ;;  %4549 = vmatpush3.bf16.msra.mxu1 %v4546_v15 }
 0x213   : > { %v4550_v17 = vpack.c.bf16 %v3997_v16, %v1268_v59 }
 0x215   : > { %v4000_v18 = vpop.f32.mrb[8].mxu0  ;;  %4551 = vmatprep.subr.bf16.mxu1 %v4550_v17 }
 0x216   : > { %v1278_v60 = vpop.f32.mrb[9].mxu0  ;;  %4553 = vmatpush3.bf16.msra.mxu1 %v4550_v17 }
 0x217   : > { %v4554_v21 = vpack.c.bf16 %v4000_v18, %v1278_v60 }
 0x219   : > { %v4003_v22 = vpop.f32.mrb[10].mxu0  ;;  %4555 = vmatprep.subr.bf16.mxu1 %v4554_v21 }
 0x21a   : > { %v1288_v23 = vpop.f32.mrb[11].mxu0  ;;  %4557 = vmatpush3.bf16.msra.mxu1 %v4554_v21 }
 0x21b   : > { %v4558_v24 = vpack.c.bf16 %v4003_v22, %v1288_v23 }
 0x21d   : > { %v4006_v25 = vpop.f32.mrb[12].mxu0  ;;  %4559 = vmatprep.subr.bf16.mxu1 %v4558_v24 }
 0x21e   : > { %v1298_v26 = vpop.f32.mrb[13].mxu0  ;;  %4561 = vmatpush3.bf16.msra.mxu1 %v4558_v24 }
 0x21f   : > { %v4562_v3 = vpack.c.bf16 %v4006_v25, %v1298_v26 }
 0x221   : > { %v4009_v4 = vpop.f32.mrb[14].mxu0  ;;  %4563 = vmatprep.subr.bf16.mxu1 %v4562_v3 }
 0x222   : > { %v1308_v29 = vpop.f32.mrb[15].mxu0  ;;  %4565 = vmatpush3.bf16.msra.mxu1 %v4562_v3 }
 0x223   : > { %v4566_v31 = vpack.c.bf16 %v4009_v4, %v1308_v29 }
 0x225   : > { %4567 = vmatprep.subr.bf16.mxu1 %v4566_v31 }
 0x226   : > { %4569 = vmatpush3.bf16.msra.mxu1 %v4566_v31 }
 0x229   : > { %4099 = vmatmul.mubr.f32.vlgmr.msra.gmra.mrb[0].mxu1 %v5830_v32 }
 0x22a   : > { %4101 = vmatprep.mubr.f32.mxu1 %v5832_v11 }
 0x22d   : > { %4102 = vmatmul.mubr.f32.gmra.mrb[2].mxu1 %v5836_v12 }
 0x22e   : > { %4104 = vmatprep.mubr.f32.mxu1 %v5838_v33 }
 0x231   : > { %4105 = vmatmul.mubr.f32.gmra.mrb[4].mxu1 %v5842_v36 }
 0x232   : > { %4107 = vmatprep.mubr.f32.mxu1 %v5844_v37 }
 0x235   : > { %4108 = vmatmul.mubr.f32.gmra.mrb[6].mxu1 %v5848_v39 }
 0x236   : > { %4110 = vmatprep.mubr.f32.mxu1 %v5850_v19 }
 0x239   : > { %4111 = vmatmul.mubr.f32.gmra.mrb[8].mxu1 %v5854_v20 }
 0x23a   : > { %4113 = vmatprep.mubr.f32.mxu1 %v5856_v40 }
 0x23d   : > { %4114 = vmatmul.mubr.f32.gmra.mrb[10].mxu1 %v5860_v41 }
 0x23e   : > { %4116 = vmatprep.mubr.f32.mxu1 %v5862_v42 }
 0x241   : > { %4117 = vmatmul.mubr.f32.gmra.mrb[12].mxu1 %v5866_v27 }
 0x242   : > { %4119 = vmatprep.mubr.f32.mxu1 %v5868_v28 }
 0x245   : > { %4120 = vmatmul.mubr.f32.gmra.mrb[14].mxu1 %v5872_v46 }
 0x246   : > { %4210 = vmatprep.mubr.f32.mxu1 %v5826_v6 }
 0x2fc   : > { %v4100_v49 = vpop.f32.mrb[0].mxu1 }
 0x2fd   : > { %v5882_v35 = vadd.f32 %v4100_v49, %v5879_v47  ;;  %v1576_v38 = vpop.f32.mrb[1].mxu1 }
 0x2fe   : > { %v5885_v50 = vadd.f32 %v5879_v47, %v1576_v38 }
 0x2ff   : > { %v1679_v53 = vmax.f32 %v5882_v35, 0.0 }
 0x300   : > { %v1678_v54 = vmax.f32 %v5885_v50, 0.0  ;;  %v4103_v45 = vpop.f32.mrb[2].mxu1 }
 0x301   : > { %v5890_v48 = vadd.f32 %v4103_v45, %v5879_v47  ;;  %v1586_v56 = vpop.f32.mrb[3].mxu1 }
 0x302   : > { %v4570_v57 = vpack.c.bf16 %v1679_v53, %v1678_v54  ;;  %v5897_v58 = vadd.f32 %v5879_v47, %v1586_v56 }
 0x303   : > { %v1681_v55 = vmax.f32 %v5890_v48, 0.0 }
 0x304   : > { %v1680_v30 = vmax.f32 %v5897_v58, 0.0  ;;  %v4106_v34 = vpop.f32.mrb[4].mxu1  ;;  %4571 = vmatprep.subr.bf16.mxu0 %v4570_v57 }
 0x305   : > { %v5902_v61 = vadd.f32 %v4106_v34, %v5879_v47  ;;  %v1596_v62 = vpop.f32.mrb[5].mxu1  ;;  %4573 = vmatpush3.bf16.msra.mxu0 %v4570_v57 }
 0x306   : > { %v4574_v63 = vpack.c.bf16 %v1681_v55, %v1680_v30  ;;  %v5909_v0 = vadd.f32 %v5879_v47, %v1596_v62 }
 0x307   : > { %v1683_v43 = vmax.f32 %v5902_v61, 0.0 }
 0x308   : > { %v1682_v1 = vmax.f32 %v5909_v0, 0.0  ;;  %v4109_v44 = vpop.f32.mrb[6].mxu1  ;;  %4575 = vmatprep.subr.bf16.mxu0 %v4574_v63 }
 0x309   : > { %v5914_v2 = vadd.f32 %v4109_v44, %v5879_v47  ;;  %v1606_v5 = vpop.f32.mrb[7].mxu1  ;;  %4577 = vmatpush3.bf16.msra.mxu0 %v4574_v63  ;;  %v1710_v63 = vld [vmem:[#allocation12 + $0x80] sm:$0xff]  ;;  %v1711_v44 = vld [vmem:[#allocation12 + $0x88] sm:$0xff] }
 0x30a   : > { %v4578_v7 = vpack.c.bf16 %v1683_v43, %v1682_v1  ;;  %v5921_v8 = vadd.f32 %v5879_v47, %v1606_v5 }
 0x30b   : > { %v1685_v51 = vmax.f32 %v5914_v2, 0.0 }
 0x30c   : > { %v1684_v9 = vmax.f32 %v5921_v8, 0.0  ;;  %v4112_v10 = vpop.f32.mrb[8].mxu1  ;;  %4579 = vmatprep.subr.bf16.mxu0 %v4578_v7 }
 0x30d   : > { %v5926_v52 = vadd.f32 %v4112_v10, %v5879_v47  ;;  %v1616_v13 = vpop.f32.mrb[9].mxu1  ;;  %4581 = vmatpush3.bf16.msra.mxu0 %v4578_v7  ;;  %v4602_v10 = vpack.c.bf16 %v1711_v44, %v1710_v63  ;;  %v1698_v63 = vld [vmem:[#allocation12 + $0x20] sm:$0xff]  ;;  %v1699_v44 = vld [vmem:[#allocation12 + $0x28] sm:$0xff] }
 0x30e   : > { %v4582_v14 = vpack.c.bf16 %v1685_v51, %v1684_v9  ;;  %v5933_v15 = vadd.f32 %v5879_v47, %v1616_v13  ;;  %v1694_v13 = vld [vmem:[#allocation12] sm:$0xff] }
 0x30f   : > { %v1687_v16 = vmax.f32 %v5926_v52, 0.0 }
 0x310   : > { %v1686_v59 = vmax.f32 %v5933_v15, 0.0  ;;  %v4115_v17 = vpop.f32.mrb[10].mxu1  ;;  %4583 = vmatprep.subr.bf16.mxu0 %v4582_v14 }
 0x311   : > { %v5938_v18 = vadd.f32 %v4115_v17, %v5879_v47  ;;  %v1626_v60 = vpop.f32.mrb[11].mxu1  ;;  %4585 = vmatpush3.bf16.msra.mxu0 %v4582_v14  ;;  %v1695_v14 = vld [vmem:[#allocation12 + $0x8] sm:$0xff]  ;;  %v1712_v17 = vld [vmem:[#allocation12 + $0x90] sm:$0xff] }
 0x312   : > { %v4586_v21 = vpack.c.bf16 %v1687_v16, %v1686_v59  ;;  %v5945_v22 = vadd.f32 %v5879_v47, %v1626_v60  ;;  %v1713_v60 = vld [vmem:[#allocation12 + $0x98] sm:$0xff] }
 0x313   : > { %v1689_v23 = vmax.f32 %v5938_v18, 0.0 }
 0x314   : > { %v1688_v24 = vmax.f32 %v5945_v22, 0.0  ;;  %v4118_v25 = vpop.f32.mrb[12].mxu1  ;;  %4587 = vmatprep.subr.bf16.mxu0 %v4586_v21 }
 0x315   : > { %v5950_v26 = vadd.f32 %v4118_v25, %v5879_v47  ;;  %v1636_v3 = vpop.f32.mrb[13].mxu1  ;;  %4589 = vmatpush3.bf16.msra.mxu0 %v4586_v21  ;;  %v4606_v21 = vpack.c.bf16 %v1713_v60, %v1712_v17  ;;  %v1696_v25 = vld [vmem:[#allocation12 + $0x10] sm:$0xff]  ;;  %v1718_v17 = vld [vmem:[#allocation12 + $0xc0] sm:$0xff]  ;;  %v1719_v60 = vld [vmem:[#allocation12 + $0xc8] sm:$0xff] }
 0x316   : > { %v4590_v4 = vpack.c.bf16 %v1689_v23, %v1688_v24  ;;  %v5957_v29 = vadd.f32 %v5879_v47, %v1636_v3  ;;  %v1697_v3 = vld [vmem:[#allocation12 + $0x18] sm:$0xff] }
 0x317   : > { %v1691_v31 = vmax.f32 %v5950_v26, 0.0 }
 0x318   : > { %v1690_v49 = vmax.f32 %v5957_v29, 0.0  ;;  %v4121_v38 = vpop.f32.mrb[14].mxu1  ;;  %4591 = vmatprep.subr.bf16.mxu0 %v4590_v4 }
 0x319   : > { %v5962_v45 = vadd.f32 %v4121_v38, %v5879_v47  ;;  %v1646_v56 = vpop.f32.mrb[15].mxu1  ;;  %4593 = vmatpush3.bf16.msra.mxu0 %v4590_v4  ;;  %v1714_v4 = vld [vmem:[#allocation12 + $0xa0] sm:$0xff]  ;;  %v1715_v38 = vld [vmem:[#allocation12 + $0xa8] sm:$0xff] }
 0x31a   : > { %v4594_v57 = vpack.c.bf16 %v1691_v31, %v1690_v49  ;;  %v5969_v34 = vadd.f32 %v5879_v47, %v1646_v56  ;;  %v4604_v47 = vpack.c.bf16 %v1695_v14, %v1694_v13  ;;  %v4608_v56 = vpack.c.bf16 %v1697_v3, %v1696_v25  ;;  %v1700_v13 = vld [vmem:[#allocation12 + $0x30] sm:$0xff]  ;;  %v1701_v14 = vld [vmem:[#allocation12 + $0x38] sm:$0xff]  ;;  %v1702_v25 = vld [vmem:[#allocation12 + $0x40] sm:$0xff] }
 0x31b   : > { %v6468_v62 = vmax.f32 %v5962_v45, 0.0  ;;  %v1703_v3 = vld [vmem:[#allocation12 + $0x48] sm:$0xff] }
 0x31c   : > { %v6469_v5 = vmax.f32 %v5969_v34, 0.0  ;;  %4595 = vmatprep.subr.bf16.mxu0 %v4594_v57  ;;  %v6498_v61 = vmax.f32 %v5969_v34, 0.0 }
 0x31d   : > { %4597 = vmatpush3.bf16.msra.mxu0 %v4594_v57  ;;  %v4610_v57 = vpack.c.bf16 %v1715_v38, %v1714_v4  ;;  %v1720_v4 = vld [vmem:[#allocation12 + $0xd0] sm:$0xff]  ;;  %v1721_v38 = vld [vmem:[#allocation12 + $0xd8] sm:$0xff] }
 0x31e   : > { %v4598_v7 = vpack.c.bf16 %v6468_v62, %v6469_v5  ;;  %v1716_v62 = vld [vmem:[#allocation12 + $0xb0] sm:$0xff]  ;;  %v1717_v5 = vld [vmem:[#allocation12 + $0xb8] sm:$0xff] }
 0x320   : > { %4599 = vmatprep.subr.bf16.mxu0 %v4598_v7 }
 0x321   : > { %4601 = vmatpush3.bf16.msra.mxu0 %v4598_v7  ;;  %v4612_v7 = vpack.c.bf16 %v1699_v44, %v1698_v63  ;;  %v1722_v63 = vld [vmem:[#allocation12 + $0xe0] sm:$0xff]  ;;  %v1723_v44 = vld [vmem:[#allocation12 + $0xe8] sm:$0xff] }
 0x322   : > { %4603 = vmatprep.subr.bf16.mxu0 %v4602_v10  ;;  %v4614_v10 = vpack.c.bf16 %v1717_v5, %v1716_v62  ;;  %v4620_v62 = vpack.c.bf16 %v1703_v3, %v1702_v25  ;;  %v4622_v5 = vpack.c.bf16 %v1721_v38, %v1720_v4  ;;  %v1708_v25 = vld [vmem:[#allocation12 + $0x70] sm:$0xff]  ;;  %v1709_v3 = vld [vmem:[#allocation12 + $0x78] sm:$0xff] }
 0x323   : > { %v4632_v4 = vpack.c.bf16 %v1709_v3, %v1708_v25 }
 0x324   : > { %4155 = vmatmul.mubr.f32.vlgmr.msra.gmra.mrb[16].mxu0 %v5830_v32 }
 0x325   : > { %4157 = vmatprep.mubr.f32.mxu0 %v5832_v11  ;;  %4605 = vmatpush3.bf16.msra.mxu0 %v4604_v47  ;;  %v4616_v47 = vpack.c.bf16 %v1701_v14, %v1700_v13  ;;  %v1706_v13 = vld [vmem:[#allocation12 + $0x60] sm:$0xff]  ;;  %v1707_v14 = vld [vmem:[#allocation12 + $0x68] sm:$0xff] }
 0x326   : > { %4607 = vmatprep.subr.bf16.mxu0 %v4606_v21  ;;  %v4618_v21 = vpack.c.bf16 %v1719_v60, %v1718_v17  ;;  %v1724_v17 = vld [vmem:[#allocation12 + $0xf0] sm:$0xff]  ;;  %v1725_v60 = vld [vmem:[#allocation12 + $0xf8] sm:$0xff] }
 0x328   : > { %4158 = vmatmul.mubr.f32.gmra.mrb[18].mxu0 %v5836_v12 }
 0x329   : > { %4160 = vmatprep.mubr.f32.mxu0 %v5838_v33  ;;  %4609 = vmatpush3.bf16.msra.mxu0 %v4608_v56  ;;  %v1704_v56 = vld [vmem:[#allocation12 + $0x50] sm:$0xff] }
 0x32a   : > { %4611 = vmatprep.subr.bf16.mxu0 %v4610_v57  ;;  %v1705_v57 = vld [vmem:[#allocation12 + $0x58] sm:$0xff] }
 0x32c   : > { %4161 = vmatmul.mubr.f32.gmra.mrb[20].mxu0 %v5842_v36 }
 0x32d   : > { %4163 = vmatprep.mubr.f32.mxu0 %v5844_v37  ;;  %4613 = vmatpush3.bf16.msra.mxu0 %v4612_v7  ;;  %v4624_v7 = vpack.c.bf16 %v1705_v57, %v1704_v56 }
 0x32e   : > { %4615 = vmatprep.subr.bf16.mxu0 %v4614_v10  ;;  %v4626_v10 = vpack.c.bf16 %v1723_v44, %v1722_v63 }
 0x330   : > { %4164 = vmatmul.mubr.f32.gmra.mrb[22].mxu0 %v5848_v39 }
 0x331   : > { %4166 = vmatprep.mubr.f32.mxu0 %v5850_v19  ;;  %4617 = vmatpush3.bf16.msra.mxu0 %v4616_v47  ;;  %v4628_v47 = vpack.c.bf16 %v1707_v14, %v1706_v13 }
 0x332   : > { %4619 = vmatprep.subr.bf16.mxu0 %v4618_v21  ;;  %v4630_v21 = vpack.c.bf16 %v1725_v60, %v1724_v17 }
 0x334   : > { %4167 = vmatmul.mubr.f32.gmra.mrb[24].mxu0 %v5854_v20 }
 0x335   : > { %4169 = vmatprep.mubr.f32.mxu0 %v5856_v40  ;;  %4621 = vmatpush3.bf16.msra.mxu0 %v4620_v62 }
 0x336   : > { %4623 = vmatprep.subr.bf16.mxu0 %v4622_v5 }
 0x338   : > { %4170 = vmatmul.mubr.f32.gmra.mrb[26].mxu0 %v5860_v41 }
 0x339   : > { %4172 = vmatprep.mubr.f32.mxu0 %v5862_v42  ;;  %4625 = vmatpush3.bf16.msra.mxu0 %v4624_v7 }
 0x33a   : > { %4627 = vmatprep.subr.bf16.mxu0 %v4626_v10 }
 0x33c   : > { %4173 = vmatmul.mubr.f32.gmra.mrb[28].mxu0 %v5866_v27 }
 0x33d   : > { %4175 = vmatprep.mubr.f32.mxu0 %v5868_v28  ;;  %4629 = vmatpush3.bf16.msra.mxu0 %v4628_v47 }
 0x33e   : > { %4631 = vmatprep.subr.bf16.mxu0 %v4630_v21 }
 0x340   : > { %4176 = vmatmul.mubr.f32.gmra.mrb[30].mxu0 %v5872_v46 }
 0x341   : > { %1942 = vmatprep.mubr.f32.mxu0 %v1678_v54  ;;  %4633 = vmatpush3.bf16.msra.mxu0 %v4632_v4 }
 0x3f7   : > { %v4156_v38 = vpop.f32.mrb[16].mxu0 }
 0x3f8   : > { %v1793_v62 = vpop.f32.mrb[17].mxu0 }
 0x3f9   : > { %1943 = vmatmul.mubr.f32.vlgmr.msra.gmra.mrb[32].mxu0 %v1793_v62 }
 0x3fa   : > { %1947 = vmatprep.mubr.f32.mxu0 %v1679_v53 }
 0x3fb   : > { %v4159_v5 = vpop.f32.mrb[18].mxu0 }
 0x3fc   : > { %v1803_v56 = vpop.f32.mrb[19].mxu0 }
 0x3fd   : > { %1948 = vmatmul.mubr.f32.gmra.mrb[34].mxu0 %v4156_v38 }
 0x3fe   : > { %1952 = vmatprep.mubr.f32.mxu0 %v1680_v30 }
 0x3ff   : > { %v4162_v57 = vpop.f32.mrb[20].mxu0 }
 0x400   : > { %v1813_v63 = vpop.f32.mrb[21].mxu0 }
 0x401   : > { %1953 = vmatmul.mubr.f32.gmra.mrb[36].mxu0 %v1803_v56 }
 0x402   : > { %1957 = vmatprep.mubr.f32.mxu0 %v1681_v55 }
 0x403   : > { %v4165_v50 = vpop.f32.mrb[22].mxu0 }
 0x404   : > { %v1823_v54 = vpop.f32.mrb[23].mxu0 }
 0x405   : > { %1958 = vmatmul.mubr.f32.gmra.mrb[38].mxu0 %v4159_v5 }
 0x406   : > { %1962 = vmatprep.mubr.f32.mxu0 %v1682_v1 }
 0x407   : > { %v4168_v35 = vpop.f32.mrb[24].mxu0 }
 0x408   : > { %v1833_v53 = vpop.f32.mrb[25].mxu0 }
 0x409   : > { %1963 = vmatmul.mubr.f32.gmra.mrb[40].mxu0 %v1813_v63 }
 0x40a   : > { %1967 = vmatprep.mubr.f32.mxu0 %v1683_v43  ;;  %v6499_v43 = vmax.f32 %v5962_v45, 0.0 }
 0x40b   : > { %v4171_v58 = vpop.f32.mrb[26].mxu0 }
 0x40c   : > { %v1843_v30 = vpop.f32.mrb[27].mxu0 }
 0x40d   : > { %1968 = vmatmul.mubr.f32.gmra.mrb[42].mxu0 %v4162_v57 }
 0x40e   : > { %1972 = vmatprep.mubr.f32.mxu0 %v1684_v9  ;;  %v6028_v9 = vld [vmem:[%s6455_s7] ss:$0 sm:$0xff] }
 0x40f   : > { %v4174_v48 = vpop.f32.mrb[28].mxu0 }
 0x410   : > { %v1853_v55 = vpop.f32.mrb[29].mxu0 }
 0x411   : > { %1973 = vmatmul.mubr.f32.gmra.mrb[44].mxu0 %v1823_v54 }
 0x412   : > { %1977 = vmatprep.mubr.f32.mxu0 %v1685_v51 }
 0x413   : > { %v4177_v0 = vpop.f32.mrb[30].mxu0 }
 0x414   : > { %v1863_v1 = vpop.f32.mrb[31].mxu0 }
 0x415   : > { %1978 = vmatmul.mubr.f32.gmra.mrb[46].mxu0 %v4165_v50 }
 0x416   : > { %1982 = vmatprep.mubr.f32.mxu0 %v1686_v59 }
 0x419   : > { %1983 = vmatmul.mubr.f32.gmra.mrb[48].mxu0 %v1833_v53 }
 0x41a   : > { %1987 = vmatprep.mubr.f32.mxu0 %v1687_v16 }
 0x41d   : > { %1988 = vmatmul.mubr.f32.gmra.mrb[50].mxu0 %v4168_v35 }
 0x41e   : > { %1992 = vmatprep.mubr.f32.mxu0 %v1688_v24 }
 0x421   : > { %1993 = vmatmul.mubr.f32.gmra.mrb[52].mxu0 %v1843_v30 }
 0x422   : > { %1997 = vmatprep.mubr.f32.mxu0 %v1689_v23 }
 0x425   : > { %1998 = vmatmul.mubr.f32.gmra.mrb[54].mxu0 %v4171_v58 }
 0x426   : > { %2002 = vmatprep.mubr.f32.mxu0 %v1690_v49 }
 0x429   : > { %2003 = vmatmul.mubr.f32.gmra.mrb[56].mxu0 %v1853_v55 }
 0x42a   : > { %2007 = vmatprep.mubr.f32.mxu0 %v1691_v31 }
 0x42d   : > { %2008 = vmatmul.mubr.f32.gmra.mrb[58].mxu0 %v4174_v48 }
 0x42e   : > { %2012 = vmatprep.mubr.f32.mxu0 %v6498_v61 }
 0x431   : > { %2013 = vmatmul.mubr.f32.gmra.mrb[60].mxu0 %v1863_v1 }
 0x432   : > { %2017 = vmatprep.mubr.f32.mxu0 %v6499_v43 }
 0x435   : > { %2018 = vmatmul.mubr.f32.gmra.mrb[62].mxu0 %v4177_v0 }
 0x436   : > { %4266 = vmatprep.mubr.f32.mxu0 %v5826_v6 }
 0x4cc   : > { %v3426_v2 = vpop.f32.mrb[32].mxu0 }
 0x4cd   : > { %v3427_v8 = vpop.f32.mrb[33].mxu0 }
 0x4ce   : > { %v3428_v51 = vadd.f32 %v3427_v8, %v3426_v2 }
 0x4d0   : > { %v3429_v52 = vpop.f32.mrb[34].mxu0  ;;  %v6031_v16 = vadd.f32 %v3428_v51, %v6028_v9 }
 0x4d1   : > { %v3430_v15 = vpop.f32.mrb[35].mxu0 }
 0x4d2   : > { %v3431_v59 = vadd.f32 %v3430_v15, %v3429_v52  ;;  %v2023_v6 = vmax.f32 %v6031_v16, 0.0 }
 0x4d4   : > { %v6034_v18 = vadd.f32 %v3431_v59, %v6028_v9  ;;  %v3432_v22 = vpop.f32.mrb[36].mxu0 }
 0x4d5   : > { %v3433_v23 = vpop.f32.mrb[37].mxu0 }
 0x4d6   : > { %v2024_v24 = vmax.f32 %v6034_v18, 0.0  ;;  %v3434_v26 = vadd.f32 %v3433_v23, %v3432_v22 }
 0x4d8   : > { %v3435_v29 = vpop.f32.mrb[38].mxu0  ;;  %v4634_v31 = vpack.c.bf16 %v2024_v24, %v2023_v6  ;;  %v6043_v45 = vadd.f32 %v3434_v26, %v6028_v9 }
 0x4d9   : > { %v3436_v49 = vpop.f32.mrb[39].mxu0 }
 0x4da   : > { %v3437_v34 = vadd.f32 %v3436_v49, %v3435_v29  ;;  %4635 = vmatprep.subr.bf16.mxu1 %v4634_v31  ;;  %v2025_v13 = vmax.f32 %v6043_v45, 0.0 }
 0x4db   : > { %4637 = vmatpush3.bf16.msra.mxu1 %v4634_v31 }
 0x4dc   : > { %v6046_v44 = vadd.f32 %v3437_v34, %v6028_v9  ;;  %v3438_v7 = vpop.f32.mrb[40].mxu0 }
 0x4dd   : > { %v3439_v10 = vpop.f32.mrb[41].mxu0 }
 0x4de   : > { %v2026_v14 = vmax.f32 %v6046_v44, 0.0  ;;  %v3440_v17 = vadd.f32 %v3439_v10, %v3438_v7 }
 0x4e0   : > { %v3441_v60 = vpop.f32.mrb[42].mxu0  ;;  %v4638_v47 = vpack.c.bf16 %v2026_v14, %v2025_v13  ;;  %v6055_v25 = vadd.f32 %v3440_v17, %v6028_v9 }
 0x4e1   : > { %v3442_v21 = vpop.f32.mrb[43].mxu0 }
 0x4e2   : > { %v3443_v3 = vadd.f32 %v3442_v21, %v3441_v60  ;;  %4639 = vmatprep.subr.bf16.mxu1 %v4638_v47  ;;  %v2027_v5 = vmax.f32 %v6055_v25, 0.0 }
 0x4e3   : > { %4641 = vmatpush3.bf16.msra.mxu1 %v4638_v47 }
 0x4e4   : > { %v6058_v4 = vadd.f32 %v3443_v3, %v6028_v9  ;;  %v3444_v38 = vpop.f32.mrb[44].mxu0 }
 0x4e5   : > { %v3445_v62 = vpop.f32.mrb[45].mxu0 }
 0x4e6   : > { %v2028_v56 = vmax.f32 %v6058_v4, 0.0  ;;  %v3446_v57 = vadd.f32 %v3445_v62, %v3444_v38 }
 0x4e8   : > { %v3447_v63 = vpop.f32.mrb[46].mxu0  ;;  %v4642_v50 = vpack.c.bf16 %v2028_v56, %v2027_v5  ;;  %v6067_v35 = vadd.f32 %v3446_v57, %v6028_v9 }
 0x4e9   : > { %v3448_v54 = vpop.f32.mrb[47].mxu0 }
 0x4ea   : > { %v3449_v53 = vadd.f32 %v3448_v54, %v3447_v63  ;;  %4643 = vmatprep.subr.bf16.mxu1 %v4642_v50  ;;  %v2029_v55 = vmax.f32 %v6067_v35, 0.0 }
 0x4eb   : > { %4645 = vmatpush3.bf16.msra.mxu1 %v4642_v50 }
 0x4ec   : > { %v6070_v58 = vadd.f32 %v3449_v53, %v6028_v9  ;;  %v3450_v30 = vpop.f32.mrb[48].mxu0 }
 0x4ed   : > { %v3451_v48 = vpop.f32.mrb[49].mxu0 }
 0x4ee   : > { %v2030_v0 = vmax.f32 %v6070_v58, 0.0  ;;  %v3452_v1 = vadd.f32 %v3451_v48, %v3450_v30  ;;  %v6176_v58 = vld [vmem:[%s6455_s7 + $0x1] ss:$0 sm:$0xff] }
 0x4f0   : > { %v3453_v61 = vpop.f32.mrb[50].mxu0  ;;  %v4646_v43 = vpack.c.bf16 %v2030_v0, %v2029_v55  ;;  %v6079_v8 = vadd.f32 %v3452_v1, %v6028_v9 }
 0x4f1   : > { %v3454_v2 = vpop.f32.mrb[51].mxu0 }
 0x4f2   : > { %v3455_v51 = vadd.f32 %v3454_v2, %v3453_v61  ;;  %4647 = vmatprep.subr.bf16.mxu1 %v4646_v43  ;;  %v2031_v22 = vmax.f32 %v6079_v8, 0.0 }
 0x4f3   : > { %4649 = vmatpush3.bf16.msra.mxu1 %v4646_v43 }
 0x4f4   : > { %v6082_v52 = vadd.f32 %v3455_v51, %v6028_v9  ;;  %v3456_v15 = vpop.f32.mrb[52].mxu0 }
 0x4f5   : > { %v3457_v59 = vpop.f32.mrb[53].mxu0 }
 0x4f6   : > { %v2032_v23 = vmax.f32 %v6082_v52, 0.0  ;;  %v3458_v26 = vadd.f32 %v3457_v59, %v3456_v15 }
 0x4f8   : > { %v3459_v29 = vpop.f32.mrb[54].mxu0  ;;  %v4650_v31 = vpack.c.bf16 %v2032_v23, %v2031_v22  ;;  %v6091_v34 = vadd.f32 %v3458_v26, %v6028_v9 }
 0x4f9   : > { %v3460_v49 = vpop.f32.mrb[55].mxu0 }
 0x4fa   : > { %v3461_v7 = vadd.f32 %v3460_v49, %v3459_v29  ;;  %4651 = vmatprep.subr.bf16.mxu1 %v4650_v31  ;;  %v2033_v47 = vmax.f32 %v6091_v34, 0.0  ;;  %v2056_v29 = vld [vmem:[#allocation12 + $0x180] sm:$0xff] }
 0x4fb   : > { %4653 = vmatpush3.bf16.msra.mxu1 %v4650_v31  ;;  %v2057_v31 = vld [vmem:[#allocation12 + $0x188] sm:$0xff] }
 0x4fc   : > { %v6094_v10 = vadd.f32 %v3461_v7, %v6028_v9  ;;  %v3462_v17 = vpop.f32.mrb[56].mxu0 }
 0x4fd   : > { %v3463_v60 = vpop.f32.mrb[57].mxu0 }
 0x4fe   : > { %v2034_v21 = vmax.f32 %v6094_v10, 0.0  ;;  %v3464_v3 = vadd.f32 %v3463_v60, %v3462_v17  ;;  %v4666_v60 = vpack.c.bf16 %v2057_v31, %v2056_v29  ;;  %v2045_v29 = vld [vmem:[#allocation12 + $0x128] sm:$0xff]  ;;  %v2062_v31 = vld [vmem:[#allocation12 + $0x1b0] sm:$0xff] }
 0x500   : > { %v3465_v38 = vpop.f32.mrb[58].mxu0  ;;  %v4654_v62 = vpack.c.bf16 %v2034_v21, %v2033_v47  ;;  %v6103_v63 = vadd.f32 %v3464_v3, %v6028_v9  ;;  %v2040_v3 = vld [vmem:[#allocation12 + $0x100] sm:$0xff] }
 0x501   : > { %v3466_v57 = vpop.f32.mrb[59].mxu0 }
 0x502   : > { %v3467_v50 = vadd.f32 %v3466_v57, %v3465_v38  ;;  %4655 = vmatprep.subr.bf16.mxu1 %v4654_v62  ;;  %v2035_v48 = vmax.f32 %v6103_v63, 0.0  ;;  %v2041_v38 = vld [vmem:[#allocation12 + $0x108] sm:$0xff]  ;;  %v2059_v57 = vld [vmem:[#allocation12 + $0x198] sm:$0xff] }
 0x503   : > { %4657 = vmatpush3.bf16.msra.mxu1 %v4654_v62  ;;  %v2058_v62 = vld [vmem:[#allocation12 + $0x190] sm:$0xff] }
 0x504   : > { %v6106_v54 = vadd.f32 %v3467_v50, %v6028_v9  ;;  %v3468_v53 = vpop.f32.mrb[60].mxu0  ;;  %v4670_v50 = vpack.c.bf16 %v2059_v57, %v2058_v62 }
 0x505   : > { %v3469_v30 = vpop.f32.mrb[61].mxu0 }
 0x506   : > { %v2036_v1 = vmax.f32 %v6106_v54, 0.0  ;;  %v3470_v61 = vadd.f32 %v3469_v30, %v3468_v53  ;;  %v2042_v53 = vld [vmem:[#allocation12 + $0x110] sm:$0xff]  ;;  %v2043_v30 = vld [vmem:[#allocation12 + $0x118] sm:$0xff] }
 0x508   : > { %v3471_v43 = vpop.f32.mrb[62].mxu0  ;;  %v4658_v2 = vpack.c.bf16 %v2036_v1, %v2035_v48  ;;  %v6115_v15 = vadd.f32 %v3470_v61, %v6028_v9  ;;  %v2060_v61 = vld [vmem:[#allocation12 + $0x1a0] sm:$0xff] }
 0x509   : > { %v3472_v51 = vpop.f32.mrb[63].mxu0 }
 0x50a   : > { %v3473_v59 = vadd.f32 %v3472_v51, %v3471_v43  ;;  %4659 = vmatprep.subr.bf16.mxu1 %v4658_v2  ;;  %v2037_v49 = vmax.f32 %v6115_v15, 0.0  ;;  %v2061_v43 = vld [vmem:[#allocation12 + $0x1a8] sm:$0xff] }
 0x50b   : > { %4661 = vmatpush3.bf16.msra.mxu1 %v4658_v2  ;;  %v4672_v2 = vpack.c.bf16 %v2043_v30, %v2042_v53  ;;  %v4674_v51 = vpack.c.bf16 %v2061_v43, %v2060_v61  ;;  %v2050_v30 = vld [vmem:[#allocation12 + $0x150] sm:$0xff]  ;;  %v2068_v61 = vld [vmem:[#allocation12 + $0x1e0] sm:$0xff] }
 0x50c   : > { %v6118_v26 = vadd.f32 %v3473_v59, %v6028_v9  ;;  %v4668_v9 = vpack.c.bf16 %v2041_v38, %v2040_v3  ;;  %v2044_v59 = vld [vmem:[#allocation12 + $0x120] sm:$0xff]  ;;  %v2046_v3 = vld [vmem:[#allocation12 + $0x130] sm:$0xff] }
 0x50d   : > { %v2064_v38 = vld [vmem:[#allocation12 + $0x1c0] sm:$0xff] }
 0x50e   : > { %v6470_v7 = vmax.f32 %v6118_v26, 0.0  ;;  %v6500_v4 = vmax.f32 %v6118_v26, 0.0 }
 0x510   : > { %v4662_v17 = vpack.c.bf16 %v6470_v7, %v2037_v49  ;;  %v2063_v7 = vld [vmem:[#allocation12 + $0x1b8] sm:$0xff] }
 0x512   : > { %4663 = vmatprep.subr.bf16.mxu1 %v4662_v17 }
 0x513   : > { %4665 = vmatpush3.bf16.msra.mxu1 %v4662_v17  ;;  %v4676_v17 = vpack.c.bf16 %v2045_v29, %v2044_v59  ;;  %v2070_v59 = vld [vmem:[#allocation12 + $0x1f0] sm:$0xff] }
 0x514   : > { %4667 = vmatprep.subr.bf16.mxu1 %v4666_v60  ;;  %v4678_v60 = vpack.c.bf16 %v2063_v7, %v2062_v31 }
 0x516   : > { %4211 = vmatmul.mubr.f32.vlgmr.msra.gmra.mrb[16].mxu1 %v5830_v32  ;;  %v2047_v32 = vld [vmem:[#allocation12 + $0x138] sm:$0xff] }
 0x517   : > { %4213 = vmatprep.mubr.f32.mxu1 %v5832_v11  ;;  %4669 = vmatpush3.bf16.msra.mxu1 %v4668_v9  ;;  %v2065_v11 = vld [vmem:[#allocation12 + $0x1c8] sm:$0xff]  ;;  %v4680_v62 = vpack.c.bf16 %v2047_v32, %v2046_v3  ;;  %v2048_v9 = vld [vmem:[#allocation12 + $0x140] sm:$0xff] }
 0x518   : > { %4671 = vmatprep.subr.bf16.mxu1 %v4670_v50  ;;  %v4682_v57 = vpack.c.bf16 %v2065_v11, %v2064_v38  ;;  %v2066_v50 = vld [vmem:[#allocation12 + $0x1d0] sm:$0xff] }
 0x51a   : > { %4214 = vmatmul.mubr.f32.gmra.mrb[18].mxu1 %v5836_v12  ;;  %v2049_v12 = vld [vmem:[#allocation12 + $0x148] sm:$0xff] }
 0x51b   : > { %4216 = vmatprep.mubr.f32.mxu1 %v5838_v33  ;;  %4673 = vmatpush3.bf16.msra.mxu1 %v4672_v2  ;;  %v2067_v33 = vld [vmem:[#allocation12 + $0x1d8] sm:$0xff]  ;;  %v4684_v7 = vpack.c.bf16 %v2049_v12, %v2048_v9 }
 0x51c   : > { %4675 = vmatprep.subr.bf16.mxu1 %v4674_v51  ;;  %v4686_v53 = vpack.c.bf16 %v2067_v33, %v2066_v50  ;;  %v2052_v51 = vld [vmem:[#allocation12 + $0x160] sm:$0xff] }
 0x51e   : > { %4217 = vmatmul.mubr.f32.gmra.mrb[20].mxu1 %v5842_v36  ;;  %v2051_v36 = vld [vmem:[#allocation12 + $0x158] sm:$0xff] }
 0x51f   : > { %4219 = vmatprep.mubr.f32.mxu1 %v5844_v37  ;;  %4677 = vmatpush3.bf16.msra.mxu1 %v4676_v17  ;;  %v2069_v37 = vld [vmem:[#allocation12 + $0x1e8] sm:$0xff]  ;;  %v4688_v43 = vpack.c.bf16 %v2051_v36, %v2050_v30  ;;  %v2054_v17 = vld [vmem:[#allocation12 + $0x170] sm:$0xff] }
 0x520   : > { %4679 = vmatprep.subr.bf16.mxu1 %v4678_v60  ;;  %v4690_v2 = vpack.c.bf16 %v2069_v37, %v2068_v61 }
 0x522   : > { %4220 = vmatmul.mubr.f32.gmra.mrb[22].mxu1 %v5848_v39  ;;  %v2053_v39 = vld [vmem:[#allocation12 + $0x168] sm:$0xff] }
 0x523   : > { %4222 = vmatprep.mubr.f32.mxu1 %v5850_v19  ;;  %4681 = vmatpush3.bf16.msra.mxu1 %v4680_v62  ;;  %v2071_v19 = vld [vmem:[#allocation12 + $0x1f8] sm:$0xff]  ;;  %v4692_v29 = vpack.c.bf16 %v2053_v39, %v2052_v51 }
 0x524   : > { %4683 = vmatprep.subr.bf16.mxu1 %v4682_v57  ;;  %v4694_v31 = vpack.c.bf16 %v2071_v19, %v2070_v59 }
 0x526   : > { %4223 = vmatmul.mubr.f32.gmra.mrb[24].mxu1 %v5854_v20  ;;  %v2055_v20 = vld [vmem:[#allocation12 + $0x178] sm:$0xff] }
 0x527   : > { %4225 = vmatprep.mubr.f32.mxu1 %v5856_v40  ;;  %4685 = vmatpush3.bf16.msra.mxu1 %v4684_v7  ;;  %v4696_v40 = vpack.c.bf16 %v2055_v20, %v2054_v17 }
 0x528   : > { %4687 = vmatprep.subr.bf16.mxu1 %v4686_v53 }
 0x52a   : > { %4226 = vmatmul.mubr.f32.gmra.mrb[26].mxu1 %v5860_v41 }
 0x52b   : > { %4228 = vmatprep.mubr.f32.mxu1 %v5862_v42  ;;  %4689 = vmatpush3.bf16.msra.mxu1 %v4688_v43 }
 0x52c   : > { %4691 = vmatprep.subr.bf16.mxu1 %v4690_v2 }
 0x52e   : > { %4229 = vmatmul.mubr.f32.gmra.mrb[28].mxu1 %v5866_v27 }
 0x52f   : > { %4231 = vmatprep.mubr.f32.mxu1 %v5868_v28  ;;  %4693 = vmatpush3.bf16.msra.mxu1 %v4692_v29 }
 0x530   : > { %4695 = vmatprep.subr.bf16.mxu1 %v4694_v31 }
 0x532   : > { %4232 = vmatmul.mubr.f32.gmra.mrb[30].mxu1 %v5872_v46 }
 0x533   : > { %2289 = vmatprep.mubr.f32.mxu1 %v2023_v6  ;;  %4697 = vmatpush3.bf16.msra.mxu1 %v4696_v40 }
 0x5e9   : > { %v4212_v41 = vpop.f32.mrb[16].mxu1 }
 0x5ea   : > { %v2140_v42 = vpop.f32.mrb[17].mxu1 }
 0x5eb   : > { %2290 = vmatmul.mubr.f32.vlgmr.msra.gmra.mrb[32].mxu1 %v2140_v42 }
 0x5ec   : > { %2294 = vmatprep.mubr.f32.mxu1 %v2024_v24 }
 0x5ed   : > { %v4215_v60 = vpop.f32.mrb[18].mxu1 }
 0x5ee   : > { %v2150_v3 = vpop.f32.mrb[19].mxu1 }
 0x5ef   : > { %2295 = vmatmul.mubr.f32.gmra.mrb[34].mxu1 %v4212_v41 }
 0x5f0   : > { %2299 = vmatprep.mubr.f32.mxu1 %v2025_v13 }
 0x5f1   : > { %v4218_v27 = vpop.f32.mrb[20].mxu1 }
 0x5f2   : > { %v2160_v28 = vpop.f32.mrb[21].mxu1 }
 0x5f3   : > { %2300 = vmatmul.mubr.f32.gmra.mrb[36].mxu1 %v2150_v3 }
 0x5f4   : > { %2304 = vmatprep.mubr.f32.mxu1 %v2026_v14 }
 0x5f5   : > { %v4221_v46 = vpop.f32.mrb[22].mxu1 }
 0x5f6   : > { %v2170_v16 = vpop.f32.mrb[23].mxu1 }
 0x5f7   : > { %2305 = vmatmul.mubr.f32.gmra.mrb[38].mxu1 %v4215_v60 }
 0x5f8   : > { %2309 = vmatprep.mubr.f32.mxu1 %v2027_v5 }
 0x5f9   : > { %v4224_v18 = vpop.f32.mrb[24].mxu1 }
 0x5fa   : > { %v2180_v6 = vpop.f32.mrb[25].mxu1 }
 0x5fb   : > { %2310 = vmatmul.mubr.f32.gmra.mrb[40].mxu1 %v2160_v28 }
 0x5fc   : > { %2314 = vmatprep.mubr.f32.mxu1 %v2028_v56 }
 0x5fd   : > { %v4227_v24 = vpop.f32.mrb[26].mxu1 }
 0x5fe   : > { %v2190_v45 = vpop.f32.mrb[27].mxu1 }
 0x5ff   : > { %2315 = vmatmul.mubr.f32.gmra.mrb[42].mxu1 %v4218_v27 }
 0x600   : > { %2319 = vmatprep.mubr.f32.mxu1 %v2029_v55 }
 0x601   : > { %v4230_v44 = vpop.f32.mrb[28].mxu1 }
 0x602   : > { %v2200_v13 = vpop.f32.mrb[29].mxu1 }
 0x603   : > { %2320 = vmatmul.mubr.f32.gmra.mrb[44].mxu1 %v2170_v16 }
 0x604   : > { %2324 = vmatprep.mubr.f32.mxu1 %v2030_v0 }
 0x605   : > { %v4233_v14 = vpop.f32.mrb[30].mxu1 }
 0x606   : > { %v2210_v25 = vpop.f32.mrb[31].mxu1 }
 0x607   : > { %2325 = vmatmul.mubr.f32.gmra.mrb[46].mxu1 %v4221_v46 }
 0x608   : > { %2329 = vmatprep.mubr.f32.mxu1 %v2031_v22 }
 0x60b   : > { %2330 = vmatmul.mubr.f32.gmra.mrb[48].mxu1 %v2180_v6 }
 0x60c   : > { %2334 = vmatprep.mubr.f32.mxu1 %v2032_v23 }
 0x60f   : > { %2335 = vmatmul.mubr.f32.gmra.mrb[50].mxu1 %v4224_v18 }
 0x610   : > { %2339 = vmatprep.mubr.f32.mxu1 %v2033_v47 }
 0x613   : > { %2340 = vmatmul.mubr.f32.gmra.mrb[52].mxu1 %v2190_v45 }
 0x614   : > { %2344 = vmatprep.mubr.f32.mxu1 %v2034_v21 }
 0x617   : > { %2345 = vmatmul.mubr.f32.gmra.mrb[54].mxu1 %v4227_v24 }
 0x618   : > { %2349 = vmatprep.mubr.f32.mxu1 %v2035_v48 }
 0x61b   : > { %2350 = vmatmul.mubr.f32.gmra.mrb[56].mxu1 %v2200_v13 }
 0x61c   : > { %2354 = vmatprep.mubr.f32.mxu1 %v2036_v1 }
 0x61f   : > { %2355 = vmatmul.mubr.f32.gmra.mrb[58].mxu1 %v4230_v44 }
 0x620   : > { %2359 = vmatprep.mubr.f32.mxu1 %v2037_v49 }
 0x623   : > { %2360 = vmatmul.mubr.f32.gmra.mrb[60].mxu1 %v2210_v25 }
 0x624   : > { %2364 = vmatprep.mubr.f32.mxu1 %v6500_v4 }
 0x627   : > { %2365 = vmatmul.mubr.f32.gmra.mrb[62].mxu1 %v4233_v14 }
 0x6be   : > { %v3538_v5 = vpop.f32.mrb[32].mxu1 }
 0x6bf   : > { %v3539_v56 = vpop.f32.mrb[33].mxu1 }
 0x6c0   : > { %v3540_v35 = vadd.f32 %v3539_v56, %v3538_v5 }
 0x6c2   : > { %v3541_v55 = vpop.f32.mrb[34].mxu1  ;;  %v6179_v8 = vadd.f32 %v3540_v35, %v6176_v58 }
 0x6c3   : > { %v3542_v0 = vpop.f32.mrb[35].mxu1 }
 0x6c4   : > { %v3543_v52 = vadd.f32 %v3542_v0, %v3541_v55  ;;  %v2370_v10 = vmax.f32 %v6179_v8, 0.0  ;;  %v2741_v8 = vld [vmem:[#allocation13 + $0x40] sm:$0xff] }
 0x6c6   : > { %v6182_v22 = vadd.f32 %v3543_v52, %v6176_v58  ;;  %v3544_v23 = vpop.f32.mrb[36].mxu1 }
 0x6c7   : > { %v3545_v34 = vpop.f32.mrb[37].mxu1 }
 0x6c8   : > { %v2371_v47 = vmax.f32 %v6182_v22, 0.0  ;;  %v3546_v21 = vadd.f32 %v3545_v34, %v3544_v23 }
 0x6ca   : > { %v3547_v63 = vpop.f32.mrb[38].mxu1  ;;  %v4698_v54 = vpack.c.bf16 %v2371_v47, %v2370_v10  ;;  %v6191_v1 = vadd.f32 %v3546_v21, %v6176_v58 }
 0x6cb   : > { %v3548_v48 = vpop.f32.mrb[39].mxu1 }
 0x6cc   : > { %v3549_v15 = vadd.f32 %v3548_v48, %v3547_v63  ;;  %4699 = vmatprep.subr.bf16.mxu0 %v4698_v54  ;;  %v2372_v38 = vmax.f32 %v6191_v1, 0.0 }
 0x6cd   : > { %4701 = vmatpush3.bf16.msra.mxu0 %v4698_v54 }
 0x6ce   : > { %v6194_v26 = vadd.f32 %v3549_v15, %v6176_v58  ;;  %v3550_v49 = vpop.f32.mrb[40].mxu1 }
 0x6cf   : > { %v3551_v32 = vpop.f32.mrb[41].mxu1 }
 0x6d0   : > { %v2373_v11 = vmax.f32 %v6194_v26, 0.0  ;;  %v3552_v62 = vadd.f32 %v3551_v32, %v3550_v49 }
 0x6d2   : > { %v3553_v57 = vpop.f32.mrb[42].mxu1  ;;  %v4702_v9 = vpack.c.bf16 %v2373_v11, %v2372_v38  ;;  %v6203_v50 = vadd.f32 %v3552_v62, %v6176_v58 }
 0x6d3   : > { %v3554_v12 = vpop.f32.mrb[43].mxu1 }
 0x6d4   : > { %v3555_v33 = vadd.f32 %v3554_v12, %v3553_v57  ;;  %4703 = vmatprep.subr.bf16.mxu0 %v4702_v9  ;;  %v2374_v36 = vmax.f32 %v6203_v50, 0.0 }
 0x6d5   : > { %4705 = vmatpush3.bf16.msra.mxu0 %v4702_v9 }
 0x6d6   : > { %v6206_v7 = vadd.f32 %v3555_v33, %v6176_v58  ;;  %v3556_v53 = vpop.f32.mrb[44].mxu1 }
 0x6d7   : > { %v3557_v30 = vpop.f32.mrb[45].mxu1 }
 0x6d8   : > { %v2375_v61 = vmax.f32 %v6206_v7, 0.0  ;;  %v3558_v37 = vadd.f32 %v3557_v30, %v3556_v53  ;;  %v2745_v7 = vld [vmem:[#allocation13 + $0x60] sm:$0xff] }
 0x6da   : > { %v3559_v43 = vpop.f32.mrb[46].mxu1  ;;  %v4706_v2 = vpack.c.bf16 %v2375_v61, %v2374_v36  ;;  %v6215_v39 = vadd.f32 %v3558_v37, %v6176_v58  ;;  %v2403_v37 = vld [vmem:[#allocation12 + $0x280] sm:$0xff] }
 0x6db   : > { %v3560_v51 = vpop.f32.mrb[47].mxu1 }
 0x6dc   : > { %v3561_v59 = vadd.f32 %v3560_v51, %v3559_v43  ;;  %4707 = vmatprep.subr.bf16.mxu0 %v4706_v2  ;;  %v2376_v17 = vmax.f32 %v6215_v39, 0.0  ;;  %v2404_v43 = vld [vmem:[#allocation12 + $0x288] sm:$0xff] }
 0x6dd   : > { %4709 = vmatpush3.bf16.msra.mxu0 %v4706_v2 }
 0x6de   : > { %v6218_v19 = vadd.f32 %v3561_v59, %v6176_v58  ;;  %v3562_v29 = vpop.f32.mrb[48].mxu1 }
 0x6df   : > { %v3563_v31 = vpop.f32.mrb[49].mxu1 }
 0x6e0   : > { %v2377_v20 = vmax.f32 %v6218_v19, 0.0  ;;  %v3564_v40 = vadd.f32 %v3563_v31, %v3562_v29  ;;  %v4730_v29 = vpack.c.bf16 %v2404_v43, %v2403_v37  ;;  %v2387_v31 = vld [vmem:[#allocation12 + $0x200] sm:$0xff]  ;;  %v2747_v19 = vld [vmem:[#allocation13 + $0x70] sm:$0xff] }
 0x6e2   : > { %v3565_v41 = vpop.f32.mrb[50].mxu1  ;;  %v4710_v42 = vpack.c.bf16 %v2377_v20, %v2376_v17  ;;  %v6227_v3 = vadd.f32 %v3564_v40, %v6176_v58  ;;  %v2388_v40 = vld [vmem:[#allocation12 + $0x208] sm:$0xff] }
 0x6e3   : > { %v3566_v60 = vpop.f32.mrb[51].mxu1 }
 0x6e4   : > { %v3567_v27 = vadd.f32 %v3566_v60, %v3565_v41  ;;  %4711 = vmatprep.subr.bf16.mxu0 %v4710_v42  ;;  %v2378_v18 = vmax.f32 %v6227_v3, 0.0  ;;  %v2405_v41 = vld [vmem:[#allocation12 + $0x290] sm:$0xff] }
 0x6e5   : > { %4713 = vmatpush3.bf16.msra.mxu0 %v4710_v42  ;;  %v2406_v42 = vld [vmem:[#allocation12 + $0x298] sm:$0xff] }
 0x6e6   : > { %v6230_v28 = vadd.f32 %v3567_v27, %v6176_v58  ;;  %v3568_v46 = vpop.f32.mrb[52].mxu1  ;;  %v4734_v60 = vpack.c.bf16 %v2406_v42, %v2405_v41  ;;  %v2389_v27 = vld [vmem:[#allocation12 + $0x210] sm:$0xff]  ;;  %v4989_v41 = vld [vmem:[#allocation4 + $0x38] sm:$0xff]  ;;  %v4990_v42 = vld [vmem:[#allocation4 + $0x40] sm:$0xff] }
 0x6e7   : > { %v3569_v16 = vpop.f32.mrb[53].mxu1 }
 0x6e8   : > { %v2379_v6 = vmax.f32 %v6230_v28, 0.0  ;;  %v3570_v24 = vadd.f32 %v3569_v16, %v3568_v46  ;;  %v2390_v46 = vld [vmem:[#allocation12 + $0x218] sm:$0xff]  ;;  %v2407_v16 = vld [vmem:[#allocation12 + $0x2a0] sm:$0xff] }
 0x6e9   : > { %v6309_v28 = vld [vmem:[%s6455_s7 + $0x2] ss:$0 sm:$0xff] }
 0x6ea   : > { %v3571_v45 = vpop.f32.mrb[54].mxu1  ;;  %v4714_v44 = vpack.c.bf16 %v2379_v6, %v2378_v18  ;;  %v6239_v14 = vadd.f32 %v3570_v24, %v6176_v58  ;;  %v2408_v24 = vld [vmem:[#allocation12 + $0x2a8] sm:$0xff] }
 0x6eb   : > { %v3572_v13 = vpop.f32.mrb[55].mxu1 }
 0x6ec   : > { %v3573_v25 = vadd.f32 %v3572_v13, %v3571_v45  ;;  %4715 = vmatprep.subr.bf16.mxu0 %v4714_v44  ;;  %v2380_v35 = vmax.f32 %v6239_v14, 0.0  ;;  %v4983_v45 = vld [vmem:[#allocation4 + $0x8] sm:$0xff]  ;;  %v4736_v13 = vpack.c.bf16 %v2390_v46, %v2389_v27  ;;  %v2397_v27 = vld [vmem:[#allocation12 + $0x250] sm:$0xff]  ;;  %v2398_v46 = vld [vmem:[#allocation12 + $0x258] sm:$0xff] }
 0x6ed   : > { %4717 = vmatpush3.bf16.msra.mxu0 %v4714_v44  ;;  %v4984_v44 = vld [vmem:[#allocation4 + $0x10] sm:$0xff] }
 0x6ee   : > { %v6242_v4 = vadd.f32 %v3573_v25, %v6176_v58  ;;  %v3574_v5 = vpop.f32.mrb[56].mxu1  ;;  %v4738_v25 = vpack.c.bf16 %v2408_v24, %v2407_v16  ;;  %v2415_v16 = vld [vmem:[#allocation12 + $0x2e0] sm:$0xff]  ;;  %v2416_v24 = vld [vmem:[#allocation12 + $0x2e8] sm:$0xff] }
 0x6ef   : > { %v3575_v56 = vpop.f32.mrb[57].mxu1 }
 0x6f0   : > { %v2381_v55 = vmax.f32 %v6242_v4, 0.0  ;;  %v3576_v0 = vadd.f32 %v3575_v56, %v3574_v5  ;;  %v2391_v5 = vld [vmem:[#allocation12 + $0x220] sm:$0xff]  ;;  %v2392_v56 = vld [vmem:[#allocation12 + $0x228] sm:$0xff] }
 0x6f2   : > { %v3577_v52 = vpop.f32.mrb[58].mxu1  ;;  %v4718_v23 = vpack.c.bf16 %v2381_v55, %v2380_v35  ;;  %v6251_v21 = vadd.f32 %v3576_v0, %v6176_v58  ;;  %v2409_v0 = vld [vmem:[#allocation12 + $0x2b0] sm:$0xff] }
 0x6f3   : > { %v3578_v34 = vpop.f32.mrb[59].mxu1 }
 0x6f4   : > { %v3579_v63 = vadd.f32 %v3578_v34, %v3577_v52  ;;  %4719 = vmatprep.subr.bf16.mxu0 %v4718_v23  ;;  %v2382_v49 = vmax.f32 %v6251_v21, 0.0  ;;  %v2410_v52 = vld [vmem:[#allocation12 + $0x2b8] sm:$0xff]  ;;  %v4986_v34 = vld [vmem:[#allocation4 + $0x20] sm:$0xff] }
 0x6f5   : > { %4721 = vmatpush3.bf16.msra.mxu0 %v4718_v23  ;;  %v4985_v23 = vld [vmem:[#allocation4 + $0x18] sm:$0xff] }
 0x6f6   : > { %v6254_v54 = vadd.f32 %v3579_v63, %v6176_v58  ;;  %v3580_v48 = vpop.f32.mrb[60].mxu1  ;;  %v4740_v63 = vpack.c.bf16 %v2392_v56, %v2391_v5  ;;  %v2399_v5 = vld [vmem:[#allocation12 + $0x260] sm:$0xff]  ;;  %v2400_v56 = vld [vmem:[#allocation12 + $0x268] sm:$0xff] }
 0x6f7   : > { %v3581_v15 = vpop.f32.mrb[61].mxu1 }
 0x6f8   : > { %v2383_v32 = vmax.f32 %v6254_v54, 0.0  ;;  %v3582_v62 = vadd.f32 %v3581_v15, %v3580_v48  ;;  %v4742_v48 = vpack.c.bf16 %v2410_v52, %v2409_v0  ;;  %v2393_v15 = vld [vmem:[#allocation12 + $0x230] sm:$0xff]  ;;  %v2418_v52 = vld [vmem:[#allocation12 + $0x2f8] sm:$0xff] }
 0x6f9   : > { %v2417_v0 = vld [vmem:[#allocation12 + $0x2f0] sm:$0xff] }
 0x6fa   : > { %v3583_v57 = vpop.f32.mrb[62].mxu1  ;;  %v4722_v9 = vpack.c.bf16 %v2383_v32, %v2382_v49  ;;  %v6263_v33 = vadd.f32 %v3582_v62, %v6176_v58  ;;  %v2394_v62 = vld [vmem:[#allocation12 + $0x238] sm:$0xff] }
 0x6fb   : > { %v3584_v12 = vpop.f32.mrb[63].mxu1  ;;  %v4744_v37 = vpack.c.bf16 %v2394_v62, %v2393_v15  ;;  %v2401_v15 = vld [vmem:[#allocation12 + $0x270] sm:$0xff]  ;;  %v2402_v62 = vld [vmem:[#allocation12 + $0x278] sm:$0xff] }
 0x6fc   : > { %v3585_v53 = vadd.f32 %v3584_v12, %v3583_v57  ;;  %4723 = vmatprep.subr.bf16.mxu0 %v4722_v9  ;;  %v2384_v2 = vmax.f32 %v6263_v33, 0.0  ;;  %v2411_v57 = vld [vmem:[#allocation12 + $0x2c0] sm:$0xff]  ;;  %v4987_v12 = vld [vmem:[#allocation4 + $0x28] sm:$0xff] }
 0x6fd   : > { %4725 = vmatpush3.bf16.msra.mxu0 %v4722_v9  ;;  %v2412_v9 = vld [vmem:[#allocation12 + $0x2c8] sm:$0xff] }
 0x6fe   : > { %v6266_v30 = vadd.f32 %v3585_v53, %v6176_v58  ;;  %v4732_v58 = vpack.c.bf16 %v2388_v40, %v2387_v31  ;;  %v4988_v53 = vld [vmem:[#allocation4 + $0x30] sm:$0xff]  ;;  %v4746_v43 = vpack.c.bf16 %v2412_v9, %v2411_v57  ;;  %v2414_v40 = vld [vmem:[#allocation12 + $0x2d8] sm:$0xff]  ;;  %v4995_v57 = vld [vmem:[#allocation4 + $0x68] sm:$0xff] }
 0x6ff   : > { %v2413_v31 = vld [vmem:[#allocation12 + $0x2d0] sm:$0xff] }
 0x700   : > { %v2385_v51 = vmax.f32 %v6266_v30, 0.0  ;;  %v4996_v9 = vld [vmem:[#allocation4 + $0x70] sm:$0xff] }
 0x702   : > { %v4726_v59 = vpack.c.bf16 %v2385_v51, %v2384_v2 }
 0x704   : > { %4727 = vmatprep.subr.bf16.mxu0 %v4726_v59 }
 0x705   : > { %4729 = vmatpush3.bf16.msra.mxu0 %v4726_v59  ;;  %v2395_v59 = vld [vmem:[#allocation12 + $0x240] sm:$0xff] }
 0x706   : > { %4731 = vmatprep.subr.bf16.mxu0 %v4730_v29  ;;  %v2396_v29 = vld [vmem:[#allocation12 + $0x248] sm:$0xff] }
 0x708   : > { %4267 = vmatmul.mubr.f32.vlgmr.msra.gmra.mrb[64].mxu0 %v4983_v45  ;;  %v4991_v45 = vld [vmem:[#allocation4 + $0x48] sm:$0xff] }
 0x709   : > { %4269 = vmatprep.mubr.f32.mxu0 %v4984_v44  ;;  %4733 = vmatpush3.bf16.msra.mxu0 %v4732_v58  ;;  %v4748_v58 = vpack.c.bf16 %v2396_v29, %v2395_v59  ;;  %v4992_v44 = vld [vmem:[#allocation4 + $0x50] sm:$0xff] }
 0x70a   : > { %4735 = vmatprep.subr.bf16.mxu0 %v4734_v60  ;;  %v4750_v60 = vpack.c.bf16 %v2414_v40, %v2413_v31  ;;  %v2735_v59 = vld [vmem:[#allocation13 + $0x10] sm:$0xff]  ;;  %v2736_v31 = vld [vmem:[#allocation13 + $0x18] sm:$0xff] }
 0x70b   : > { %v4766_v40 = vpack.c.bf16 %v2736_v31, %v2735_v59 }
 0x70c   : > { %4270 = vmatmul.mubr.f32.gmra.mrb[66].mxu0 %v4985_v23  ;;  %v4993_v23 = vld [vmem:[#allocation4 + $0x58] sm:$0xff] }
 0x70d   : > { %4272 = vmatprep.mubr.f32.mxu0 %v4986_v34  ;;  %4737 = vmatpush3.bf16.msra.mxu0 %v4736_v13  ;;  %v4752_v13 = vpack.c.bf16 %v2398_v46, %v2397_v27  ;;  %v4994_v34 = vld [vmem:[#allocation4 + $0x60] sm:$0xff]  ;;  %v2740_v27 = vld [vmem:[#allocation13 + $0x38] sm:$0xff] }
 0x70e   : > { %4739 = vmatprep.subr.bf16.mxu0 %v4738_v25  ;;  %v4754_v25 = vpack.c.bf16 %v2416_v24, %v2415_v16  ;;  %v2743_v24 = vld [vmem:[#allocation13 + $0x50] sm:$0xff] }
 0x710   : > { %4273 = vmatmul.mubr.f32.gmra.mrb[68].mxu0 %v4987_v12  ;;  %v4760_v12 = vpack.c.bf16 %v2402_v62, %v2401_v15 }
 0x711   : > { %4275 = vmatprep.mubr.f32.mxu0 %v4988_v53  ;;  %4741 = vmatpush3.bf16.msra.mxu0 %v4740_v63  ;;  %v4756_v63 = vpack.c.bf16 %v2400_v56, %v2399_v5  ;;  %v4997_v53 = vld [vmem:[#allocation4 + $0x78] sm:$0xff] }
 0x712   : > { %4743 = vmatprep.subr.bf16.mxu0 %v4742_v48  ;;  %v4758_v48 = vpack.c.bf16 %v2418_v52, %v2417_v0 }
 0x714   : > { %4276 = vmatmul.mubr.f32.gmra.mrb[70].mxu0 %v4989_v41  ;;  %v2737_v41 = vld [vmem:[#allocation13 + $0x20] sm:$0xff] }
 0x715   : > { %4278 = vmatprep.mubr.f32.mxu0 %v4990_v42  ;;  %4745 = vmatpush3.bf16.msra.mxu0 %v4744_v37  ;;  %v2733_v37 = vld [vmem:[#allocation13] sm:$0xff]  ;;  %v2738_v42 = vld [vmem:[#allocation13 + $0x28] sm:$0xff] }
 0x716   : > { %4747 = vmatprep.subr.bf16.mxu0 %v4746_v43  ;;  %v2734_v43 = vld [vmem:[#allocation13 + $0x8] sm:$0xff] }
 0x717   : > { %v4762_v29 = vpack.c.bf16 %v2734_v43, %v2733_v37 }
 0x718   : > { %4279 = vmatmul.mubr.f32.gmra.mrb[72].mxu0 %v4991_v45  ;;  %v2744_v45 = vld [vmem:[#allocation13 + $0x58] sm:$0xff] }
 0x719   : > { %4281 = vmatprep.mubr.f32.mxu0 %v4992_v44  ;;  %4749 = vmatpush3.bf16.msra.mxu0 %v4748_v58  ;;  %v4770_v58 = vpack.c.bf16 %v2738_v42, %v2737_v41  ;;  %v4782_v44 = vpack.c.bf16 %v2744_v45, %v2743_v24 }
 0x71a   : > { %4751 = vmatprep.subr.bf16.mxu0 %v4750_v60  ;;  %4763 = vmatprep.subr.bf16.mxu1 %v4762_v29  ;;  %v2739_v60 = vld [vmem:[#allocation13 + $0x30] sm:$0xff] }
 0x71b   : > { %4765 = vmatpush3.bf16.msra.mxu1 %v4762_v29  ;;  %v4774_v46 = vpack.c.bf16 %v2740_v27, %v2739_v60 }
 0x71c   : > { %4282 = vmatmul.mubr.f32.gmra.mrb[74].mxu0 %v4993_v23  ;;  %4767 = vmatprep.subr.bf16.mxu1 %v4766_v40 }
 0x71d   : > { %4284 = vmatprep.mubr.f32.mxu0 %v4994_v34  ;;  %4753 = vmatpush3.bf16.msra.mxu0 %v4752_v13 }
 0x71e   : > { %4755 = vmatprep.subr.bf16.mxu0 %v4754_v25 }
 0x71f   : > { %4769 = vmatpush3.bf16.msra.mxu1 %v4766_v40 }
 0x720   : > { %4285 = vmatmul.mubr.f32.gmra.mrb[76].mxu0 %v4995_v57  ;;  %4771 = vmatprep.subr.bf16.mxu1 %v4770_v58 }
 0x721   : > { %4287 = vmatprep.mubr.f32.mxu0 %v4996_v9  ;;  %4757 = vmatpush3.bf16.msra.mxu0 %v4756_v63 }
 0x722   : > { %4759 = vmatprep.subr.bf16.mxu0 %v4758_v48 }
 0x723   : > { %4773 = vmatpush3.bf16.msra.mxu1 %v4770_v58 }
 0x724   : > { %4288 = vmatmul.mubr.f32.gmra.mrb[78].mxu0 %v4997_v53  ;;  %4775 = vmatprep.subr.bf16.mxu1 %v4774_v46 }
 0x725   : > { %2636 = vmatprep.mubr.f32.mxu0 %v2370_v10  ;;  %4761 = vmatpush3.bf16.msra.mxu0 %v4760_v12  ;;  %v2742_v10 = vld [vmem:[#allocation13 + $0x48] sm:$0xff] }
 0x726   : > { %v4778_v16 = vpack.c.bf16 %v2742_v10, %v2741_v8 }
 0x727   : > { %4777 = vmatpush3.bf16.msra.mxu1 %v4774_v46 }
 0x728   : > { %4779 = vmatprep.subr.bf16.mxu1 %v4778_v16 }
 0x72b   : > { %4781 = vmatpush3.bf16.msra.mxu1 %v4778_v16 }
 0x72c   : > { %4783 = vmatprep.subr.bf16.mxu1 %v4782_v44 }
 0x72f   : > { %4785 = vmatpush3.bf16.msra.mxu1 %v4782_v44 }
 0x7db   : > { %v4268_v13 = vpop.f32.mrb[64].mxu0 }
 0x7dc   : > { %v2487_v25 = vpop.f32.mrb[65].mxu0 }
 0x7dd   : > { %2637 = vmatmul.mubr.f32.vlgmr.msra.gmra.mrb[80].mxu0 %v2487_v25 }
 0x7de   : > { %2641 = vmatprep.mubr.f32.mxu0 %v2371_v47 }
 0x7df   : > { %v4271_v5 = vpop.f32.mrb[66].mxu0 }
 0x7e0   : > { %v2497_v56 = vpop.f32.mrb[67].mxu0 }
 0x7e1   : > { %2642 = vmatmul.mubr.f32.gmra.mrb[82].mxu0 %v4268_v13 }
 0x7e2   : > { %2646 = vmatprep.mubr.f32.mxu0 %v2372_v38 }
 0x7e3   : > { %v4274_v0 = vpop.f32.mrb[68].mxu0 }
 0x7e4   : > { %v2507_v52 = vpop.f32.mrb[69].mxu0 }
 0x7e5   : > { %2647 = vmatmul.mubr.f32.gmra.mrb[84].mxu0 %v2497_v56 }
 0x7e6   : > { %2651 = vmatprep.mubr.f32.mxu0 %v2373_v11 }
 0x7e7   : > { %v4277_v23 = vpop.f32.mrb[70].mxu0 }
 0x7e8   : > { %v2517_v34 = vpop.f32.mrb[71].mxu0 }
 0x7e9   : > { %2652 = vmatmul.mubr.f32.gmra.mrb[86].mxu0 %v4271_v5 }
 0x7ea   : > { %2656 = vmatprep.mubr.f32.mxu0 %v2374_v36 }
 0x7eb   : > { %v4280_v22 = vpop.f32.mrb[72].mxu0 }
 0x7ec   : > { %v2527_v47 = vpop.f32.mrb[73].mxu0 }
 0x7ed   : > { %2657 = vmatmul.mubr.f32.gmra.mrb[88].mxu0 %v2507_v52 }
 0x7ee   : > { %2661 = vmatprep.mubr.f32.mxu0 %v2375_v61  ;;  %v2746_v61 = vld [vmem:[#allocation13 + $0x68] sm:$0xff] }
 0x7ef   : > { %v4283_v1 = vpop.f32.mrb[74].mxu0  ;;  %v4786_v39 = vpack.c.bf16 %v2746_v61, %v2745_v7 }
 0x7f0   : > { %v2537_v38 = vpop.f32.mrb[75].mxu0 }
 0x7f1   : > { %2662 = vmatmul.mubr.f32.gmra.mrb[90].mxu0 %v4274_v0  ;;  %4787 = vmatprep.subr.bf16.mxu1 %v4786_v39 }
 0x7f2   : > { %2666 = vmatprep.mubr.f32.mxu0 %v2376_v17  ;;  %4789 = vmatpush3.bf16.msra.mxu1 %v4786_v39  ;;  %v2748_v17 = vld [vmem:[#allocation13 + $0x78] sm:$0xff] }
 0x7f3   : > { %v4286_v26 = vpop.f32.mrb[76].mxu0 }
 0x7f4   : > { %v2547_v11 = vpop.f32.mrb[77].mxu0 }
 0x7f5   : > { %2667 = vmatmul.mubr.f32.gmra.mrb[92].mxu0 %v2517_v34 }
 0x7f6   : > { %2671 = vmatprep.mubr.f32.mxu0 %v2377_v20  ;;  %v4790_v20 = vpack.c.bf16 %v2748_v17, %v2747_v19 }
 0x7f7   : > { %v4289_v50 = vpop.f32.mrb[78].mxu0 }
 0x7f8   : > { %v2557_v36 = vpop.f32.mrb[79].mxu0  ;;  %4791 = vmatprep.subr.bf16.mxu1 %v4790_v20 }
 0x7f9   : > { %2672 = vmatmul.mubr.f32.gmra.mrb[94].mxu0 %v4277_v23  ;;  %4793 = vmatpush3.bf16.msra.mxu1 %v4790_v20 }
 0x7fa   : > { %2676 = vmatprep.mubr.f32.mxu0 %v2378_v18 }
 0x7fd   : > { %2677 = vmatmul.mubr.f32.gmra.mrb[96].mxu0 %v2527_v47 }
 0x7fe   : > { %2681 = vmatprep.mubr.f32.mxu0 %v2379_v6 }
 0x801   : > { %2682 = vmatmul.mubr.f32.gmra.mrb[98].mxu0 %v4280_v22 }
 0x802   : > { %2686 = vmatprep.mubr.f32.mxu0 %v2380_v35 }
 0x805   : > { %2687 = vmatmul.mubr.f32.gmra.mrb[100].mxu0 %v2537_v38 }
 0x806   : > { %2691 = vmatprep.mubr.f32.mxu0 %v2381_v55 }
 0x809   : > { %2692 = vmatmul.mubr.f32.gmra.mrb[102].mxu0 %v4283_v1 }
 0x80a   : > { %2696 = vmatprep.mubr.f32.mxu0 %v2382_v49 }
 0x80d   : > { %2697 = vmatmul.mubr.f32.gmra.mrb[104].mxu0 %v2547_v11 }
 0x80e   : > { %2701 = vmatprep.mubr.f32.mxu0 %v2383_v32 }
 0x811   : > { %2702 = vmatmul.mubr.f32.gmra.mrb[106].mxu0 %v4286_v26 }
 0x812   : > { %2706 = vmatprep.mubr.f32.mxu0 %v2384_v2 }
 0x815   : > { %2707 = vmatmul.mubr.f32.gmra.mrb[108].mxu0 %v2557_v36 }
 0x816   : > { %2711 = vmatprep.mubr.f32.mxu0 %v2385_v51 }
 0x819   : > { %2712 = vmatmul.mubr.f32.gmra.mrb[110].mxu0 %v4289_v50 }
 0x8b0   : > { %v3650_v3 = vpop.f32.mrb[80].mxu0 }
 0x8b1   : > { %v3651_v18 = vpop.f32.mrb[81].mxu0 }
 0x8b2   : > { %v3652_v6 = vadd.f32 %v3651_v18, %v3650_v3 }
 0x8b4   : > { %v2639_v14 = vadd.f32 %v3652_v6, %v6309_v28  ;;  %v3653_v4 = vpop.f32.mrb[82].mxu0 }
 0x8b5   : > { %v3654_v35 = vpop.f32.mrb[83].mxu0 }
 0x8b6   : > { %v2717_v55 = vmax.f32 %v2639_v14, 0.0  ;;  %v3655_v21 = vadd.f32 %v3654_v35, %v3653_v4 }
 0x8b8   : > { %v2644_v54 = vadd.f32 %v3655_v21, %v6309_v28  ;;  %v3656_v49 = vpop.f32.mrb[84].mxu0  ;;  %4322 = vmatprep.mubr.f32.mxu1 %v2717_v55 }
 0x8b9   : > { %v3657_v32 = vpop.f32.mrb[85].mxu0 }
 0x8ba   : > { %v2718_v33 = vmax.f32 %v2644_v54, 0.0  ;;  %v3658_v30 = vadd.f32 %v3657_v32, %v3656_v49 }
 0x8bc   : > { %v2649_v2 = vadd.f32 %v3658_v30, %v6309_v28  ;;  %v3659_v51 = vpop.f32.mrb[86].mxu0  ;;  %4323 = vmatmul.mubr.f32.vlgmr.msra.gmra.mrb[64].mxu1 %v2718_v33 }
 0x8bd   : > { %v3660_v63 = vpop.f32.mrb[87].mxu0 }
 0x8be   : > { %v2719_v48 = vmax.f32 %v2649_v2, 0.0  ;;  %v3661_v15 = vadd.f32 %v3660_v63, %v3659_v51 }
 0x8c0   : > { %v2654_v62 = vadd.f32 %v3661_v15, %v6309_v28  ;;  %v3662_v57 = vpop.f32.mrb[88].mxu0  ;;  %4325 = vmatprep.mubr.f32.mxu1 %v2719_v48 }
 0x8c1   : > { %v3663_v9 = vpop.f32.mrb[89].mxu0 }
 0x8c2   : > { %v2720_v12 = vmax.f32 %v2654_v62, 0.0  ;;  %v3664_v53 = vadd.f32 %v3663_v9, %v3662_v57  ;;  %v6330_v62 = vld [vmem:[%s6457_s9] ss:$0 sm:$0xff]  ;;  %v4998_v57 = vld [vmem:[%s5760_s11 + $0x8] sm:$0xff] }
 0x8c4   : > { %v2659_v37 = vadd.f32 %v3664_v53, %v6309_v28  ;;  %v3665_v43 = vpop.f32.mrb[90].mxu0  ;;  %4326 = vmatmul.mubr.f32.gmra.mrb[66].mxu1 %v2720_v12  ;;  %v4999_v53 = vld [vmem:[%s5760_s11] sm:$0xff] }
 0x8c5   : > { %v3666_v59 = vpop.f32.mrb[91].mxu0 }
 0x8c6   : > { %v2721_v29 = vmax.f32 %v2659_v37, 0.0  ;;  %v3667_v31 = vadd.f32 %v3666_v59, %v3665_v43 }
 0x8c8   : > { %v2664_v40 = vadd.f32 %v3667_v31, %v6309_v28  ;;  %v3668_v41 = vpop.f32.mrb[92].mxu0  ;;  %4328 = vmatprep.mubr.f32.mxu1 %v2721_v29 }
 0x8c9   : > { %v3669_v42 = vpop.f32.mrb[93].mxu0 }
 0x8ca   : > { %v2722_v58 = vmax.f32 %v2664_v40, 0.0  ;;  %v3670_v60 = vadd.f32 %v3669_v42, %v3668_v41 }
 0x8cc   : > { %v2669_v27 = vadd.f32 %v3670_v60, %v6309_v28  ;;  %v3671_v46 = vpop.f32.mrb[94].mxu0  ;;  %4329 = vmatmul.mubr.f32.gmra.mrb[68].mxu1 %v2722_v58 }
 0x8cd   : > { %v3672_v8 = vpop.f32.mrb[95].mxu0 }
 0x8ce   : > { %v2723_v10 = vmax.f32 %v2669_v27, 0.0  ;;  %v3673_v16 = vadd.f32 %v3672_v8, %v3671_v46 }
 0x8d0   : > { %v2674_v24 = vadd.f32 %v3673_v16, %v6309_v28  ;;  %v3674_v45 = vpop.f32.mrb[96].mxu0  ;;  %4331 = vmatprep.mubr.f32.mxu1 %v2723_v10 }
 0x8d1   : > { %v3675_v44 = vpop.f32.mrb[97].mxu0 }
 0x8d2   : > { %v2724_v13 = vmax.f32 %v2674_v24, 0.0  ;;  %v3676_v25 = vadd.f32 %v3675_v44, %v3674_v45 }
 0x8d4   : > { %v2679_v5 = vadd.f32 %v3676_v25, %v6309_v28  ;;  %v3677_v56 = vpop.f32.mrb[98].mxu0  ;;  %4332 = vmatmul.mubr.f32.gmra.mrb[70].mxu1 %v2724_v13 }
 0x8d5   : > { %v3678_v0 = vpop.f32.mrb[99].mxu0 }
 0x8d6   : > { %v2725_v52 = vmax.f32 %v2679_v5, 0.0  ;;  %v3679_v23 = vadd.f32 %v3678_v0, %v3677_v56 }
 0x8d8   : > { %v2684_v34 = vadd.f32 %v3679_v23, %v6309_v28  ;;  %v3680_v22 = vpop.f32.mrb[100].mxu0  ;;  %4334 = vmatprep.mubr.f32.mxu1 %v2725_v52 }
 0x8d9   : > { %v3681_v47 = vpop.f32.mrb[101].mxu0 }
 0x8da   : > { %v2726_v1 = vmax.f32 %v2684_v34, 0.0  ;;  %v3682_v38 = vadd.f32 %v3681_v47, %v3680_v22 }
 0x8dc   : > { %v2689_v26 = vadd.f32 %v3682_v38, %v6309_v28  ;;  %v3683_v11 = vpop.f32.mrb[102].mxu0  ;;  %4335 = vmatmul.mubr.f32.gmra.mrb[72].mxu1 %v2726_v1 }
 0x8dd   : > { %v3684_v50 = vpop.f32.mrb[103].mxu0 }
 0x8de   : > { %v2727_v36 = vmax.f32 %v2689_v26, 0.0  ;;  %v3685_v7 = vadd.f32 %v3684_v50, %v3683_v11 }
 0x8e0   : > { %v2694_v61 = vadd.f32 %v3685_v7, %v6309_v28  ;;  %v3686_v39 = vpop.f32.mrb[104].mxu0  ;;  %4337 = vmatprep.mubr.f32.mxu1 %v2727_v36 }
 0x8e1   : > { %v3687_v19 = vpop.f32.mrb[105].mxu0 }
 0x8e2   : > { %v2728_v17 = vmax.f32 %v2694_v61, 0.0  ;;  %v3688_v20 = vadd.f32 %v3687_v19, %v3686_v39 }
 0x8e4   : > { %v2699_v3 = vadd.f32 %v3688_v20, %v6309_v28  ;;  %v3689_v18 = vpop.f32.mrb[106].mxu0  ;;  %4338 = vmatmul.mubr.f32.gmra.mrb[74].mxu1 %v2728_v17 }
 0x8e5   : > { %v3690_v6 = vpop.f32.mrb[107].mxu0 }
 0x8e6   : > { %v2729_v14 = vmax.f32 %v2699_v3, 0.0  ;;  %v3691_v4 = vadd.f32 %v3690_v6, %v3689_v18 }
 0x8e8   : > { %v2704_v35 = vadd.f32 %v3691_v4, %v6309_v28  ;;  %v3692_v55 = vpop.f32.mrb[108].mxu0  ;;  %4340 = vmatprep.mubr.f32.mxu1 %v2729_v14 }
 0x8e9   : > { %v3693_v21 = vpop.f32.mrb[109].mxu0 }
 0x8ea   : > { %v2730_v54 = vmax.f32 %v2704_v35, 0.0  ;;  %v3694_v49 = vadd.f32 %v3693_v21, %v3692_v55 }
 0x8ec   : > { %v2709_v32 = vadd.f32 %v3694_v49, %v6309_v28  ;;  %v3695_v33 = vpop.f32.mrb[110].mxu0  ;;  %4341 = vmatmul.mubr.f32.gmra.mrb[76].mxu1 %v2730_v54 }
 0x8ed   : > { %v3696_v30 = vpop.f32.mrb[111].mxu0 }
 0x8ee   : > { %v2731_v2 = vmax.f32 %v2709_v32, 0.0  ;;  %v3697_v51 = vadd.f32 %v3696_v30, %v3695_v33 }
 0x8f0   : > { %v2714_v63 = vadd.f32 %v3697_v51, %v6309_v28  ;;  %4343 = vmatprep.mubr.f32.mxu1 %v2731_v2 }
 0x8f2   : > { %v2732_v48 = vmax.f32 %v2714_v63, 0.0 }
 0x8f4   : > { %4344 = vmatmul.mubr.f32.gmra.mrb[78].mxu1 %v2732_v48 }
 0x98f   : > { %v4324_v15 = vpop.f32.mrb[64].mxu1 }
 0x990   : > { %v2895_v9 = vadd.f32 %v4998_v57, %v4324_v15  ;;  %v2815_v12 = vpop.f32.mrb[65].mxu1 }
 0x991   : > { %v2894_v37 = vadd.f32 %v4999_v53, %v2815_v12 }
 0x992   : > { %v2918_v28 = vadd.f32 %v6330_v62, %v2895_v9 }
 0x993   : > { %v2917_v43 = vadd.f32 %v6330_v62, %v2894_v37 }
 0x994   : > { %2934 = vst [vmem:[%s5608_s27 + $0x8] sm:$0xff] %v2918_v28  ;;  %2950 = vst [vmem:[%s5617_s18 + $0x8] sm:$0xff] %v2918_v28 }
 0x995   : > { %2933 = vst [vmem:[%s5608_s27] sm:$0xff] %v2917_v43  ;;  %2949 = vst [vmem:[%s5617_s18] sm:$0xff] %v2917_v43 }
 0x997   : > { %v4327_v59 = vpop.f32.mrb[66].mxu1 }
 0x998   : > { %v2825_v40 = vpop.f32.mrb[67].mxu1 }
 0x99c   : > { %v5000_v29 = vld [vmem:[%s5760_s11 + $0x18] sm:$0xff]  ;;  %v5001_v41 = vld [vmem:[%s5760_s11 + $0x10] sm:$0xff] }
 0x99d   : > { %v2897_v31 = vadd.f32 %v5000_v29, %v4327_v59  ;;  %v2896_v42 = vadd.f32 %v5001_v41, %v2825_v40 }
 0x99f   : > { %v2920_v58 = vadd.f32 %v6330_v62, %v2897_v31  ;;  %v2919_v60 = vadd.f32 %v6330_v62, %v2896_v42  ;;  %v4330_v27 = vpop.f32.mrb[68].mxu1 }
 0x9a0   : > { %v2835_v10 = vpop.f32.mrb[69].mxu1 }
 0x9a1   : > { %2936 = vst [vmem:[%s5608_s27 + $0x18] sm:$0xff] %v2920_v58  ;;  %2952 = vst [vmem:[%s5617_s18 + $0x18] sm:$0xff] %v2920_v58 }
 0x9a2   : > { %2935 = vst [vmem:[%s5608_s27 + $0x10] sm:$0xff] %v2919_v60  ;;  %2951 = vst [vmem:[%s5617_s18 + $0x10] sm:$0xff] %v2919_v60 }
 0x9a7   : > { %v4333_v13 = vpop.f32.mrb[70].mxu1 }
 0x9a8   : > { %v2845_v56 = vpop.f32.mrb[71].mxu1 }
 0x9a9   : > { %v5002_v46 = vld [vmem:[%s5760_s11 + $0x28] sm:$0xff]  ;;  %v5003_v16 = vld [vmem:[%s5760_s11 + $0x20] sm:$0xff] }
 0x9aa   : > { %v2899_v8 = vadd.f32 %v5002_v46, %v4330_v27  ;;  %v2898_v24 = vadd.f32 %v5003_v16, %v2835_v10 }
 0x9ac   : > { %v2922_v45 = vadd.f32 %v6330_v62, %v2899_v8  ;;  %v2921_v44 = vadd.f32 %v6330_v62, %v2898_v24 }
 0x9ae   : > { %2938 = vst [vmem:[%s5608_s27 + $0x28] sm:$0xff] %v2922_v45  ;;  %2954 = vst [vmem:[%s5617_s18 + $0x28] sm:$0xff] %v2922_v45 }
 0x9af   : > { %2937 = vst [vmem:[%s5608_s27 + $0x20] sm:$0xff] %v2921_v44  ;;  %2953 = vst [vmem:[%s5617_s18 + $0x20] sm:$0xff] %v2921_v44  ;;  %v4336_v22 = vpop.f32.mrb[72].mxu1 }
 0x9b0   : > { %v2855_v38 = vpop.f32.mrb[73].mxu1 }
 0x9b6   : > { %v5004_v25 = vld [vmem:[%s5760_s11 + $0x38] sm:$0xff]  ;;  %v5005_v0 = vld [vmem:[%s5760_s11 + $0x30] sm:$0xff] }
 0x9b7   : > { %v2901_v5 = vadd.f32 %v5004_v25, %v4333_v13  ;;  %v2900_v52 = vadd.f32 %v5005_v0, %v2845_v56  ;;  %v4339_v7 = vpop.f32.mrb[74].mxu1 }
 0x9b8   : > { %v2865_v19 = vpop.f32.mrb[75].mxu1 }
 0x9b9   : > { %v2924_v23 = vadd.f32 %v6330_v62, %v2901_v5  ;;  %v2923_v34 = vadd.f32 %v6330_v62, %v2900_v52 }
 0x9bb   : > { %2940 = vst [vmem:[%s5608_s27 + $0x38] sm:$0xff] %v2924_v23  ;;  %2956 = vst [vmem:[%s5617_s18 + $0x38] sm:$0xff] %v2924_v23 }
 0x9bc   : > { %2939 = vst [vmem:[%s5608_s27 + $0x30] sm:$0xff] %v2923_v34  ;;  %2955 = vst [vmem:[%s5617_s18 + $0x30] sm:$0xff] %v2923_v34 }
 0x9bf   : > { %v4342_v6 = vpop.f32.mrb[76].mxu1 }
 0x9c0   : > { %v2875_v35 = vpop.f32.mrb[77].mxu1 }
 0x9c3   : > { %v5006_v47 = vld [vmem:[%s5760_s11 + $0x48] sm:$0xff]  ;;  %v5007_v26 = vld [vmem:[%s5760_s11 + $0x40] sm:$0xff] }
 0x9c4   : > { %v2903_v1 = vadd.f32 %v5006_v47, %v4336_v22  ;;  %v2902_v11 = vadd.f32 %v5007_v26, %v2855_v38 }
 0x9c6   : > { %v2926_v50 = vadd.f32 %v6330_v62, %v2903_v1  ;;  %v2925_v36 = vadd.f32 %v6330_v62, %v2902_v11 }
 0x9c7   : > { %v4345_v32 = vpop.f32.mrb[78].mxu1 }
 0x9c8   : > { %2942 = vst [vmem:[%s5608_s27 + $0x48] sm:$0xff] %v2926_v50  ;;  %2958 = vst [vmem:[%s5617_s18 + $0x48] sm:$0xff] %v2926_v50  ;;  %v2885_v2 = vpop.f32.mrb[79].mxu1 }
 0x9c9   : > { %2941 = vst [vmem:[%s5608_s27 + $0x40] sm:$0xff] %v2925_v36  ;;  %2957 = vst [vmem:[%s5617_s18 + $0x40] sm:$0xff] %v2925_v36 }
 0x9d0   : > { %v5008_v61 = vld [vmem:[%s5760_s11 + $0x58] sm:$0xff]  ;;  %v5009_v17 = vld [vmem:[%s5760_s11 + $0x50] sm:$0xff] }
 0x9d1   : > { %v2905_v39 = vadd.f32 %v5008_v61, %v4339_v7  ;;  %v2904_v20 = vadd.f32 %v5009_v17, %v2865_v19 }
 0x9d3   : > { %v2928_v3 = vadd.f32 %v6330_v62, %v2905_v39  ;;  %v2927_v18 = vadd.f32 %v6330_v62, %v2904_v20 }
 0x9d5   : > { %2944 = vst [vmem:[%s5608_s27 + $0x58] sm:$0xff] %v2928_v3  ;;  %2960 = vst [vmem:[%s5617_s18 + $0x58] sm:$0xff] %v2928_v3 }
 0x9d6   : > { %2943 = vst [vmem:[%s5608_s27 + $0x50] sm:$0xff] %v2927_v18  ;;  %2959 = vst [vmem:[%s5617_s18 + $0x50] sm:$0xff] %v2927_v18 }
 0x9dd   : > { %v5010_v14 = vld [vmem:[%s5760_s11 + $0x68] sm:$0xff]  ;;  %v5011_v55 = vld [vmem:[%s5760_s11 + $0x60] sm:$0xff] }
 0x9de   : > { %v2907_v4 = vadd.f32 %v5010_v14, %v4342_v6  ;;  %v2906_v21 = vadd.f32 %v5011_v55, %v2875_v35 }
 0x9e0   : > { %v2930_v54 = vadd.f32 %v6330_v62, %v2907_v4  ;;  %v2929_v49 = vadd.f32 %v6330_v62, %v2906_v21 }
 0x9e2   : > { %2946 = vst [vmem:[%s5608_s27 + $0x68] sm:$0xff] %v2930_v54  ;;  %2962 = vst [vmem:[%s5617_s18 + $0x68] sm:$0xff] %v2930_v54 }
 0x9e3   : > { %2945 = vst [vmem:[%s5608_s27 + $0x60] sm:$0xff] %v2929_v49  ;;  %2961 = vst [vmem:[%s5617_s18 + $0x60] sm:$0xff] %v2929_v49 }
 0x9ea   : > { %v5012_v33 = vld [vmem:[%s5760_s11 + $0x78] sm:$0xff]  ;;  %v5013_v51 = vld [vmem:[%s5760_s11 + $0x70] sm:$0xff]  ;;  %s5208_s11 = scalar_lea.vmem %s6398_s24, 2048 }
 0x9eb   : > { %v2909_v30 = vadd.f32 %v5012_v33, %v4345_v32  ;;  %v2908_v63 = vadd.f32 %v5013_v51, %v2885_v2  ;;  %p5209_p10 = scmp.ne.s32.totalorder %s6398_s24, %s5208_s11  ;;  %p5216_p7 = scmp.lt.s32.totalorder %s5214_s19, %s5208_s11 }
 0x9ed   : > { %v2932_v48 = vadd.f32 %v6330_v62, %v2909_v30  ;;  %v2931_v15 = vadd.f32 %v6330_v62, %v2908_v63  ;;  %p5210_p3 = pnand %p5209_p10, %p6501_p2  ;;  %p5217_p8 = por %p5216_p7, %p5215_p12 }
 0x9ef   : > { %2948 = vst [vmem:[%s5608_s27 + $0x78] sm:$0xff] %v2932_v48  ;;  %2964 = vst [vmem:[%s5617_s18 + $0x78] sm:$0xff] %v2932_v48  ;;  %p5211_p4 = pneg %p5210_p3 }
 0x9f0   : > { %2947 = vst [vmem:[%s5608_s27 + $0x70] sm:$0xff] %v2931_v15  ;;  %2963 = vst [vmem:[%s5617_s18 + $0x70] sm:$0xff] %v2931_v15 }
 0x9f1   : > { %p5218_p11 = pnand %p5217_p8, %p5211_p4 }
 0x9f3   : > { %5221 = shalt.err (!%p5218_p11)
}
 0x9f4   : > { %s5222_s15 = scalar_lea.hbm %s6396_s22, 2048  ;;  %s5226_s28 = scalar_lea.hbm %s6458_s10, 6144 }
 0x9f5   : > { %p5223_p13 = scmp.ne.s32.totalorder %s6396_s22, %s5222_s15  ;;  %p5227_p9 = scmp.lt.u32.totalorder %s6396_s22, %s6458_s10 }
 0x9f6   : > { %p5228_p5 = scmp.lt.u32.totalorder %s5226_s28, %s5222_s15  ;;  %p5230_p10 = scmp.lt.u32.totalorder %s5222_s15, %s6396_s22 }
 0x9f7   : > { %p5224_p1 = pnand %p5223_p13, %p6501_p2 }
 0x9f8   : > { %p5229_p0 = por %p5228_p5, %p5227_p9 }
 0x9f9   : > { %p5225_p6 = pneg %p5224_p1 }
 0x9fa   : > { %p5231_p3 = por %p5230_p10, %p5229_p0 }
 0x9fc   : > { %p5232_p4 = pnand %p5231_p3, %p5225_p6 }
 0x9fe   : > { %5235 = shalt.err (!%p5232_p4)
}
 0x9ff   : > { %s5302_s12 = smov 128   ;;  %s5303_s2 = smov 8  }
 0xa00   : > { %4901 = dma.vmem_to_hbm [thread:$0]  (%p6501_p2), %s6398_s24, 2048, %s6396_s22, %s6407_s17, %s5302_s12, %s5302_s12, %s5303_s2  }
 0xa01 PF: > { %s6502_s13 = sld [smem:[#allocation28_spill]]  ;;  %s6503_s16 = sld [smem:[#allocation26_spill]] }
 0xa02   : > { %s6504_s26 = sld [smem:[#allocation31_spill]] }
 0xa07   : > { %p4939_p12 = scmp.ge.s32.totalorder %s6502_s13, 2  ;;  %s2994_s29 = sand.u32 1, %s6503_s16  }
 0xa08   : > { %p6505_p7 = scmp.ne.s32.totalorder %s6504_s26, 0  ;;  %s2995_s11 = scalar_lea.sflag [#allocation6], %s2994_s29 }
 0xa0a   : > { %p4923_p8 = pnand %p4939_p12, %p6505_p7 }
 0xa0c   : > { %5273 = dma.done.wait (!%p4923_p8), %s2995_s11, 2048  }
 0xa0d   : > { %5275 = vsyncadd (!%p4923_p8), %s2995_s11, 4294965248  ;;  %s6506_s16 = sld [smem:[#allocation29_spill]]  ;;  %s6507_s21 = sld [smem:[#allocation27_spill]] }
 0xa0e   : > { %s6508_s15 = sld [smem:[#allocation30_spill]]  ;;  %s6509_s13 = smov %s5282_s14 }
 0xa13   : > { %p24_p11 = scmp.ge.s32.totalorder %s6506_s16, 5   ;;  %s6510_s14 = smov %s6507_s21 }
 0xa15   :  { %26 = sbr.rel (!%p24_p11) target bundleno = 9 (0x9), region = 127 }
 0xa1c   :  { %3000 = vsyncpa [#allocation5], 1 }
 0xa1d   :  { %3002 = vsyncpa [#allocation5 + $0x1], 1 }
 0xa1e   :  { %3003 = vsyncpa [#allocation8], 1 }
 0xa1f   :  { %3004 = vsyncpa [#allocation11], 1 }
 0xa20   :  { %3005 = vsyncpa [#allocation14], 1 }
 0xa21   :  { %3006 = vsyncpa [#allocation6], 1 }
 0xa22   :  { %3008 = vsyncpa [#allocation6 + $0x1], 1 }
 0xa23   :  { %3009 = vsyncmov [#allocation3] }
 0xa26   :  { %s3010_s23 = vpop.sfrf %3009 }
 0xa27   :  { %p3136_p2 = scmp.ne.s32.totalorder %s3010_s23, 0 }
 0xa29   :  { %3014 = shalt.err (%p3136_p2)  }

// kernel: tpu_custom_call.1
= control target key start
LH: loop header
LB: loop body
LE: loop exit
PB: predicated region body
PF: predicated region fallthrough
CT: control target
= control target key end

     0   :  { %s6448_s0 = inlined_call_operand.hbm [shape: f32[128,128], index: 0, kind: input, shape index: {}]   ;;  %s6449_s1 = inlined_call_operand.hbm [shape: f32[2,128,128], index: 1, kind: input, shape index: {}]   ;;  %s6450_s2 = inlined_call_operand.hbm [shape: f32[128,128], index: 2, kind: input, shape index: {}]   ;;  %s6451_s3 = inlined_call_operand.hbm [shape: f32[384,128], index: 3, kind: input, shape index: {}]   ;;  %s6452_s4 = inlined_call_operand.hbm [shape: f32[384,128], index: 4, kind: input, shape index: {}]   ;;  %s6453_s5 = inlined_call_operand.vmem [shape: f32[1,128], index: 5, kind: input, shape index: {}]   ;;  %s6454_s6 = inlined_call_operand.hbm [shape: f32[3,256,128], index: 6, kind: input, shape index: {}]   ;;  %s6455_s7 = inlined_call_operand.vmem [shape: f32[3,1,128], index: 7, kind: input, shape index: {}]   ;;  %s6456_s8 = inlined_call_operand.hbm [shape: f32[128,128], index: 8, kind: input, shape index: {}]   ;;  %s6457_s9 = inlined_call_operand.vmem [shape: f32[1,128], index: 9, kind: input, shape index: {}]   ;;  %s6458_s10 = inlined_call_operand.hbm [shape: f32[3,128,128], index: 10, kind: output, shape index: {}]  }
   0x1   :  { %6471 = sst [smem:[#allocation32_spill]] %s6450_s2 }
   0x2   :  { %15 = vsyncpa [#allocation5], 0 }
   0x3   :  { %16 = vsyncpa [#allocation8], 0 }
   0x4   :  { %17 = vsyncpa [#allocation11], 0 }
   0x5   :  { %18 = vsyncpa [#allocation14], 0 }
   0x6   :  { %19 = vsyncpa [#allocation6], 0 }
   0x7   :  { %21 = vsyncpa [#allocation6 + $0x1], 0  ;;  %s5359_s13 = smov 0   ;;  %s5361_s14 = smov 0  }
   0x8   :  { %s5363_s15 = smov 0   ;;  %s5365_s16 = smov 0  }
   0x9 LB: > { %6472 = sst [smem:[#allocation26_spill]] %s5278_s13  ;;  %s5380_s17 = sadd.s32 4294967295, %s5290_s16   ;;  %s5290_s16 = sphi %s5365_s16, %s6506_s16   ;;  %s5286_s15 = sphi %s5363_s15, %s6508_s15   ;;  %s5282_s14 = sphi %s5361_s14, %s6510_s14   ;;  %s5278_s13 = sphi %s5359_s13, %s6509_s13  }
   0xa   : > { %6473 = sst [smem:[#allocation27_spill]] %s5286_s15  ;;  %s3099_s18 = sadd.s32 4294967294, %s5290_s16  }
   0xb   : > { %6474 = sst [smem:[#allocation28_spill]] %s5290_s16  ;;  %s5384_s19 = sadd.s32 1, %s5290_s16  }
   0xc   : > { %6475 = sst [smem:[#allocation29_spill]] %s5384_s19  ;;  %s223_s20 = sadd.s32 1, %s5286_s15 }
   0xd   : > { %s220_s21 = ssub.s32 %s5290_s16, %s5384_s19  ;;  %p233_p0 = scmp.ne.s32.totalorder %s5286_s15, %s5282_s14 }
   0xe   : > { %p221_p1 = scmp.eq.s32.totalorder %s220_s21, 0  ;;  %p234_p2 = scmp.eq.s32.totalorder %s5380_s17, 2 }
   0xf   : > { %p239_p3 = scmp.ne.s32.totalorder %s5282_s14, %s5278_s13  ;;  %p240_p4 = scmp.eq.s32.totalorder %s3099_s18, 2 }
  0x10   : > { %s5395_s22 = scalar_select %p221_p1, %s5286_s15, %s223_s20  }
  0x11   : > { %p5397_p5 = por %p234_p2, %p233_p0  ;;  %p5401_p6 = por %p240_p4, %p239_p3 }
  0x12   : > { %6476 = sst [smem:[#allocation30_spill]] %s5395_s22  ;;  %p3100_p7 = scmp.ge.s32.totalorder %s5290_s16, 1 }
  0x13   : > { %s6477_s23 = scalar_select %p5397_p5, 1, 0 }
  0x14   : > { %s6478_s24 = scalar_select %p5401_p6, 1, 0 }
  0x15   : > { %p247_p8 = scmp.lt.s32.totalorder %s5290_s16, 4  ;;  %p6460_p9 = scmp.eq.s32.totalorder %s5380_s17, 0 }
  0x16   : > { %6479 = sst [smem:[#allocation31_spill]] %s6478_s24  ;;  %s5292_s26 = smov [#allocation7]  }
  0x17   : > { %p5408_p10 = pnand %p3100_p7, %p247_p8  ;;  %s272_s27 = sshll.u32 %s5292_s26, 4  ;;  %s5414_s27 = int_to_ptr.vmem [resolvable:$true] %s272_s27 }
  0x18   : > { %s5293_s29 = smov [#allocation10]   ;;  %s5294_s11 = smov [#allocation4]  }
  0x19   : > { %s6480_s25 = scalar_select %p5408_p10, 1, 0 }
  0x1a   : > { %p4903_p11 = pneg %p5408_p10  ;;  %s298_s30 = sshll.u32 %s5293_s29, 4  ;;  %s5422_s30 = int_to_ptr.vmem [resolvable:$true] %s298_s30 }
  0x1b   : > { %s5424_s12 = sshll.u32 %s5294_s11, 4  ;;  %s6482_s2 = sld [smem:[#allocation32_spill]]  ;;  %s260_s12 = int_to_ptr.vmem [resolvable:$true] %s5424_s12 }
  0x1c   : > { %p5418_p12 = pnand %p6460_p9, %p4903_p11 }
  0x1e   : > { %p5434_p0 = pneg %p5418_p12 }
  0x21   : > { %s5014_s21 = scalar_lea.hbm %s6482_s2, 2048 }
  0x22   : > { %p5015_p13 = scmp.ne.s32.totalorder %s6482_s2, %s5014_s21  ;;  %p5021_p3 = scmp.lt.u32.totalorder %s5014_s21, %s6482_s2 }
  0x24   : > { %p5017_p1 = pnand %p5434_p0, %p5015_p13 }
  0x26   : > { %p5018_p2 = pneg %p5017_p1 }
  0x28   : > { %p5023_p4 = pnand %p5021_p3, %p5018_p2 }
  0x2a   : > { %5026 = shalt.err (!%p5023_p4)
}
  0x2b   : > { %s5027_s22 = scalar_lea.vmem %s5414_s27, 2048  ;;  %p5035_p9 = scmp.lt.s32.totalorder %s5414_s27, %s5414_s27 }
  0x2c   : > { %p5028_p7 = scmp.ne.s32.totalorder %s5414_s27, %s5027_s22  ;;  %p5036_p6 = scmp.lt.s32.totalorder %s5027_s22, %s5027_s22 }
  0x2e   : > { %p5030_p8 = pnand %p5028_p7, %p5434_p0  ;;  %p5037_p13 = por %p5036_p6, %p5035_p9 }
  0x30   : > { %p5031_p11 = pneg %p5030_p8 }
  0x32   : > { %p5038_p1 = pnand %p5037_p13, %p5031_p11 }
  0x34   : > { %5041 = shalt.err (!%p5038_p1)
}
  0x35   : > { %s5295_s18 = smov 128   ;;  %s5296_s20 = smov 8  }
  0x36   : > { %4909 = dma.hbm_to_vmem [thread:$0]  (!%p5418_p12), %s6482_s2, 2048, %s5414_s27, [#allocation8], %s5295_s18, %s5295_s18, %s5296_s20  }
  0x37   : > { %s5042_s22 = scalar_lea.hbm %s6452_s4, 6144 }
  0x38   : > { %p5043_p6 = scmp.ne.s32.totalorder %s6452_s4, %s5042_s22  ;;  %p5049_p3 = scmp.lt.u32.totalorder %s5042_s22, %s6452_s4 }
  0x3a   : > { %p5045_p9 = pnand %p5043_p6, %p5434_p0 }
  0x3c   : > { %p5046_p2 = pneg %p5045_p9 }
  0x3e   : > { %p5051_p4 = pnand %p5049_p3, %p5046_p2 }
  0x40   : > { %5054 = shalt.err (!%p5051_p4)
}
  0x41   : > { %s5055_s27 = scalar_lea.vmem %s5422_s30, 6144  ;;  %p5063_p13 = scmp.lt.s32.totalorder %s5422_s30, %s5422_s30 }
  0x42   : > { %p5056_p7 = scmp.ne.s32.totalorder %s5422_s30, %s5055_s27  ;;  %p5064_p1 = scmp.lt.s32.totalorder %s5055_s27, %s5055_s27 }
  0x44   : > { %p5058_p8 = pnand %p5056_p7, %p5434_p0  ;;  %p5065_p6 = por %p5064_p1, %p5063_p13 }
  0x46   : > { %p5059_p11 = pneg %p5058_p8 }
  0x48   : > { %p5066_p9 = pnand %p5065_p6, %p5059_p11 }
  0x4a   : > { %5069 = shalt.err (!%p5066_p9)
}
  0x4b   : > { %4915 = dma.hbm_to_vmem [thread:$0]  (!%p5418_p12), %s6452_s4, 6144, %s5422_s30, [#allocation11], %s5295_s18, %s5295_s18, %s5296_s20  }
  0x4c   : > { %s5070_s21 = scalar_lea.hbm %s6448_s0, 2048 }
  0x4d   : > { %p5071_p2 = scmp.ne.s32.totalorder %s6448_s0, %s5070_s21  ;;  %p5077_p7 = scmp.lt.u32.totalorder %s5070_s21, %s6448_s0 }
  0x4f   : > { %p5073_p3 = pnand %p5071_p2, %p5434_p0 }
  0x51   : > { %p5074_p4 = pneg %p5073_p3 }
  0x53   : > { %p5079_p8 = pnand %p5077_p7, %p5074_p4 }
  0x55   : > { %5082 = shalt.err (!%p5079_p8)
}
  0x56   : > { %s5083_s27 = scalar_lea.vmem %s260_s12, 2048  ;;  %p5091_p6 = scmp.lt.s32.totalorder %s260_s12, %s260_s12 }
  0x57   : > { %p5084_p11 = scmp.ne.s32.totalorder %s260_s12, %s5083_s27  ;;  %p5092_p9 = scmp.lt.s32.totalorder %s5083_s27, %s5083_s27 }
  0x59   : > { %p5086_p13 = pnand %p5084_p11, %p5434_p0  ;;  %p5093_p5 = por %p5092_p9, %p5091_p6 }
  0x5b   : > { %p5087_p1 = pneg %p5086_p13 }
  0x5d   : > { %p5094_p10 = pnand %p5093_p5, %p5087_p1 }
  0x5f   : > { %5097 = shalt.err (!%p5094_p10)
}
  0x60   : > { %4906 = dma.hbm_to_vmem [thread:$0]  (!%p5418_p12), %s6448_s0, 2048, %s260_s12, [#allocation5], %s5295_s18, %s5295_s18, %s5296_s20  }
  0x61   : > { %s5297_s16 = smov [#allocation9]   ;;  %s5298_s24 = smov [#allocation12]  }
  0x62   : > { %s285_s19 = sshll.u32 %s5297_s16, 4  ;;  %s314_s21 = sshll.u32 %s5298_s24, 4  ;;  %s286_s19 = int_to_ptr.vmem [resolvable:$true] %s285_s19  ;;  %s315_s21 = int_to_ptr.vmem [resolvable:$true] %s314_s21 }
  0x63   : > { %s5098_s11 = scalar_lea.hbm %s6451_s3, 6144 }
  0x64   : > { %p5099_p5 = scmp.ne.s32.totalorder %s6451_s3, %s5098_s11  ;;  %p5105_p3 = scmp.lt.u32.totalorder %s5098_s11, %s6451_s3 }
  0x66   : > { %p5101_p10 = pnand %p5099_p5, %p5434_p0 }
  0x68   : > { %p5102_p2 = pneg %p5101_p10 }
  0x6a   : > { %p5107_p4 = pnand %p5105_p3, %p5102_p2 }
  0x6c   : > { %5110 = shalt.err (!%p5107_p4)
}
  0x6d   : > { %s5111_s12 = scalar_lea.vmem %s286_s19, 6144  ;;  %p5119_p13 = scmp.lt.s32.totalorder %s286_s19, %s286_s19 }
  0x6e   : > { %p5112_p7 = scmp.ne.s32.totalorder %s286_s19, %s5111_s12  ;;  %p5120_p1 = scmp.lt.s32.totalorder %s5111_s12, %s5111_s12 }
  0x70   : > { %p5114_p8 = pnand %p5112_p7, %p5434_p0  ;;  %p5121_p6 = por %p5120_p1, %p5119_p13 }
  0x72   : > { %p5115_p11 = pneg %p5114_p8 }
  0x74   : > { %p5122_p9 = pnand %p5121_p6, %p5115_p11 }
  0x76   : > { %5125 = shalt.err (!%p5122_p9)
}
  0x77   : > { %4912 = dma.hbm_to_vmem [thread:$0]  (!%p5418_p12), %s6451_s3, 6144, %s286_s19, [#allocation8], %s5295_s18, %s5295_s18, %s5296_s20  }
  0x78   : > { %s5126_s26 = scalar_lea.hbm %s6454_s6, 12288 }
  0x79   : > { %p5127_p5 = scmp.ne.s32.totalorder %s6454_s6, %s5126_s26  ;;  %p5133_p3 = scmp.lt.u32.totalorder %s5126_s26, %s6454_s6 }
  0x7b   : > { %p5129_p10 = pnand %p5127_p5, %p5434_p0 }
  0x7d   : > { %p5130_p2 = pneg %p5129_p10 }
  0x7f   : > { %p5135_p4 = pnand %p5133_p3, %p5130_p2 }
  0x81   : > { %5138 = shalt.err (!%p5135_p4)
}
  0x82   : > { %s5139_s30 = scalar_lea.vmem %s315_s21, 12288  ;;  %p5147_p13 = scmp.lt.s32.totalorder %s315_s21, %s315_s21 }
  0x83   : > { %p5140_p7 = scmp.ne.s32.totalorder %s315_s21, %s5139_s30  ;;  %p5148_p1 = scmp.lt.s32.totalorder %s5139_s30, %s5139_s30 }
  0x85   : > { %p5142_p8 = pnand %p5140_p7, %p5434_p0  ;;  %p5149_p6 = por %p5148_p1, %p5147_p13 }
  0x87   : > { %p5143_p11 = pneg %p5142_p8 }
  0x89   : > { %p5150_p9 = pnand %p5149_p6, %p5143_p11 }
  0x8b   : > { %5153 = shalt.err (!%p5150_p9)
}
  0x8c   : > { %4918 = dma.hbm_to_vmem [thread:$0]  (!%p5418_p12), %s6454_s6, 12288, %s315_s21, [#allocation11], %s5295_s18, %s5295_s18, %s5296_s20  }
  0x8d   : > { %s5299_s2 = smov [#allocation13]   ;;  %s5154_s26 = scalar_lea.hbm %s6456_s8, 2048 }
  0x8e   : > { %s330_s13 = sshll.u32 %s5299_s2, 4  ;;  %p5155_p5 = scmp.ne.s32.totalorder %s6456_s8, %s5154_s26  ;;  %s331_s13 = int_to_ptr.vmem [resolvable:$true] %s330_s13 }
  0x8f   : > { %p5161_p3 = scmp.lt.u32.totalorder %s5154_s26, %s6456_s8 }
  0x90   : > { %p5157_p10 = pnand %p5155_p5, %p5434_p0 }
  0x92   : > { %p5158_p2 = pneg %p5157_p10 }
  0x94   : > { %p5163_p4 = pnand %p5161_p3, %p5158_p2 }
  0x96   : > { %5166 = shalt.err (!%p5163_p4)
}
  0x97   : > { %s5167_s21 = scalar_lea.vmem %s331_s13, 2048  ;;  %p5175_p13 = scmp.lt.s32.totalorder %s331_s13, %s331_s13 }
  0x98   : > { %p5168_p7 = scmp.ne.s32.totalorder %s331_s13, %s5167_s21  ;;  %p5176_p1 = scmp.lt.s32.totalorder %s5167_s21, %s5167_s21 }
  0x9a   : > { %p5170_p8 = pnand %p5168_p7, %p5434_p0  ;;  %p5177_p6 = por %p5176_p1, %p5175_p13 }
  0x9c   : > { %p5171_p11 = pneg %p5170_p8 }
  0x9e   : > { %p5178_p9 = pnand %p5177_p6, %p5171_p11 }
  0xa0   : > { %5181 = shalt.err (!%p5178_p9)
}
  0xa1   : > { %4921 = dma.hbm_to_vmem [thread:$0]  (!%p5418_p12), %s6456_s8, 2048, %s331_s13, [#allocation14], %s5295_s18, %s5295_s18, %s5296_s20  }
  0xa2   : > { %p6484_p5 = scmp.ne.s32.totalorder %s6480_s25, 0 }
  0xa3   : > { %p6485_p0 = scmp.eq.s32.totalorder (!%p6484_p5), %s5380_s17, 0 }
  0xa4   : > { %349 = sbr.rel (%p6484_p5) target bundleno = 2561 (0xa01), region = 56 }
  0xab   : > { %5253 = dma.done.wait (%p6485_p0), [#allocation5], 2048   ;;  %p6486_p10 = pmov %p6485_p0 }
  0xac   : > { %p6487_p2 = pmov %p6485_p0 }
  0xad   : > { %5255 = vsyncadd (%p6486_p10), [#allocation5], 4294965248 }
  0xae   : > { %5257 = dma.done.wait (%p6487_p2), [#allocation8], 8192   ;;  %p6488_p3 = pmov %p6485_p0 }
  0xaf   : > { %p6489_p4 = pmov %p6485_p0 }
  0xb0   : > { %5259 = vsyncadd (%p6488_p3), [#allocation8], 4294959104 }
  0xb1   : > { %5261 = dma.done.wait (%p6489_p4), [#allocation11], 18432   ;;  %p6490_p12 = pmov %p6485_p0 }
  0xb2   : > { %p6491_p7 = pmov %p6485_p0 }
  0xb3   : > { %5263 = vsyncadd (%p6490_p12), [#allocation11], 4294948864 }
  0xb4   : > { %5265 = dma.done.wait (%p6491_p7), [#allocation14], 2048   ;;  %p6492_p8 = pmov %p6485_p0 }
  0xb5   : > { %s397_s15 = sand.u32 1, %s5282_s14   ;;  %s5300_s28 = smov [#allocation2]  }
  0xb6   : > { %5267 = vsyncadd (%p6492_p8), [#allocation14], 4294965248  ;;  %s3114_s25 = sshll.u32 %s397_s15, 7  ;;  %s411_s18 = sshll.u32 %s5300_s28, 4  ;;  %s412_s18 = int_to_ptr.vmem [resolvable:$true] %s411_s18 }
  0xb7   : > { %s5182_s2 = scalar_lea.hbm %s6449_s1, 4096  ;;  %p6493_p13 = pmov %p6485_p0 }
  0xb8   : > { %p5183_p11 = scmp.ne.s32.totalorder %s6449_s1, %s5182_s2  ;;  %p5188_p9 = scmp.lt.u32.totalorder %s5182_s2, %s6449_s1 }
  0xba   : > { %p5184_p1 = pnand %p5183_p11, %p6493_p13 }
  0xbc   : > { %p5185_p6 = pneg %p5184_p1 }
  0xbe   : > { %p5190_p5 = pnand %p5188_p9, %p5185_p6 }
  0xc0   : > { %5193 = shalt.err (!%p5190_p5)  }
  0xc1   : > { %s5194_s29 = scalar_lea.vmem %s412_s18, 4096  ;;  %p6494_p10 = pmov %p6487_p2 }
  0xc2   : > { %p5195_p0 = scmp.ne.s32.totalorder %s412_s18, %s5194_s29  ;;  %p5201_p4 = scmp.lt.s32.totalorder %s412_s18, %s412_s18 }
  0xc3   : > { %p5202_p12 = scmp.lt.s32.totalorder %s5194_s29, %s5194_s29 }
  0xc4   : > { %p5196_p2 = pnand %p5195_p0, %p6494_p10 }
  0xc5   : > { %p5203_p7 = por %p5202_p12, %p5201_p4 }
  0xc6   : > { %p5197_p3 = pneg %p5196_p2 }
  0xc8   : > { %p5204_p8 = pnand %p5203_p7, %p5197_p3 }
  0xca   : > { %5207 = shalt.err (!%p5204_p8)  }
  0xcb   : > { %p6495_p11 = pmov %p6494_p10  ;;  %s5608_s27 = scalar_lea.vmem [#allocation15], %s3114_s25 }
  0xcc   : > { %p6496_p13 = pmov %p6494_p10 }
  0xcd   : > { %4899 = dma.hbm_to_vmem [thread:$0]  (%p6495_p11), %s6449_s1, 4096, %s412_s18, [#allocation3] }
  0xce   : > { %5269 = dma.done.wait (%p6496_p13), [#allocation3], 4096  ;;  %p6497_p1 = pmov %p6494_p10 }
  0xcf   : > { %p514_p6 = scmp.lt.s32.totalorder %s5380_s17, 0  ;;  %s515_s21 = ssub.s32 0, %s5380_s17  ;;  %v544_v0 = vld [vmem:[#allocation9] sm:$0xff]  ;;  %v545_v1 = vld [vmem:[#allocation9 + $0x8] sm:$0xff]  ;;  %v546_v2 = vld [vmem:[#allocation9 + $0x10] sm:$0xff] }
  0xd0   : > { %5271 = vsyncadd (%p6497_p1), [#allocation3], 4294963200  ;;  %s3120_s30 = smin.u32 %s5380_s17, %s515_s21  ;;  %v4346_v3 = vpack.c.bf16 %v545_v1, %v544_v0  ;;  %v547_v4 = vld [vmem:[#allocation9 + $0x18] sm:$0xff]  ;;  %v548_v6 = vld [vmem:[#allocation9 + $0x20] sm:$0xff]  ;;  %s5680_s12 = sadd.s32 1, %s5380_s17 }
  0xd1   : > { %s517_s19 = sand.u32 1, %s3120_s30   ;;  %v4350_v5 = vpack.c.bf16 %v547_v4, %v546_v2  ;;  %v549_v7 = vld [vmem:[#allocation9 + $0x28] sm:$0xff]  ;;  %v550_v10 = vld [vmem:[#allocation9 + $0x30] sm:$0xff]  ;;  %v551_v11 = vld [vmem:[#allocation9 + $0x38] sm:$0xff]  ;;  %s453_s2 = ssub.s32 0, %s5680_s12 }
  0xd2   : > { %s518_s28 = ssub.s32 0, %s517_s19  ;;  %4347 = vmatprep.subr.bf16.mxu0 %v4346_v3  ;;  %v4354_v8 = vpack.c.bf16 %v549_v7, %v548_v6  ;;  %v4358_v12 = vpack.c.bf16 %v551_v11, %v550_v10  ;;  %v552_v13 = vld [vmem:[#allocation9 + $0x40] sm:$0xff]  ;;  %v553_v14 = vld [vmem:[#allocation9 + $0x48] sm:$0xff]  ;;  %v554_v16 = vld [vmem:[#allocation9 + $0x50] sm:$0xff]  ;;  %s5692_s13 = smin.u32 %s453_s2, %s5680_s12 }
  0xd3   : > { %s6512_s28 = smov (!%p514_p6, %s518_s28), %s517_s19  ;;  %4349 = vmatpush3.bf16.msra.mxu0 %v4346_v3  ;;  %v4362_v15 = vpack.c.bf16 %v553_v14, %v552_v13  ;;  %v555_v17 = vld [vmem:[#allocation9 + $0x58] sm:$0xff]  ;;  %v556_v19 = vld [vmem:[#allocation9 + $0x60] sm:$0xff]  ;;  %v557_v20 = vld [vmem:[#allocation9 + $0x68] sm:$0xff]  ;;  %s455_s16 = sand.u32 1, %s5692_s13  }
  0xd4   : > { %p3122_p9 = scmp.lt.s32.totalorder %s6512_s28, 0  ;;  %s524_s20 = sadd.s32 2, %s6512_s28  ;;  %4351 = vmatprep.subr.bf16.mxu0 %v4350_v5  ;;  %v4366_v18 = vpack.c.bf16 %v555_v17, %v554_v16  ;;  %v4370_v21 = vpack.c.bf16 %v557_v20, %v556_v19  ;;  %v558_v22 = vld [vmem:[#allocation9 + $0x70] sm:$0xff]  ;;  %v559_v23 = vld [vmem:[#allocation9 + $0x78] sm:$0xff]  ;;  %v482_v25 = vld [vmem:[#allocation9 + $0x100] sm:$0xff] }
  0xd5   : > { %v4374_v24 = vpack.c.bf16 %v559_v23, %v558_v22  ;;  %v483_v26 = vld [vmem:[#allocation9 + $0x108] sm:$0xff]  ;;  %v484_v28 = vld [vmem:[#allocation9 + $0x110] sm:$0xff]  ;;  %v485_v29 = vld [vmem:[#allocation9 + $0x118] sm:$0xff]  ;;  %p452_p5 = scmp.lt.s32.totalorder %s5680_s12, 0  ;;  %s456_s24 = ssub.s32 0, %s455_s16 }
  0xd6   : > { %s6514_s20 = smov (!%p3122_p9, %s524_s20), %s6512_s28  ;;  %v4378_v27 = vpack.c.bf16 %v483_v26, %v482_v25  ;;  %v850_v31 = vld [vmem:[#allocation10] sm:$0xff]  ;;  %v851_v32 = vld [vmem:[#allocation10 + $0x8] sm:$0xff]  ;;  %v852_v33 = vld [vmem:[#allocation10 + $0x10] sm:$0xff]  ;;  %v4382_v35 = vpack.c.bf16 %v485_v29, %v484_v28  ;;  %p6501_p2 = scmp.ne.s32.totalorder %s6477_s23, 0 }
  0xd7   : > { %s3123_s25 = sshll.u32 %s6514_s20, 7  ;;  %4353 = vmatpush3.bf16.msra.mxu0 %v4350_v5  ;;  %v4410_v36 = vpack.c.bf16 %v851_v32, %v850_v31  ;;  %v853_v37 = vld [vmem:[#allocation10 + $0x18] sm:$0xff]  ;;  %v486_v38 = vld [vmem:[#allocation9 + $0x120] sm:$0xff]  ;;  %v487_v39 = vld [vmem:[#allocation9 + $0x128] sm:$0xff]  ;;  %s6516_s24 = smov (!%p452_p5, %s456_s24), %s455_s16 }
  0xd8   : > { %s5617_s18 = scalar_lea.vmem [#allocation2], %s3123_s25  ;;  %4355 = vmatprep.subr.bf16.mxu0 %v4354_v8  ;;  %v4414_v40 = vpack.c.bf16 %v853_v37, %v852_v33  ;;  %v854_v41 = vld [vmem:[#allocation10 + $0x20] sm:$0xff]  ;;  %v855_v42 = vld [vmem:[#allocation10 + $0x28] sm:$0xff]  ;;  %v4386_v45 = vpack.c.bf16 %v487_v39, %v486_v38  ;;  %v488_v46 = vld [vmem:[#allocation9 + $0x130] sm:$0xff]  ;;  %p3118_p0 = scmp.lt.s32.totalorder %s6516_s24, 0 }
  0xd9   : > { %v528_v9 = vld [vmem:[%s5617_s18] sm:$0xff]  ;;  %v5621_v30 = vld [vmem:[%s5617_s18 + $0x8] sm:$0xff]  ;;  %v5624_v34 = vld [vmem:[%s5617_s18 + $0x10] sm:$0xff]  ;;  %4411 = vmatprep.subr.bf16.mxu1 %v4410_v36  ;;  %v4418_v48 = vpack.c.bf16 %v855_v42, %v854_v41  ;;  %s462_s26 = sadd.s32 2, %s6516_s24  ;;  %s3137_s16 = sshll.u32 %s5380_s17, 11 }
  0xda   : > { %3762 = vmatprep.mubr.f32.mxu0 %v528_v9  ;;  %3874 = vmatprep.mubr.f32.mxu1 %v528_v9  ;;  %v5629_v43 = vld [vmem:[%s5617_s18 + $0x18] sm:$0xff]  ;;  %v5632_v44 = vld [vmem:[%s5617_s18 + $0x20] sm:$0xff]  ;;  %v856_v49 = vld [vmem:[#allocation10 + $0x30] sm:$0xff]  ;;  %s6518_s26 = smov (!%p3118_p0, %s462_s26), %s6516_s24  ;;  %s2979_s24 = sshll.u32 %s5608_s27, 4  ;;  %s6398_s24 = int_to_ptr.vmem [resolvable:$true] %s2979_s24 }
  0xdb   : > { %4357 = vmatpush3.bf16.msra.mxu0 %v4354_v8  ;;  %4413 = vmatpush3.bf16.msra.mxu1 %v4410_v36  ;;  %v489_v47 = vld [vmem:[#allocation9 + $0x138] sm:$0xff]  ;;  %v5637_v51 = vld [vmem:[%s5617_s18 + $0x28] sm:$0xff]  ;;  %v5640_v52 = vld [vmem:[%s5617_s18 + $0x30] sm:$0xff]  ;;  %s3119_s29 = sshll.u32 %s6518_s26, 7  ;;  %s6396_s22 = scalar_lea.hbm %s6458_s10, %s3137_s16 }
  0xdc   : > { %4359 = vmatprep.subr.bf16.mxu0 %v4358_v12  ;;  %4415 = vmatprep.subr.bf16.mxu1 %v4414_v40  ;;  %v857_v50 = vld [vmem:[#allocation10 + $0x38] sm:$0xff]  ;;  %v4390_v53 = vpack.c.bf16 %v489_v47, %v488_v46  ;;  %v490_v54 = vld [vmem:[#allocation9 + $0x140] sm:$0xff]  ;;  %v491_v55 = vld [vmem:[#allocation9 + $0x148] sm:$0xff]  ;;  %s5760_s11 = scalar_lea.vmem [#allocation2], %s3119_s29  ;;  %s6407_s17 = scalar_lea.sflag [#allocation6], %s397_s15 }
  0xdd   : > { %v4422_v56 = vpack.c.bf16 %v857_v50, %v856_v49  ;;  %v858_v57 = vld [vmem:[#allocation10 + $0x40] sm:$0xff]  ;;  %v859_v58 = vld [vmem:[#allocation10 + $0x48] sm:$0xff]  ;;  %v5645_v59 = vld [vmem:[%s5617_s18 + $0x38] sm:$0xff]  ;;  %v4394_v61 = vpack.c.bf16 %v491_v55, %v490_v54  ;;  %s5301_s21 = smov [#allocation15]  }
  0xde   : > { %v5648_v60 = vld [vmem:[%s5617_s18 + $0x40] sm:$0xff]  ;;  %v492_v62 = vld [vmem:[#allocation9 + $0x150] sm:$0xff]  ;;  %v493_v63 = vld [vmem:[#allocation9 + $0x158] sm:$0xff]  ;;  %v4426_v0 = vpack.c.bf16 %v859_v58, %v858_v57  ;;  %s5212_s30 = sshll.u32 %s5301_s21, 4  ;;  %s5213_s30 = int_to_ptr.vmem [resolvable:$false] %s5212_s30 }
  0xdf   : > { %4361 = vmatpush3.bf16.msra.mxu0 %v4358_v12  ;;  %4417 = vmatpush3.bf16.msra.mxu1 %v4414_v40  ;;  %v860_v1 = vld [vmem:[#allocation10 + $0x50] sm:$0xff]  ;;  %v861_v2 = vld [vmem:[#allocation10 + $0x58] sm:$0xff]  ;;  %v5653_v3 = vld [vmem:[%s5617_s18 + $0x48] sm:$0xff]  ;;  %v4398_v5 = vpack.c.bf16 %v493_v63, %v492_v62  ;;  %s5214_s19 = scalar_lea.vmem %s5213_s30, 4096  ;;  %p5215_p12 = scmp.lt.s32.totalorder %s6398_s24, %s5213_s30 }
  0xe0   : > { %4363 = vmatprep.subr.bf16.mxu0 %v4362_v15  ;;  %4419 = vmatprep.subr.bf16.mxu1 %v4418_v48  ;;  %v5656_v4 = vld [vmem:[%s5617_s18 + $0x50] sm:$0xff]  ;;  %v494_v6 = vld [vmem:[#allocation9 + $0x160] sm:$0xff]  ;;  %v495_v7 = vld [vmem:[#allocation9 + $0x168] sm:$0xff]  ;;  %v4430_v8 = vpack.c.bf16 %v861_v2, %v860_v1 }
  0xe1   : > { %v862_v9 = vld [vmem:[#allocation10 + $0x60] sm:$0xff]  ;;  %v863_v10 = vld [vmem:[#allocation10 + $0x68] sm:$0xff]  ;;  %v5661_v11 = vld [vmem:[%s5617_s18 + $0x58] sm:$0xff]  ;;  %v4402_v13 = vpack.c.bf16 %v495_v7, %v494_v6 }
  0xe2   : > { %v5664_v12 = vld [vmem:[%s5617_s18 + $0x60] sm:$0xff]  ;;  %v496_v14 = vld [vmem:[#allocation9 + $0x170] sm:$0xff]  ;;  %v4434_v16 = vpack.c.bf16 %v863_v10, %v862_v9  ;;  %v5669_v19 = vld [vmem:[%s5617_s18 + $0x68] sm:$0xff] }
  0xe3   : > { %4365 = vmatpush3.bf16.msra.mxu0 %v4362_v15  ;;  %4421 = vmatpush3.bf16.msra.mxu1 %v4418_v48  ;;  %v497_v15 = vld [vmem:[#allocation9 + $0x178] sm:$0xff]  ;;  %v864_v17 = vld [vmem:[#allocation10 + $0x70] sm:$0xff]  ;;  %v1156_v22 = vld [vmem:[#allocation9 + $0x80] sm:$0xff] }
  0xe4   : > { %4367 = vmatprep.subr.bf16.mxu0 %v4366_v18  ;;  %4423 = vmatprep.subr.bf16.mxu1 %v4422_v56  ;;  %v5672_v20 = vld [vmem:[%s5617_s18 + $0x70] sm:$0xff]  ;;  %v1157_v23 = vld [vmem:[#allocation9 + $0x88] sm:$0xff]  ;;  %v498_v25 = vld [vmem:[#allocation10 + $0x100] sm:$0xff] }
  0xe5   : > { %v499_v26 = vld [vmem:[#allocation10 + $0x108] sm:$0xff]  ;;  %v5682_v28 = vld [vmem:[#allocation7] sm:$0xff]  ;;  %v4474_v29 = vpack.c.bf16 %v1157_v23, %v1156_v22  ;;  %v1158_v31 = vld [vmem:[#allocation9 + $0x90] sm:$0xff] }
  0xe6   : > { %v1159_v32 = vld [vmem:[#allocation9 + $0x98] sm:$0xff]  ;;  %v4442_v33 = vpack.c.bf16 %v499_v26, %v498_v25  ;;  %v500_v36 = vld [vmem:[#allocation10 + $0x110] sm:$0xff]  ;;  %v1160_v40 = vld [vmem:[#allocation9 + $0xa0] sm:$0xff] }
  0xe7   : > { %4369 = vmatpush3.bf16.msra.mxu0 %v4366_v18  ;;  %4425 = vmatpush3.bf16.msra.mxu1 %v4422_v56  ;;  %v865_v18 = vld [vmem:[#allocation10 + $0x78] sm:$0xff]  ;;  %v5689_v38 = vld [vmem:[#allocation7 + $0x10] sm:$0xff]  ;;  %v4478_v39 = vpack.c.bf16 %v1159_v32, %v1158_v31  ;;  %v1161_v41 = vld [vmem:[#allocation9 + $0xa8] sm:$0xff] }
  0xe8   : > { %4371 = vmatprep.subr.bf16.mxu0 %v4370_v21  ;;  %4427 = vmatprep.subr.bf16.mxu1 %v4426_v0  ;;  %v501_v37 = vld [vmem:[#allocation10 + $0x118] sm:$0xff]  ;;  %v502_v46 = vld [vmem:[#allocation10 + $0x120] sm:$0xff]  ;;  %v503_v47 = vld [vmem:[#allocation10 + $0x128] sm:$0xff]  ;;  %v4482_v49 = vpack.c.bf16 %v1161_v41, %v1160_v40 }
  0xe9   : > { %v4446_v42 = vpack.c.bf16 %v501_v37, %v500_v36  ;;  %v5698_v48 = vld [vmem:[#allocation7 + $0x20] sm:$0xff]  ;;  %v1162_v50 = vld [vmem:[#allocation9 + $0xb0] sm:$0xff]  ;;  %v4450_v54 = vpack.c.bf16 %v503_v47, %v502_v46  ;;  %v5706_v55 = vld [vmem:[#allocation7 + $0x28] sm:$0xff] }
  0xea   : > { %v504_v56 = vld [vmem:[#allocation10 + $0x130] sm:$0xff]  ;;  %v505_v57 = vld [vmem:[#allocation10 + $0x138] sm:$0xff]  ;;  %v5720_v1 = vld [vmem:[#allocation7 + $0x40] sm:$0xff] }
  0xeb   : > { %4373 = vmatpush3.bf16.msra.mxu0 %v4370_v21  ;;  %4429 = vmatpush3.bf16.msra.mxu1 %v4426_v0  ;;  %v4406_v21 = vpack.c.bf16 %v497_v15, %v496_v14  ;;  %v4454_v62 = vpack.c.bf16 %v505_v57, %v504_v56  ;;  %v5718_v63 = vld [vmem:[#allocation7 + $0x38] sm:$0xff]  ;;  %v506_v0 = vld [vmem:[#allocation10 + $0x140] sm:$0xff]  ;;  %v1166_v2 = vld [vmem:[#allocation9 + $0xd0] sm:$0xff] }
  0xec   : > { %4375 = vmatprep.subr.bf16.mxu0 %v4374_v24  ;;  %4431 = vmatprep.subr.bf16.mxu1 %v4430_v8  ;;  %v5727_v7 = vld [vmem:[#allocation7 + $0x48] sm:$0xff]  ;;  %v5730_v9 = vld [vmem:[#allocation7 + $0x50] sm:$0xff]  ;;  %v5741_v15 = vld [vmem:[#allocation7 + $0x58] sm:$0xff] }
  0xed   : > { %v5750_v23 = vld [vmem:[#allocation7 + $0x68] sm:$0xff]  ;;  %v513_v25 = vld [vmem:[#allocation10 + $0x178] sm:$0xff]  ;;  %v5752_v26 = vld [vmem:[#allocation7 + $0x70] sm:$0xff] }
  0xee   : > { %v1333_v31 = vld [vmem:[#allocation10 + $0x80] sm:$0xff]  ;;  %v1334_v32 = vld [vmem:[#allocation10 + $0x88] sm:$0xff]  ;;  %v1335_v36 = vld [vmem:[#allocation10 + $0x90] sm:$0xff] }
  0xef   : > { %4377 = vmatpush3.bf16.msra.mxu0 %v4374_v24  ;;  %4433 = vmatpush3.bf16.msra.mxu1 %v4430_v8  ;;  %v4438_v24 = vpack.c.bf16 %v865_v18, %v864_v17  ;;  %v508_v8 = vld [vmem:[#allocation10 + $0x150] sm:$0xff]  ;;  %v5743_v17 = vld [vmem:[#allocation7 + $0x60] sm:$0xff]  ;;  %v1336_v37 = vld [vmem:[#allocation10 + $0x98] sm:$0xff] }
  0xf0   : > { %4379 = vmatprep.subr.bf16.mxu0 %v4378_v27  ;;  %4435 = vmatprep.subr.bf16.mxu1 %v4434_v16  ;;  %v1337_v40 = vld [vmem:[#allocation10 + $0xa0] sm:$0xff]  ;;  %v1338_v41 = vld [vmem:[#allocation10 + $0xa8] sm:$0xff]  ;;  %v1339_v46 = vld [vmem:[#allocation10 + $0xb0] sm:$0xff] }
  0xf1   : > { %v1340_v47 = vld [vmem:[#allocation10 + $0xb8] sm:$0xff]  ;;  %v1343_v56 = vld [vmem:[#allocation10 + $0xd0] sm:$0xff] }
  0xf2   : > { %3763 = vmatmul.mubr.f32.vlgmr.msra.gmra.mrb[0].mxu0 %v5621_v30  ;;  %v1344_v57 = vld [vmem:[#allocation10 + $0xd8] sm:$0xff] }
  0xf3   : > { %4381 = vmatpush3.bf16.msra.mxu0 %v4378_v27  ;;  %3765 = vmatprep.mubr.f32.mxu0 %v5624_v34  ;;  %v5677_v27 = vld [vmem:[%s5617_s18 + $0x78] sm:$0xff] }
  0xf4   : > { %4383 = vmatprep.subr.bf16.mxu0 %v4382_v35  ;;  %4437 = vmatpush3.bf16.msra.mxu1 %v4434_v16  ;;  %v510_v16 = vld [vmem:[#allocation10 + $0x160] sm:$0xff] }
  0xf5   : > { %4439 = vmatprep.subr.bf16.mxu1 %v4438_v24 }
  0xf6   : > { %3766 = vmatmul.mubr.f32.gmra.mrb[2].mxu0 %v5629_v43 }
  0xf7   : > { %4385 = vmatpush3.bf16.msra.mxu0 %v4382_v35  ;;  %3768 = vmatprep.mubr.f32.mxu0 %v5632_v44  ;;  %v5687_v35 = vld [vmem:[#allocation7 + $0x8] sm:$0xff] }
  0xf8   : > { %4387 = vmatprep.subr.bf16.mxu0 %v4386_v45  ;;  %4441 = vmatpush3.bf16.msra.mxu1 %v4438_v24  ;;  %v512_v24 = vld [vmem:[#allocation10 + $0x170] sm:$0xff] }
  0xf9   : > { %4443 = vmatprep.subr.bf16.mxu1 %v4442_v33 }
  0xfa   : > { %3769 = vmatmul.mubr.f32.gmra.mrb[4].mxu0 %v5637_v51 }
  0xfb   : > { %4389 = vmatpush3.bf16.msra.mxu0 %v4386_v45  ;;  %3771 = vmatprep.mubr.f32.mxu0 %v5640_v52  ;;  %v5696_v45 = vld [vmem:[#allocation7 + $0x18] sm:$0xff] }
  0xfc   : > { %4391 = vmatprep.subr.bf16.mxu0 %v4390_v53  ;;  %3875 = vmatmul.mubr.f32.vlgmr.msra.gmra.mrb[0].mxu1 %v5621_v30  ;;  %v5708_v30 = vld [vmem:[#allocation7 + $0x30] sm:$0xff] }
  0xfd   : > { %4445 = vmatpush3.bf16.msra.mxu1 %v4442_v33  ;;  %3877 = vmatprep.mubr.f32.mxu1 %v5624_v34  ;;  %v1164_v34 = vld [vmem:[#allocation9 + $0xc0] sm:$0xff]  ;;  %v5770_v33 = vld [vmem:[%s5760_s11 + $0x8] sm:$0xff] }
  0xfe   : > { %3772 = vmatmul.mubr.f32.gmra.mrb[6].mxu0 %v5645_v59  ;;  %4447 = vmatprep.subr.bf16.mxu1 %v4446_v42 }
  0xff   : > { %4393 = vmatpush3.bf16.msra.mxu0 %v4390_v53  ;;  %3774 = vmatprep.mubr.f32.mxu0 %v5648_v60  ;;  %v1163_v53 = vld [vmem:[#allocation9 + $0xb8] sm:$0xff] }
 0x100   : > { %4395 = vmatprep.subr.bf16.mxu0 %v4394_v61  ;;  %v4486_v58 = vpack.c.bf16 %v1163_v53, %v1162_v50  ;;  %3878 = vmatmul.mubr.f32.gmra.mrb[2].mxu1 %v5629_v43  ;;  %v507_v43 = vld [vmem:[#allocation10 + $0x148] sm:$0xff]  ;;  %v1341_v50 = vld [vmem:[#allocation10 + $0xc0] sm:$0xff] }
 0x101   : > { %4449 = vmatpush3.bf16.msra.mxu1 %v4446_v42  ;;  %3880 = vmatprep.mubr.f32.mxu1 %v5632_v44  ;;  %v4458_v6 = vpack.c.bf16 %v507_v43, %v506_v0  ;;  %v5783_v42 = vld [vmem:[%s5760_s11 + $0x20] sm:$0xff]  ;;  %v1342_v53 = vld [vmem:[#allocation10 + $0xc8] sm:$0xff]  ;;  %v480_v43 = vld [vmem:[%s5760_s11 + $0x70] sm:$0xff] }
 0x102   : > { %3775 = vmatmul.mubr.f32.gmra.mrb[8].mxu0 %v5653_v3  ;;  %4451 = vmatprep.subr.bf16.mxu1 %v4450_v54  ;;  %v479_v0 = vld [vmem:[%s5760_s11 + $0x68] sm:$0xff] }
 0x103   : > { %4397 = vmatpush3.bf16.msra.mxu0 %v4394_v61  ;;  %3777 = vmatprep.mubr.f32.mxu0 %v5656_v4  ;;  %v1165_v61 = vld [vmem:[#allocation9 + $0xc8] sm:$0xff] }
 0x104   : > { %4399 = vmatprep.subr.bf16.mxu0 %v4398_v5  ;;  %v4490_v44 = vpack.c.bf16 %v1165_v61, %v1164_v34  ;;  %3881 = vmatmul.mubr.f32.gmra.mrb[4].mxu1 %v5637_v51  ;;  %v509_v51 = vld [vmem:[#allocation10 + $0x158] sm:$0xff]  ;;  %v1345_v34 = vld [vmem:[#allocation10 + $0xe0] sm:$0xff]  ;;  %v1346_v61 = vld [vmem:[#allocation10 + $0xe8] sm:$0xff] }
 0x105   : > { %4453 = vmatpush3.bf16.msra.mxu1 %v4450_v54  ;;  %3883 = vmatprep.mubr.f32.mxu1 %v5640_v52  ;;  %v1168_v52 = vld [vmem:[#allocation9 + $0xe0] sm:$0xff]  ;;  %v4462_v14 = vpack.c.bf16 %v509_v51, %v508_v8 }
 0x106   : > { %3778 = vmatmul.mubr.f32.gmra.mrb[10].mxu0 %v5661_v11  ;;  %4455 = vmatprep.subr.bf16.mxu1 %v4454_v62  ;;  %v474_v54 = vld [vmem:[%s5760_s11 + $0x40] sm:$0xff] }
 0x107   : > { %4401 = vmatpush3.bf16.msra.mxu0 %v4398_v5  ;;  %3780 = vmatprep.mubr.f32.mxu0 %v5664_v12  ;;  %v1167_v5 = vld [vmem:[#allocation9 + $0xd8] sm:$0xff] }
 0x108   : > { %4403 = vmatprep.subr.bf16.mxu0 %v4402_v13  ;;  %v4494_v10 = vpack.c.bf16 %v1167_v5, %v1166_v2  ;;  %3884 = vmatmul.mubr.f32.gmra.mrb[6].mxu1 %v5645_v59  ;;  %v511_v59 = vld [vmem:[#allocation10 + $0x168] sm:$0xff]  ;;  %v1348_v2 = vld [vmem:[#allocation10 + $0xf8] sm:$0xff] }
 0x109   : > { %4457 = vmatpush3.bf16.msra.mxu1 %v4454_v62  ;;  %3886 = vmatprep.mubr.f32.mxu1 %v5648_v60  ;;  %v1170_v60 = vld [vmem:[#allocation9 + $0xf0] sm:$0xff]  ;;  %v4466_v22 = vpack.c.bf16 %v511_v59, %v510_v16  ;;  %v478_v62 = vld [vmem:[%s5760_s11 + $0x60] sm:$0xff] }
 0x10a   : > { %3781 = vmatmul.mubr.f32.gmra.mrb[12].mxu0 %v5669_v19  ;;  %4459 = vmatprep.subr.bf16.mxu1 %v4458_v6 }
 0x10b   : > { %4405 = vmatpush3.bf16.msra.mxu0 %v4402_v13  ;;  %3783 = vmatprep.mubr.f32.mxu0 %v5672_v20  ;;  %v1169_v13 = vld [vmem:[#allocation9 + $0xe8] sm:$0xff] }
 0x10c   : > { %4407 = vmatprep.subr.bf16.mxu0 %v4406_v21  ;;  %v4498_v18 = vpack.c.bf16 %v1169_v13, %v1168_v52  ;;  %3887 = vmatmul.mubr.f32.gmra.mrb[8].mxu1 %v5653_v3 }
 0x10d   : > { %4461 = vmatpush3.bf16.msra.mxu1 %v4458_v6  ;;  %3889 = vmatprep.mubr.f32.mxu1 %v5656_v4  ;;  %v4470_v4 = vpack.c.bf16 %v513_v25, %v512_v24  ;;  %v5826_v6 = vld [vmem:[#allocation4] sm:$0xff] }
 0x10e   : > { %3784 = vmatmul.mubr.f32.gmra.mrb[14].mxu0 %v5677_v27  ;;  %4463 = vmatprep.subr.bf16.mxu1 %v4462_v14 }
 0x10f   : > { %4409 = vmatpush3.bf16.msra.mxu0 %v4406_v21  ;;  %3818 = vmatprep.mubr.f32.mxu0 %v5682_v28  ;;  %v1171_v21 = vld [vmem:[#allocation9 + $0xf8] sm:$0xff] }
 0x110   : > { %4475 = vmatprep.subr.bf16.mxu0 %v4474_v29  ;;  %v4502_v3 = vpack.c.bf16 %v1171_v21, %v1170_v60  ;;  %3890 = vmatmul.mubr.f32.gmra.mrb[10].mxu1 %v5661_v11  ;;  %v5763_v11 = vld [vmem:[%s5760_s11] sm:$0xff] }
 0x111   : > { %4465 = vmatpush3.bf16.msra.mxu1 %v4462_v14  ;;  %3892 = vmatprep.mubr.f32.mxu1 %v5664_v12  ;;  %v4506_v12 = vpack.c.bf16 %v1334_v32, %v1333_v31  ;;  %v5830_v32 = vld [vmem:[#allocation4 + $0x8] sm:$0xff] }
 0x112   : > { %3819 = vmatmul.mubr.f32.vlgmr.msra.gmra.mrb[0].mxu0 %v5687_v35  ;;  %4467 = vmatprep.subr.bf16.mxu1 %v4466_v22 }
 0x113   : > { %4477 = vmatpush3.bf16.msra.mxu0 %v4474_v29  ;;  %3821 = vmatprep.mubr.f32.mxu0 %v5689_v38  ;;  %v5758_v29 = vld [vmem:[#allocation7 + $0x78] sm:$0xff] }
 0x114   : > { %4479 = vmatprep.subr.bf16.mxu0 %v4478_v39  ;;  %3893 = vmatmul.mubr.f32.gmra.mrb[12].mxu1 %v5669_v19  ;;  %v4510_v19 = vpack.c.bf16 %v1336_v37, %v1335_v36  ;;  %v5842_v36 = vld [vmem:[#allocation4 + $0x28] sm:$0xff]  ;;  %v5844_v37 = vld [vmem:[#allocation4 + $0x30] sm:$0xff] }
 0x115   : > { %4469 = vmatpush3.bf16.msra.mxu1 %v4466_v22  ;;  %3895 = vmatprep.mubr.f32.mxu1 %v5672_v20  ;;  %v5780_v20 = vld [vmem:[%s5760_s11 + $0x18] sm:$0xff] }
 0x116   : > { %3822 = vmatmul.mubr.f32.gmra.mrb[2].mxu0 %v5696_v45  ;;  %4471 = vmatprep.subr.bf16.mxu1 %v4470_v4 }
 0x117   : > { %4481 = vmatpush3.bf16.msra.mxu0 %v4478_v39  ;;  %3824 = vmatprep.mubr.f32.mxu0 %v5698_v48  ;;  %v5773_v39 = vld [vmem:[%s5760_s11 + $0x10] sm:$0xff] }
 0x118   : > { %4483 = vmatprep.subr.bf16.mxu0 %v4482_v49  ;;  %3896 = vmatmul.mubr.f32.gmra.mrb[14].mxu1 %v5677_v27  ;;  %v4514_v27 = vpack.c.bf16 %v1338_v41, %v1337_v40  ;;  %v5856_v40 = vld [vmem:[#allocation4 + $0x50] sm:$0xff]  ;;  %v5860_v41 = vld [vmem:[#allocation4 + $0x58] sm:$0xff] }
 0x119   : > { %4473 = vmatpush3.bf16.msra.mxu1 %v4470_v4  ;;  %3930 = vmatprep.mubr.f32.mxu1 %v5682_v28  ;;  %v5790_v28 = vld [vmem:[%s5760_s11 + $0x28] sm:$0xff] }
 0x11a   : > { %3825 = vmatmul.mubr.f32.gmra.mrb[4].mxu0 %v5706_v55  ;;  %4507 = vmatprep.subr.bf16.mxu1 %v4506_v12 }
 0x11b   : > { %4485 = vmatpush3.bf16.msra.mxu0 %v4482_v49  ;;  %3827 = vmatprep.mubr.f32.mxu0 %v5708_v30  ;;  %v5793_v49 = vld [vmem:[%s5760_s11 + $0x30] sm:$0xff] }
 0x11c   : > { %4487 = vmatprep.subr.bf16.mxu0 %v4486_v58  ;;  %3931 = vmatmul.mubr.f32.vlgmr.msra.gmra.mrb[0].mxu1 %v5687_v35  ;;  %v4518_v35 = vpack.c.bf16 %v1340_v47, %v1339_v46  ;;  %v5872_v46 = vld [vmem:[#allocation4 + $0x78] sm:$0xff]  ;;  %v5879_v47 = vld [vmem:[%s6453_s5] ss:$0 sm:$0xff] }
 0x11d   : > { %4509 = vmatpush3.bf16.msra.mxu1 %v4506_v12  ;;  %3933 = vmatprep.mubr.f32.mxu1 %v5689_v38  ;;  %v473_v38 = vld [vmem:[%s5760_s11 + $0x38] sm:$0xff] }
 0x11e   : > { %3828 = vmatmul.mubr.f32.gmra.mrb[6].mxu0 %v5718_v63  ;;  %4511 = vmatprep.subr.bf16.mxu1 %v4510_v19  ;;  %v5836_v12 = vld [vmem:[#allocation4 + $0x18] sm:$0xff] }
 0x11f   : > { %4489 = vmatpush3.bf16.msra.mxu0 %v4486_v58  ;;  %3830 = vmatprep.mubr.f32.mxu0 %v5720_v1  ;;  %v476_v58 = vld [vmem:[%s5760_s11 + $0x50] sm:$0xff] }
 0x120   : > { %4491 = vmatprep.subr.bf16.mxu0 %v4490_v44  ;;  %3934 = vmatmul.mubr.f32.gmra.mrb[2].mxu1 %v5696_v45  ;;  %v4522_v45 = vpack.c.bf16 %v1342_v53, %v1341_v50 }
 0x121   : > { %4513 = vmatpush3.bf16.msra.mxu1 %v4510_v19  ;;  %3936 = vmatprep.mubr.f32.mxu1 %v5698_v48  ;;  %v475_v48 = vld [vmem:[%s5760_s11 + $0x48] sm:$0xff]  ;;  %v5850_v19 = vld [vmem:[#allocation4 + $0x40] sm:$0xff] }
 0x122   : > { %3831 = vmatmul.mubr.f32.gmra.mrb[8].mxu0 %v5727_v7  ;;  %4515 = vmatprep.subr.bf16.mxu1 %v4514_v27 }
 0x123   : > { %4493 = vmatpush3.bf16.msra.mxu0 %v4490_v44  ;;  %3833 = vmatprep.mubr.f32.mxu0 %v5730_v9  ;;  %v1347_v44 = vld [vmem:[#allocation10 + $0xf0] sm:$0xff] }
 0x124   : > { %4495 = vmatprep.subr.bf16.mxu0 %v4494_v10  ;;  %3937 = vmatmul.mubr.f32.gmra.mrb[4].mxu1 %v5706_v55  ;;  %v4526_v55 = vpack.c.bf16 %v1344_v57, %v1343_v56  ;;  %v4534_v5 = vpack.c.bf16 %v1348_v2, %v1347_v44 }
 0x125   : > { %4517 = vmatpush3.bf16.msra.mxu1 %v4514_v27  ;;  %3939 = vmatprep.mubr.f32.mxu1 %v5708_v30  ;;  %v477_v30 = vld [vmem:[%s5760_s11 + $0x58] sm:$0xff]  ;;  %v5866_v27 = vld [vmem:[#allocation4 + $0x68] sm:$0xff] }
 0x126   : > { %3834 = vmatmul.mubr.f32.gmra.mrb[10].mxu0 %v5741_v15  ;;  %4519 = vmatprep.subr.bf16.mxu1 %v4518_v35 }
 0x127   : > { %4497 = vmatpush3.bf16.msra.mxu0 %v4494_v10  ;;  %3836 = vmatprep.mubr.f32.mxu0 %v5743_v17 }
 0x128   : > { %4499 = vmatprep.subr.bf16.mxu0 %v4498_v18  ;;  %3940 = vmatmul.mubr.f32.gmra.mrb[6].mxu1 %v5718_v63  ;;  %v4530_v63 = vpack.c.bf16 %v1346_v61, %v1345_v34 }
 0x129   : > { %4521 = vmatpush3.bf16.msra.mxu1 %v4518_v35  ;;  %3942 = vmatprep.mubr.f32.mxu1 %v5720_v1  ;;  %v481_v1 = vld [vmem:[%s5760_s11 + $0x78] sm:$0xff] }
 0x12a   : > { %3837 = vmatmul.mubr.f32.gmra.mrb[12].mxu0 %v5750_v23  ;;  %4523 = vmatprep.subr.bf16.mxu1 %v4522_v45 }
 0x12b   : > { %4501 = vmatpush3.bf16.msra.mxu0 %v4498_v18  ;;  %3839 = vmatprep.mubr.f32.mxu0 %v5752_v26 }
 0x12c   : > { %4503 = vmatprep.subr.bf16.mxu0 %v4502_v3  ;;  %3943 = vmatmul.mubr.f32.gmra.mrb[8].mxu1 %v5727_v7 }
 0x12d   : > { %4525 = vmatpush3.bf16.msra.mxu1 %v4522_v45  ;;  %3945 = vmatprep.mubr.f32.mxu1 %v5730_v9 }
 0x12e   : > { %3840 = vmatmul.mubr.f32.gmra.mrb[14].mxu0 %v5758_v29  ;;  %4527 = vmatprep.subr.bf16.mxu1 %v4526_v55 }
 0x12f   : > { %4505 = vmatpush3.bf16.msra.mxu0 %v4502_v3  ;;  %3986 = vmatprep.mubr.f32.mxu0 %v5763_v11 }
 0x130   : > { %3946 = vmatmul.mubr.f32.gmra.mrb[10].mxu1 %v5741_v15 }
 0x131   : > { %4529 = vmatpush3.bf16.msra.mxu1 %v4526_v55  ;;  %3948 = vmatprep.mubr.f32.mxu1 %v5743_v17 }
 0x132   : > { %3987 = vmatmul.mubr.f32.vlgmr.msra.gmra.mrb[0].mxu0 %v5770_v33  ;;  %4531 = vmatprep.subr.bf16.mxu1 %v4530_v63 }
 0x133   : > { %3989 = vmatprep.mubr.f32.mxu0 %v5773_v39 }
 0x134   : > { %3949 = vmatmul.mubr.f32.gmra.mrb[12].mxu1 %v5750_v23 }
 0x135   : > { %4533 = vmatpush3.bf16.msra.mxu1 %v4530_v63  ;;  %3951 = vmatprep.mubr.f32.mxu1 %v5752_v26 }
 0x136   : > { %3990 = vmatmul.mubr.f32.gmra.mrb[2].mxu0 %v5780_v20  ;;  %4535 = vmatprep.subr.bf16.mxu1 %v4534_v5 }
 0x137   : > { %3992 = vmatprep.mubr.f32.mxu0 %v5783_v42 }
 0x138   : > { %3952 = vmatmul.mubr.f32.gmra.mrb[14].mxu1 %v5758_v29 }
 0x139   : > { %4042 = vmatprep.mubr.f32.mxu1 %v5763_v11  ;;  %4537 = vmatpush3.bf16.msra.mxu1 %v4534_v5  ;;  %v5832_v11 = vld [vmem:[#allocation4 + $0x10] sm:$0xff] }
 0x13a   : > { %3993 = vmatmul.mubr.f32.gmra.mrb[4].mxu0 %v5790_v28 }
 0x13b   : > { %3995 = vmatprep.mubr.f32.mxu0 %v5793_v49 }
 0x13c   : > { %4043 = vmatmul.mubr.f32.vlgmr.msra.gmra.mrb[0].mxu1 %v5770_v33  ;;  %v5838_v33 = vld [vmem:[#allocation4 + $0x20] sm:$0xff] }
 0x13d   : > { %4045 = vmatprep.mubr.f32.mxu1 %v5773_v39  ;;  %v5848_v39 = vld [vmem:[#allocation4 + $0x38] sm:$0xff] }
 0x13e   : > { %3996 = vmatmul.mubr.f32.gmra.mrb[6].mxu0 %v473_v38 }
 0x13f   : > { %3998 = vmatprep.mubr.f32.mxu0 %v474_v54 }
 0x140   : > { %4046 = vmatmul.mubr.f32.gmra.mrb[2].mxu1 %v5780_v20  ;;  %v5854_v20 = vld [vmem:[#allocation4 + $0x48] sm:$0xff] }
 0x141   : > { %4048 = vmatprep.mubr.f32.mxu1 %v5783_v42  ;;  %v5862_v42 = vld [vmem:[#allocation4 + $0x60] sm:$0xff] }
 0x142   : > { %3999 = vmatmul.mubr.f32.gmra.mrb[8].mxu0 %v475_v48 }
 0x143   : > { %4001 = vmatprep.mubr.f32.mxu0 %v476_v58 }
 0x144   : > { %4049 = vmatmul.mubr.f32.gmra.mrb[4].mxu1 %v5790_v28  ;;  %v5868_v28 = vld [vmem:[#allocation4 + $0x70] sm:$0xff] }
 0x145   : > { %4051 = vmatprep.mubr.f32.mxu1 %v5793_v49 }
 0x146   : > { %4002 = vmatmul.mubr.f32.gmra.mrb[10].mxu0 %v477_v30 }
 0x147   : > { %4004 = vmatprep.mubr.f32.mxu0 %v478_v62 }
 0x148   : > { %4052 = vmatmul.mubr.f32.gmra.mrb[6].mxu1 %v473_v38 }
 0x149   : > { %4054 = vmatprep.mubr.f32.mxu1 %v474_v54 }
 0x14a   : > { %4005 = vmatmul.mubr.f32.gmra.mrb[12].mxu0 %v479_v0 }
 0x14b   : > { %4007 = vmatprep.mubr.f32.mxu0 %v480_v43 }
 0x14c   : > { %4055 = vmatmul.mubr.f32.gmra.mrb[8].mxu1 %v475_v48 }
 0x14d   : > { %4057 = vmatprep.mubr.f32.mxu1 %v476_v58 }
 0x14e   : > { %4008 = vmatmul.mubr.f32.gmra.mrb[14].mxu0 %v481_v1 }
 0x14f   : > { %4154 = vmatprep.mubr.f32.mxu0 %v5826_v6 }
 0x150   : > { %4058 = vmatmul.mubr.f32.gmra.mrb[10].mxu1 %v477_v30 }
 0x151   : > { %4060 = vmatprep.mubr.f32.mxu1 %v478_v62 }
 0x154   : > { %4061 = vmatmul.mubr.f32.gmra.mrb[12].mxu1 %v479_v0 }
 0x155   : > { %4063 = vmatprep.mubr.f32.mxu1 %v480_v43 }
 0x158   : > { %4064 = vmatmul.mubr.f32.gmra.mrb[14].mxu1 %v481_v1 }
 0x159   : > { %4098 = vmatprep.mubr.f32.mxu1 %v5826_v6 }
 0x205   : > { %v3988_v7 = vpop.f32.mrb[0].mxu0 }
 0x206   : > { %v1238_v8 = vpop.f32.mrb[1].mxu0 }
 0x207   : > { %v4538_v51 = vpack.c.bf16 %v3988_v7, %v1238_v8 }
 0x209   : > { %v3991_v9 = vpop.f32.mrb[2].mxu0  ;;  %4539 = vmatprep.subr.bf16.mxu1 %v4538_v51 }
 0x20a   : > { %v1248_v10 = vpop.f32.mrb[3].mxu0  ;;  %4541 = vmatpush3.bf16.msra.mxu1 %v4538_v51 }
 0x20b   : > { %v4542_v52 = vpack.c.bf16 %v3991_v9, %v1248_v10 }
 0x20d   : > { %v3994_v13 = vpop.f32.mrb[4].mxu0  ;;  %4543 = vmatprep.subr.bf16.mxu1 %v4542_v52 }
 0x20e   : > { %v1258_v14 = vpop.f32.mrb[5].mxu0  ;;  %4545 = vmatpush3.bf16.msra.mxu1 %v4542_v52 }
 0x20f   : > { %v4546_v15 = vpack.c.bf16 %v3994_v13, %v1258_v14 }
 0x211   : > { %v3997_v16 = vpop.f32.mrb[6].mxu0  ;;  %4547 = vmatprep.subr.bf16.mxu1 %v4546_v15 }
 0x212   : > { %v1268_v59 = vpop.f32.mrb[7].mxu0  ;;  %4549 = vmatpush3.bf16.msra.mxu1 %v4546_v15 }
 0x213   : > { %v4550_v17 = vpack.c.bf16 %v3997_v16, %v1268_v59 }
 0x215   : > { %v4000_v18 = vpop.f32.mrb[8].mxu0  ;;  %4551 = vmatprep.subr.bf16.mxu1 %v4550_v17 }
 0x216   : > { %v1278_v60 = vpop.f32.mrb[9].mxu0  ;;  %4553 = vmatpush3.bf16.msra.mxu1 %v4550_v17 }
 0x217   : > { %v4554_v21 = vpack.c.bf16 %v4000_v18, %v1278_v60 }
 0x219   : > { %v4003_v22 = vpop.f32.mrb[10].mxu0  ;;  %4555 = vmatprep.subr.bf16.mxu1 %v4554_v21 }
 0x21a   : > { %v1288_v23 = vpop.f32.mrb[11].mxu0  ;;  %4557 = vmatpush3.bf16.msra.mxu1 %v4554_v21 }
 0x21b   : > { %v4558_v24 = vpack.c.bf16 %v4003_v22, %v1288_v23 }
 0x21d   : > { %v4006_v25 = vpop.f32.mrb[12].mxu0  ;;  %4559 = vmatprep.subr.bf16.mxu1 %v4558_v24 }
 0x21e   : > { %v1298_v26 = vpop.f32.mrb[13].mxu0  ;;  %4561 = vmatpush3.bf16.msra.mxu1 %v4558_v24 }
 0x21f   : > { %v4562_v3 = vpack.c.bf16 %v4006_v25, %v1298_v26 }
 0x221   : > { %v4009_v4 = vpop.f32.mrb[14].mxu0  ;;  %4563 = vmatprep.subr.bf16.mxu1 %v4562_v3 }
 0x222   : > { %v1308_v29 = vpop.f32.mrb[15].mxu0  ;;  %4565 = vmatpush3.bf16.msra.mxu1 %v4562_v3 }
 0x223   : > { %v4566_v31 = vpack.c.bf16 %v4009_v4, %v1308_v29 }
 0x225   : > { %4567 = vmatprep.subr.bf16.mxu1 %v4566_v31 }
 0x226   : > { %4569 = vmatpush3.bf16.msra.mxu1 %v4566_v31 }
 0x229   : > { %4099 = vmatmul.mubr.f32.vlgmr.msra.gmra.mrb[0].mxu1 %v5830_v32 }
 0x22a   : > { %4101 = vmatprep.mubr.f32.mxu1 %v5832_v11 }
 0x22d   : > { %4102 = vmatmul.mubr.f32.gmra.mrb[2].mxu1 %v5836_v12 }
 0x22e   : > { %4104 = vmatprep.mubr.f32.mxu1 %v5838_v33 }
 0x231   : > { %4105 = vmatmul.mubr.f32.gmra.mrb[4].mxu1 %v5842_v36 }
 0x232   : > { %4107 = vmatprep.mubr.f32.mxu1 %v5844_v37 }
 0x235   : > { %4108 = vmatmul.mubr.f32.gmra.mrb[6].mxu1 %v5848_v39 }
 0x236   : > { %4110 = vmatprep.mubr.f32.mxu1 %v5850_v19 }
 0x239   : > { %4111 = vmatmul.mubr.f32.gmra.mrb[8].mxu1 %v5854_v20 }
 0x23a   : > { %4113 = vmatprep.mubr.f32.mxu1 %v5856_v40 }
 0x23d   : > { %4114 = vmatmul.mubr.f32.gmra.mrb[10].mxu1 %v5860_v41 }
 0x23e   : > { %4116 = vmatprep.mubr.f32.mxu1 %v5862_v42 }
 0x241   : > { %4117 = vmatmul.mubr.f32.gmra.mrb[12].mxu1 %v5866_v27 }
 0x242   : > { %4119 = vmatprep.mubr.f32.mxu1 %v5868_v28 }
 0x245   : > { %4120 = vmatmul.mubr.f32.gmra.mrb[14].mxu1 %v5872_v46 }
 0x246   : > { %4210 = vmatprep.mubr.f32.mxu1 %v5826_v6 }
 0x2fc   : > { %v4100_v49 = vpop.f32.mrb[0].mxu1 }
 0x2fd   : > { %v5882_v35 = vadd.f32 %v4100_v49, %v5879_v47  ;;  %v1576_v38 = vpop.f32.mrb[1].mxu1 }
 0x2fe   : > { %v5885_v50 = vadd.f32 %v5879_v47, %v1576_v38 }
 0x2ff   : > { %v1679_v53 = vmax.f32 %v5882_v35, 0.0 }
 0x300   : > { %v1678_v54 = vmax.f32 %v5885_v50, 0.0  ;;  %v4103_v45 = vpop.f32.mrb[2].mxu1 }
 0x301   : > { %v5890_v48 = vadd.f32 %v4103_v45, %v5879_v47  ;;  %v1586_v56 = vpop.f32.mrb[3].mxu1 }
 0x302   : > { %v4570_v57 = vpack.c.bf16 %v1679_v53, %v1678_v54  ;;  %v5897_v58 = vadd.f32 %v5879_v47, %v1586_v56 }
 0x303   : > { %v1681_v55 = vmax.f32 %v5890_v48, 0.0 }
 0x304   : > { %v1680_v30 = vmax.f32 %v5897_v58, 0.0  ;;  %v4106_v34 = vpop.f32.mrb[4].mxu1  ;;  %4571 = vmatprep.subr.bf16.mxu0 %v4570_v57 }
 0x305   : > { %v5902_v61 = vadd.f32 %v4106_v34, %v5879_v47  ;;  %v1596_v62 = vpop.f32.mrb[5].mxu1  ;;  %4573 = vmatpush3.bf16.msra.mxu0 %v4570_v57 }
 0x306   : > { %v4574_v63 = vpack.c.bf16 %v1681_v55, %v1680_v30  ;;  %v5909_v0 = vadd.f32 %v5879_v47, %v1596_v62 }
 0x307   : > { %v1683_v43 = vmax.f32 %v5902_v61, 0.0 }
 0x308   : > { %v1682_v1 = vmax.f32 %v5909_v0, 0.0  ;;  %v4109_v44 = vpop.f32.mrb[6].mxu1  ;;  %4575 = vmatprep.subr.bf16.mxu0 %v4574_v63 }
 0x309   : > { %v5914_v2 = vadd.f32 %v4109_v44, %v5879_v47  ;;  %v1606_v5 = vpop.f32.mrb[7].mxu1  ;;  %4577 = vmatpush3.bf16.msra.mxu0 %v4574_v63  ;;  %v1710_v63 = vld [vmem:[#allocation12 + $0x80] sm:$0xff]  ;;  %v1711_v44 = vld [vmem:[#allocation12 + $0x88] sm:$0xff] }
 0x30a   : > { %v4578_v7 = vpack.c.bf16 %v1683_v43, %v1682_v1  ;;  %v5921_v8 = vadd.f32 %v5879_v47, %v1606_v5 }
 0x30b   : > { %v1685_v51 = vmax.f32 %v5914_v2, 0.0 }
 0x30c   : > { %v1684_v9 = vmax.f32 %v5921_v8, 0.0  ;;  %v4112_v10 = vpop.f32.mrb[8].mxu1  ;;  %4579 = vmatprep.subr.bf16.mxu0 %v4578_v7 }
 0x30d   : > { %v5926_v52 = vadd.f32 %v4112_v10, %v5879_v47  ;;  %v1616_v13 = vpop.f32.mrb[9].mxu1  ;;  %4581 = vmatpush3.bf16.msra.mxu0 %v4578_v7  ;;  %v4602_v10 = vpack.c.bf16 %v1711_v44, %v1710_v63  ;;  %v1698_v63 = vld [vmem:[#allocation12 + $0x20] sm:$0xff]  ;;  %v1699_v44 = vld [vmem:[#allocation12 + $0x28] sm:$0xff] }
 0x30e   : > { %v4582_v14 = vpack.c.bf16 %v1685_v51, %v1684_v9  ;;  %v5933_v15 = vadd.f32 %v5879_v47, %v1616_v13  ;;  %v1694_v13 = vld [vmem:[#allocation12] sm:$0xff] }
 0x30f   : > { %v1687_v16 = vmax.f32 %v5926_v52, 0.0 }
 0x310   : > { %v1686_v59 = vmax.f32 %v5933_v15, 0.0  ;;  %v4115_v17 = vpop.f32.mrb[10].mxu1  ;;  %4583 = vmatprep.subr.bf16.mxu0 %v4582_v14 }
 0x311   : > { %v5938_v18 = vadd.f32 %v4115_v17, %v5879_v47  ;;  %v1626_v60 = vpop.f32.mrb[11].mxu1  ;;  %4585 = vmatpush3.bf16.msra.mxu0 %v4582_v14  ;;  %v1695_v14 = vld [vmem:[#allocation12 + $0x8] sm:$0xff]  ;;  %v1712_v17 = vld [vmem:[#allocation12 + $0x90] sm:$0xff] }
 0x312   : > { %v4586_v21 = vpack.c.bf16 %v1687_v16, %v1686_v59  ;;  %v5945_v22 = vadd.f32 %v5879_v47, %v1626_v60  ;;  %v1713_v60 = vld [vmem:[#allocation12 + $0x98] sm:$0xff] }
 0x313   : > { %v1689_v23 = vmax.f32 %v5938_v18, 0.0 }
 0x314   : > { %v1688_v24 = vmax.f32 %v5945_v22, 0.0  ;;  %v4118_v25 = vpop.f32.mrb[12].mxu1  ;;  %4587 = vmatprep.subr.bf16.mxu0 %v4586_v21 }
 0x315   : > { %v5950_v26 = vadd.f32 %v4118_v25, %v5879_v47  ;;  %v1636_v3 = vpop.f32.mrb[13].mxu1  ;;  %4589 = vmatpush3.bf16.msra.mxu0 %v4586_v21  ;;  %v4606_v21 = vpack.c.bf16 %v1713_v60, %v1712_v17  ;;  %v1696_v25 = vld [vmem:[#allocation12 + $0x10] sm:$0xff]  ;;  %v1718_v17 = vld [vmem:[#allocation12 + $0xc0] sm:$0xff]  ;;  %v1719_v60 = vld [vmem:[#allocation12 + $0xc8] sm:$0xff] }
 0x316   : > { %v4590_v4 = vpack.c.bf16 %v1689_v23, %v1688_v24  ;;  %v5957_v29 = vadd.f32 %v5879_v47, %v1636_v3  ;;  %v1697_v3 = vld [vmem:[#allocation12 + $0x18] sm:$0xff] }
 0x317   : > { %v1691_v31 = vmax.f32 %v5950_v26, 0.0 }
 0x318   : > { %v1690_v49 = vmax.f32 %v5957_v29, 0.0  ;;  %v4121_v38 = vpop.f32.mrb[14].mxu1  ;;  %4591 = vmatprep.subr.bf16.mxu0 %v4590_v4 }
 0x319   : > { %v5962_v45 = vadd.f32 %v4121_v38, %v5879_v47  ;;  %v1646_v56 = vpop.f32.mrb[15].mxu1  ;;  %4593 = vmatpush3.bf16.msra.mxu0 %v4590_v4  ;;  %v1714_v4 = vld [vmem:[#allocation12 + $0xa0] sm:$0xff]  ;;  %v1715_v38 = vld [vmem:[#allocation12 + $0xa8] sm:$0xff] }
 0x31a   : > { %v4594_v57 = vpack.c.bf16 %v1691_v31, %v1690_v49  ;;  %v5969_v34 = vadd.f32 %v5879_v47, %v1646_v56  ;;  %v4604_v47 = vpack.c.bf16 %v1695_v14, %v1694_v13  ;;  %v4608_v56 = vpack.c.bf16 %v1697_v3, %v1696_v25  ;;  %v1700_v13 = vld [vmem:[#allocation12 + $0x30] sm:$0xff]  ;;  %v1701_v14 = vld [vmem:[#allocation12 + $0x38] sm:$0xff]  ;;  %v1702_v25 = vld [vmem:[#allocation12 + $0x40] sm:$0xff] }
 0x31b   : > { %v6468_v62 = vmax.f32 %v5962_v45, 0.0  ;;  %v1703_v3 = vld [vmem:[#allocation12 + $0x48] sm:$0xff] }
 0x31c   : > { %v6469_v5 = vmax.f32 %v5969_v34, 0.0  ;;  %4595 = vmatprep.subr.bf16.mxu0 %v4594_v57  ;;  %v6498_v61 = vmax.f32 %v5969_v34, 0.0 }
 0x31d   : > { %4597 = vmatpush3.bf16.msra.mxu0 %v4594_v57  ;;  %v4610_v57 = vpack.c.bf16 %v1715_v38, %v1714_v4  ;;  %v1720_v4 = vld [vmem:[#allocation12 + $0xd0] sm:$0xff]  ;;  %v1721_v38 = vld [vmem:[#allocation12 + $0xd8] sm:$0xff] }
 0x31e   : > { %v4598_v7 = vpack.c.bf16 %v6468_v62, %v6469_v5  ;;  %v1716_v62 = vld [vmem:[#allocation12 + $0xb0] sm:$0xff]  ;;  %v1717_v5 = vld [vmem:[#allocation12 + $0xb8] sm:$0xff] }
 0x320   : > { %4599 = vmatprep.subr.bf16.mxu0 %v4598_v7 }
 0x321   : > { %4601 = vmatpush3.bf16.msra.mxu0 %v4598_v7  ;;  %v4612_v7 = vpack.c.bf16 %v1699_v44, %v1698_v63  ;;  %v1722_v63 = vld [vmem:[#allocation12 + $0xe0] sm:$0xff]  ;;  %v1723_v44 = vld [vmem:[#allocation12 + $0xe8] sm:$0xff] }
 0x322   : > { %4603 = vmatprep.subr.bf16.mxu0 %v4602_v10  ;;  %v4614_v10 = vpack.c.bf16 %v1717_v5, %v1716_v62  ;;  %v4620_v62 = vpack.c.bf16 %v1703_v3, %v1702_v25  ;;  %v4622_v5 = vpack.c.bf16 %v1721_v38, %v1720_v4  ;;  %v1708_v25 = vld [vmem:[#allocation12 + $0x70] sm:$0xff]  ;;  %v1709_v3 = vld [vmem:[#allocation12 + $0x78] sm:$0xff] }
 0x323   : > { %v4632_v4 = vpack.c.bf16 %v1709_v3, %v1708_v25 }
 0x324   : > { %4155 = vmatmul.mubr.f32.vlgmr.msra.gmra.mrb[16].mxu0 %v5830_v32 }
 0x325   : > { %4157 = vmatprep.mubr.f32.mxu0 %v5832_v11  ;;  %4605 = vmatpush3.bf16.msra.mxu0 %v4604_v47  ;;  %v4616_v47 = vpack.c.bf16 %v1701_v14, %v1700_v13  ;;  %v1706_v13 = vld [vmem:[#allocation12 + $0x60] sm:$0xff]  ;;  %v1707_v14 = vld [vmem:[#allocation12 + $0x68] sm:$0xff] }
 0x326   : > { %4607 = vmatprep.subr.bf16.mxu0 %v4606_v21  ;;  %v4618_v21 = vpack.c.bf16 %v1719_v60, %v1718_v17  ;;  %v1724_v17 = vld [vmem:[#allocation12 + $0xf0] sm:$0xff]  ;;  %v1725_v60 = vld [vmem:[#allocation12 + $0xf8] sm:$0xff] }
 0x328   : > { %4158 = vmatmul.mubr.f32.gmra.mrb[18].mxu0 %v5836_v12 }
 0x329   : > { %4160 = vmatprep.mubr.f32.mxu0 %v5838_v33  ;;  %4609 = vmatpush3.bf16.msra.mxu0 %v4608_v56  ;;  %v1704_v56 = vld [vmem:[#allocation12 + $0x50] sm:$0xff] }
 0x32a   : > { %4611 = vmatprep.subr.bf16.mxu0 %v4610_v57  ;;  %v1705_v57 = vld [vmem:[#allocation12 + $0x58] sm:$0xff] }
 0x32c   : > { %4161 = vmatmul.mubr.f32.gmra.mrb[20].mxu0 %v5842_v36 }
 0x32d   : > { %4163 = vmatprep.mubr.f32.mxu0 %v5844_v37  ;;  %4613 = vmatpush3.bf16.msra.mxu0 %v4612_v7  ;;  %v4624_v7 = vpack.c.bf16 %v1705_v57, %v1704_v56 }
 0x32e   : > { %4615 = vmatprep.subr.bf16.mxu0 %v4614_v10  ;;  %v4626_v10 = vpack.c.bf16 %v1723_v44, %v1722_v63 }
 0x330   : > { %4164 = vmatmul.mubr.f32.gmra.mrb[22].mxu0 %v5848_v39 }
 0x331   : > { %4166 = vmatprep.mubr.f32.mxu0 %v5850_v19  ;;  %4617 = vmatpush3.bf16.msra.mxu0 %v4616_v47  ;;  %v4628_v47 = vpack.c.bf16 %v1707_v14, %v1706_v13 }
 0x332   : > { %4619 = vmatprep.subr.bf16.mxu0 %v4618_v21  ;;  %v4630_v21 = vpack.c.bf16 %v1725_v60, %v1724_v17 }
 0x334   : > { %4167 = vmatmul.mubr.f32.gmra.mrb[24].mxu0 %v5854_v20 }
 0x335   : > { %4169 = vmatprep.mubr.f32.mxu0 %v5856_v40  ;;  %4621 = vmatpush3.bf16.msra.mxu0 %v4620_v62 }
 0x336   : > { %4623 = vmatprep.subr.bf16.mxu0 %v4622_v5 }
 0x338   : > { %4170 = vmatmul.mubr.f32.gmra.mrb[26].mxu0 %v5860_v41 }
 0x339   : > { %4172 = vmatprep.mubr.f32.mxu0 %v5862_v42  ;;  %4625 = vmatpush3.bf16.msra.mxu0 %v4624_v7 }
 0x33a   : > { %4627 = vmatprep.subr.bf16.mxu0 %v4626_v10 }
 0x33c   : > { %4173 = vmatmul.mubr.f32.gmra.mrb[28].mxu0 %v5866_v27 }
 0x33d   : > { %4175 = vmatprep.mubr.f32.mxu0 %v5868_v28  ;;  %4629 = vmatpush3.bf16.msra.mxu0 %v4628_v47 }
 0x33e   : > { %4631 = vmatprep.subr.bf16.mxu0 %v4630_v21 }
 0x340   : > { %4176 = vmatmul.mubr.f32.gmra.mrb[30].mxu0 %v5872_v46 }
 0x341   : > { %1942 = vmatprep.mubr.f32.mxu0 %v1678_v54  ;;  %4633 = vmatpush3.bf16.msra.mxu0 %v4632_v4 }
 0x3f7   : > { %v4156_v38 = vpop.f32.mrb[16].mxu0 }
 0x3f8   : > { %v1793_v62 = vpop.f32.mrb[17].mxu0 }
 0x3f9   : > { %1943 = vmatmul.mubr.f32.vlgmr.msra.gmra.mrb[32].mxu0 %v1793_v62 }
 0x3fa   : > { %1947 = vmatprep.mubr.f32.mxu0 %v1679_v53 }
 0x3fb   : > { %v4159_v5 = vpop.f32.mrb[18].mxu0 }
 0x3fc   : > { %v1803_v56 = vpop.f32.mrb[19].mxu0 }
 0x3fd   : > { %1948 = vmatmul.mubr.f32.gmra.mrb[34].mxu0 %v4156_v38 }
 0x3fe   : > { %1952 = vmatprep.mubr.f32.mxu0 %v1680_v30 }
 0x3ff   : > { %v4162_v57 = vpop.f32.mrb[20].mxu0 }
 0x400   : > { %v1813_v63 = vpop.f32.mrb[21].mxu0 }
 0x401   : > { %1953 = vmatmul.mubr.f32.gmra.mrb[36].mxu0 %v1803_v56 }
 0x402   : > { %1957 = vmatprep.mubr.f32.mxu0 %v1681_v55 }
 0x403   : > { %v4165_v50 = vpop.f32.mrb[22].mxu0 }
 0x404   : > { %v1823_v54 = vpop.f32.mrb[23].mxu0 }
 0x405   : > { %1958 = vmatmul.mubr.f32.gmra.mrb[38].mxu0 %v4159_v5 }
 0x406   : > { %1962 = vmatprep.mubr.f32.mxu0 %v1682_v1 }
 0x407   : > { %v4168_v35 = vpop.f32.mrb[24].mxu0 }
 0x408   : > { %v1833_v53 = vpop.f32.mrb[25].mxu0 }
 0x409   : > { %1963 = vmatmul.mubr.f32.gmra.mrb[40].mxu0 %v1813_v63 }
 0x40a   : > { %1967 = vmatprep.mubr.f32.mxu0 %v1683_v43  ;;  %v6499_v43 = vmax.f32 %v5962_v45, 0.0 }
 0x40b   : > { %v4171_v58 = vpop.f32.mrb[26].mxu0 }
 0x40c   : > { %v1843_v30 = vpop.f32.mrb[27].mxu0 }
 0x40d   : > { %1968 = vmatmul.mubr.f32.gmra.mrb[42].mxu0 %v4162_v57 }
 0x40e   : > { %1972 = vmatprep.mubr.f32.mxu0 %v1684_v9  ;;  %v6028_v9 = vld [vmem:[%s6455_s7] ss:$0 sm:$0xff] }
 0x40f   : > { %v4174_v48 = vpop.f32.mrb[28].mxu0 }
 0x410   : > { %v1853_v55 = vpop.f32.mrb[29].mxu0 }
 0x411   : > { %1973 = vmatmul.mubr.f32.gmra.mrb[44].mxu0 %v1823_v54 }
 0x412   : > { %1977 = vmatprep.mubr.f32.mxu0 %v1685_v51 }
 0x413   : > { %v4177_v0 = vpop.f32.mrb[30].mxu0 }
 0x414   : > { %v1863_v1 = vpop.f32.mrb[31].mxu0 }
 0x415   : > { %1978 = vmatmul.mubr.f32.gmra.mrb[46].mxu0 %v4165_v50 }
 0x416   : > { %1982 = vmatprep.mubr.f32.mxu0 %v1686_v59 }
 0x419   : > { %1983 = vmatmul.mubr.f32.gmra.mrb[48].mxu0 %v1833_v53 }
 0x41a   : > { %1987 = vmatprep.mubr.f32.mxu0 %v1687_v16 }
 0x41d   : > { %1988 = vmatmul.mubr.f32.gmra.mrb[50].mxu0 %v4168_v35 }
 0x41e   : > { %1992 = vmatprep.mubr.f32.mxu0 %v1688_v24 }
 0x421   : > { %1993 = vmatmul.mubr.f32.gmra.mrb[52].mxu0 %v1843_v30 }
 0x422   : > { %1997 = vmatprep.mubr.f32.mxu0 %v1689_v23 }
 0x425   : > { %1998 = vmatmul.mubr.f32.gmra.mrb[54].mxu0 %v4171_v58 }
 0x426   : > { %2002 = vmatprep.mubr.f32.mxu0 %v1690_v49 }
 0x429   : > { %2003 = vmatmul.mubr.f32.gmra.mrb[56].mxu0 %v1853_v55 }
 0x42a   : > { %2007 = vmatprep.mubr.f32.mxu0 %v1691_v31 }
 0x42d   : > { %2008 = vmatmul.mubr.f32.gmra.mrb[58].mxu0 %v4174_v48 }
 0x42e   : > { %2012 = vmatprep.mubr.f32.mxu0 %v6498_v61 }
 0x431   : > { %2013 = vmatmul.mubr.f32.gmra.mrb[60].mxu0 %v1863_v1 }
 0x432   : > { %2017 = vmatprep.mubr.f32.mxu0 %v6499_v43 }
 0x435   : > { %2018 = vmatmul.mubr.f32.gmra.mrb[62].mxu0 %v4177_v0 }
 0x436   : > { %4266 = vmatprep.mubr.f32.mxu0 %v5826_v6 }
 0x4cc   : > { %v3426_v2 = vpop.f32.mrb[32].mxu0 }
 0x4cd   : > { %v3427_v8 = vpop.f32.mrb[33].mxu0 }
 0x4ce   : > { %v3428_v51 = vadd.f32 %v3427_v8, %v3426_v2 }
 0x4d0   : > { %v3429_v52 = vpop.f32.mrb[34].mxu0  ;;  %v6031_v16 = vadd.f32 %v3428_v51, %v6028_v9 }
 0x4d1   : > { %v3430_v15 = vpop.f32.mrb[35].mxu0 }
 0x4d2   : > { %v3431_v59 = vadd.f32 %v3430_v15, %v3429_v52  ;;  %v2023_v6 = vmax.f32 %v6031_v16, 0.0 }
 0x4d4   : > { %v6034_v18 = vadd.f32 %v3431_v59, %v6028_v9  ;;  %v3432_v22 = vpop.f32.mrb[36].mxu0 }
 0x4d5   : > { %v3433_v23 = vpop.f32.mrb[37].mxu0 }
 0x4d6   : > { %v2024_v24 = vmax.f32 %v6034_v18, 0.0  ;;  %v3434_v26 = vadd.f32 %v3433_v23, %v3432_v22 }
 0x4d8   : > { %v3435_v29 = vpop.f32.mrb[38].mxu0  ;;  %v4634_v31 = vpack.c.bf16 %v2024_v24, %v2023_v6  ;;  %v6043_v45 = vadd.f32 %v3434_v26, %v6028_v9 }
 0x4d9   : > { %v3436_v49 = vpop.f32.mrb[39].mxu0 }
 0x4da   : > { %v3437_v34 = vadd.f32 %v3436_v49, %v3435_v29  ;;  %4635 = vmatprep.subr.bf16.mxu1 %v4634_v31  ;;  %v2025_v13 = vmax.f32 %v6043_v45, 0.0 }
 0x4db   : > { %4637 = vmatpush3.bf16.msra.mxu1 %v4634_v31 }
 0x4dc   : > { %v6046_v44 = vadd.f32 %v3437_v34, %v6028_v9  ;;  %v3438_v7 = vpop.f32.mrb[40].mxu0 }
 0x4dd   : > { %v3439_v10 = vpop.f32.mrb[41].mxu0 }
 0x4de   : > { %v2026_v14 = vmax.f32 %v6046_v44, 0.0  ;;  %v3440_v17 = vadd.f32 %v3439_v10, %v3438_v7 }
 0x4e0   : > { %v3441_v60 = vpop.f32.mrb[42].mxu0  ;;  %v4638_v47 = vpack.c.bf16 %v2026_v14, %v2025_v13  ;;  %v6055_v25 = vadd.f32 %v3440_v17, %v6028_v9 }
 0x4e1   : > { %v3442_v21 = vpop.f32.mrb[43].mxu0 }
 0x4e2   : > { %v3443_v3 = vadd.f32 %v3442_v21, %v3441_v60  ;;  %4639 = vmatprep.subr.bf16.mxu1 %v4638_v47  ;;  %v2027_v5 = vmax.f32 %v6055_v25, 0.0 }
 0x4e3   : > { %4641 = vmatpush3.bf16.msra.mxu1 %v4638_v47 }
 0x4e4   : > { %v6058_v4 = vadd.f32 %v3443_v3, %v6028_v9  ;;  %v3444_v38 = vpop.f32.mrb[44].mxu0 }
 0x4e5   : > { %v3445_v62 = vpop.f32.mrb[45].mxu0 }
 0x4e6   : > { %v2028_v56 = vmax.f32 %v6058_v4, 0.0  ;;  %v3446_v57 = vadd.f32 %v3445_v62, %v3444_v38 }
 0x4e8   : > { %v3447_v63 = vpop.f32.mrb[46].mxu0  ;;  %v4642_v50 = vpack.c.bf16 %v2028_v56, %v2027_v5  ;;  %v6067_v35 = vadd.f32 %v3446_v57, %v6028_v9 }
 0x4e9   : > { %v3448_v54 = vpop.f32.mrb[47].mxu0 }
 0x4ea   : > { %v3449_v53 = vadd.f32 %v3448_v54, %v3447_v63  ;;  %4643 = vmatprep.subr.bf16.mxu1 %v4642_v50  ;;  %v2029_v55 = vmax.f32 %v6067_v35, 0.0 }
 0x4eb   : > { %4645 = vmatpush3.bf16.msra.mxu1 %v4642_v50 }
 0x4ec   : > { %v6070_v58 = vadd.f32 %v3449_v53, %v6028_v9  ;;  %v3450_v30 = vpop.f32.mrb[48].mxu0 }
 0x4ed   : > { %v3451_v48 = vpop.f32.mrb[49].mxu0 }
 0x4ee   : > { %v2030_v0 = vmax.f32 %v6070_v58, 0.0  ;;  %v3452_v1 = vadd.f32 %v3451_v48, %v3450_v30  ;;  %v6176_v58 = vld [vmem:[%s6455_s7 + $0x1] ss:$0 sm:$0xff] }
 0x4f0   : > { %v3453_v61 = vpop.f32.mrb[50].mxu0  ;;  %v4646_v43 = vpack.c.bf16 %v2030_v0, %v2029_v55  ;;  %v6079_v8 = vadd.f32 %v3452_v1, %v6028_v9 }
 0x4f1   : > { %v3454_v2 = vpop.f32.mrb[51].mxu0 }
 0x4f2   : > { %v3455_v51 = vadd.f32 %v3454_v2, %v3453_v61  ;;  %4647 = vmatprep.subr.bf16.mxu1 %v4646_v43  ;;  %v2031_v22 = vmax.f32 %v6079_v8, 0.0 }
 0x4f3   : > { %4649 = vmatpush3.bf16.msra.mxu1 %v4646_v43 }
 0x4f4   : > { %v6082_v52 = vadd.f32 %v3455_v51, %v6028_v9  ;;  %v3456_v15 = vpop.f32.mrb[52].mxu0 }
 0x4f5   : > { %v3457_v59 = vpop.f32.mrb[53].mxu0 }
 0x4f6   : > { %v2032_v23 = vmax.f32 %v6082_v52, 0.0  ;;  %v3458_v26 = vadd.f32 %v3457_v59, %v3456_v15 }
 0x4f8   : > { %v3459_v29 = vpop.f32.mrb[54].mxu0  ;;  %v4650_v31 = vpack.c.bf16 %v2032_v23, %v2031_v22  ;;  %v6091_v34 = vadd.f32 %v3458_v26, %v6028_v9 }
 0x4f9   : > { %v3460_v49 = vpop.f32.mrb[55].mxu0 }
 0x4fa   : > { %v3461_v7 = vadd.f32 %v3460_v49, %v3459_v29  ;;  %4651 = vmatprep.subr.bf16.mxu1 %v4650_v31  ;;  %v2033_v47 = vmax.f32 %v6091_v34, 0.0  ;;  %v2056_v29 = vld [vmem:[#allocation12 + $0x180] sm:$0xff] }
 0x4fb   : > { %4653 = vmatpush3.bf16.msra.mxu1 %v4650_v31  ;;  %v2057_v31 = vld [vmem:[#allocation12 + $0x188] sm:$0xff] }
 0x4fc   : > { %v6094_v10 = vadd.f32 %v3461_v7, %v6028_v9  ;;  %v3462_v17 = vpop.f32.mrb[56].mxu0 }
 0x4fd   : > { %v3463_v60 = vpop.f32.mrb[57].mxu0 }
 0x4fe   : > { %v2034_v21 = vmax.f32 %v6094_v10, 0.0  ;;  %v3464_v3 = vadd.f32 %v3463_v60, %v3462_v17  ;;  %v4666_v60 = vpack.c.bf16 %v2057_v31, %v2056_v29  ;;  %v2045_v29 = vld [vmem:[#allocation12 + $0x128] sm:$0xff]  ;;  %v2062_v31 = vld [vmem:[#allocation12 + $0x1b0] sm:$0xff] }
 0x500   : > { %v3465_v38 = vpop.f32.mrb[58].mxu0  ;;  %v4654_v62 = vpack.c.bf16 %v2034_v21, %v2033_v47  ;;  %v6103_v63 = vadd.f32 %v3464_v3, %v6028_v9  ;;  %v2040_v3 = vld [vmem:[#allocation12 + $0x100] sm:$0xff] }
 0x501   : > { %v3466_v57 = vpop.f32.mrb[59].mxu0 }
 0x502   : > { %v3467_v50 = vadd.f32 %v3466_v57, %v3465_v38  ;;  %4655 = vmatprep.subr.bf16.mxu1 %v4654_v62  ;;  %v2035_v48 = vmax.f32 %v6103_v63, 0.0  ;;  %v2041_v38 = vld [vmem:[#allocation12 + $0x108] sm:$0xff]  ;;  %v2059_v57 = vld [vmem:[#allocation12 + $0x198] sm:$0xff] }
 0x503   : > { %4657 = vmatpush3.bf16.msra.mxu1 %v4654_v62  ;;  %v2058_v62 = vld [vmem:[#allocation12 + $0x190] sm:$0xff] }
 0x504   : > { %v6106_v54 = vadd.f32 %v3467_v50, %v6028_v9  ;;  %v3468_v53 = vpop.f32.mrb[60].mxu0  ;;  %v4670_v50 = vpack.c.bf16 %v2059_v57, %v2058_v62 }
 0x505   : > { %v3469_v30 = vpop.f32.mrb[61].mxu0 }
 0x506   : > { %v2036_v1 = vmax.f32 %v6106_v54, 0.0  ;;  %v3470_v61 = vadd.f32 %v3469_v30, %v3468_v53  ;;  %v2042_v53 = vld [vmem:[#allocation12 + $0x110] sm:$0xff]  ;;  %v2043_v30 = vld [vmem:[#allocation12 + $0x118] sm:$0xff] }
 0x508   : > { %v3471_v43 = vpop.f32.mrb[62].mxu0  ;;  %v4658_v2 = vpack.c.bf16 %v2036_v1, %v2035_v48  ;;  %v6115_v15 = vadd.f32 %v3470_v61, %v6028_v9  ;;  %v2060_v61 = vld [vmem:[#allocation12 + $0x1a0] sm:$0xff] }
 0x509   : > { %v3472_v51 = vpop.f32.mrb[63].mxu0 }
 0x50a   : > { %v3473_v59 = vadd.f32 %v3472_v51, %v3471_v43  ;;  %4659 = vmatprep.subr.bf16.mxu1 %v4658_v2  ;;  %v2037_v49 = vmax.f32 %v6115_v15, 0.0  ;;  %v2061_v43 = vld [vmem:[#allocation12 + $0x1a8] sm:$0xff] }
 0x50b   : > { %4661 = vmatpush3.bf16.msra.mxu1 %v4658_v2  ;;  %v4672_v2 = vpack.c.bf16 %v2043_v30, %v2042_v53  ;;  %v4674_v51 = vpack.c.bf16 %v2061_v43, %v2060_v61  ;;  %v2050_v30 = vld [vmem:[#allocation12 + $0x150] sm:$0xff]  ;;  %v2068_v61 = vld [vmem:[#allocation12 + $0x1e0] sm:$0xff] }
 0x50c   : > { %v6118_v26 = vadd.f32 %v3473_v59, %v6028_v9  ;;  %v4668_v9 = vpack.c.bf16 %v2041_v38, %v2040_v3  ;;  %v2044_v59 = vld [vmem:[#allocation12 + $0x120] sm:$0xff]  ;;  %v2046_v3 = vld [vmem:[#allocation12 + $0x130] sm:$0xff] }
 0x50d   : > { %v2064_v38 = vld [vmem:[#allocation12 + $0x1c0] sm:$0xff] }
 0x50e   : > { %v6470_v7 = vmax.f32 %v6118_v26, 0.0  ;;  %v6500_v4 = vmax.f32 %v6118_v26, 0.0 }
 0x510   : > { %v4662_v17 = vpack.c.bf16 %v6470_v7, %v2037_v49  ;;  %v2063_v7 = vld [vmem:[#allocation12 + $0x1b8] sm:$0xff] }
 0x512   : > { %4663 = vmatprep.subr.bf16.mxu1 %v4662_v17 }
 0x513   : > { %4665 = vmatpush3.bf16.msra.mxu1 %v4662_v17  ;;  %v4676_v17 = vpack.c.bf16 %v2045_v29, %v2044_v59  ;;  %v2070_v59 = vld [vmem:[#allocation12 + $0x1f0] sm:$0xff] }
 0x514   : > { %4667 = vmatprep.subr.bf16.mxu1 %v4666_v60  ;;  %v4678_v60 = vpack.c.bf16 %v2063_v7, %v2062_v31 }
 0x516   : > { %4211 = vmatmul.mubr.f32.vlgmr.msra.gmra.mrb[16].mxu1 %v5830_v32  ;;  %v2047_v32 = vld [vmem:[#allocation12 + $0x138] sm:$0xff] }
 0x517   : > { %4213 = vmatprep.mubr.f32.mxu1 %v5832_v11  ;;  %4669 = vmatpush3.bf16.msra.mxu1 %v4668_v9  ;;  %v2065_v11 = vld [vmem:[#allocation12 + $0x1c8] sm:$0xff]  ;;  %v4680_v62 = vpack.c.bf16 %v2047_v32, %v2046_v3  ;;  %v2048_v9 = vld [vmem:[#allocation12 + $0x140] sm:$0xff] }
 0x518   : > { %4671 = vmatprep.subr.bf16.mxu1 %v4670_v50  ;;  %v4682_v57 = vpack.c.bf16 %v2065_v11, %v2064_v38  ;;  %v2066_v50 = vld [vmem:[#allocation12 + $0x1d0] sm:$0xff] }
 0x51a   : > { %4214 = vmatmul.mubr.f32.gmra.mrb[18].mxu1 %v5836_v12  ;;  %v2049_v12 = vld [vmem:[#allocation12 + $0x148] sm:$0xff] }
 0x51b   : > { %4216 = vmatprep.mubr.f32.mxu1 %v5838_v33  ;;  %4673 = vmatpush3.bf16.msra.mxu1 %v4672_v2  ;;  %v2067_v33 = vld [vmem:[#allocation12 + $0x1d8] sm:$0xff]  ;;  %v4684_v7 = vpack.c.bf16 %v2049_v12, %v2048_v9 }
 0x51c   : > { %4675 = vmatprep.subr.bf16.mxu1 %v4674_v51  ;;  %v4686_v53 = vpack.c.bf16 %v2067_v33, %v2066_v50  ;;  %v2052_v51 = vld [vmem:[#allocation12 + $0x160] sm:$0xff] }
 0x51e   : > { %4217 = vmatmul.mubr.f32.gmra.mrb[20].mxu1 %v5842_v36  ;;  %v2051_v36 = vld [vmem:[#allocation12 + $0x158] sm:$0xff] }
 0x51f   : > { %4219 = vmatprep.mubr.f32.mxu1 %v5844_v37  ;;  %4677 = vmatpush3.bf16.msra.mxu1 %v4676_v17  ;;  %v2069_v37 = vld [vmem:[#allocation12 + $0x1e8] sm:$0xff]  ;;  %v4688_v43 = vpack.c.bf16 %v2051_v36, %v2050_v30  ;;  %v2054_v17 = vld [vmem:[#allocation12 + $0x170] sm:$0xff] }
 0x520   : > { %4679 = vmatprep.subr.bf16.mxu1 %v4678_v60  ;;  %v4690_v2 = vpack.c.bf16 %v2069_v37, %v2068_v61 }
 0x522   : > { %4220 = vmatmul.mubr.f32.gmra.mrb[22].mxu1 %v5848_v39  ;;  %v2053_v39 = vld [vmem:[#allocation12 + $0x168] sm:$0xff] }
 0x523   : > { %4222 = vmatprep.mubr.f32.mxu1 %v5850_v19  ;;  %4681 = vmatpush3.bf16.msra.mxu1 %v4680_v62  ;;  %v2071_v19 = vld [vmem:[#allocation12 + $0x1f8] sm:$0xff]  ;;  %v4692_v29 = vpack.c.bf16 %v2053_v39, %v2052_v51 }
 0x524   : > { %4683 = vmatprep.subr.bf16.mxu1 %v4682_v57  ;;  %v4694_v31 = vpack.c.bf16 %v2071_v19, %v2070_v59 }
 0x526   : > { %4223 = vmatmul.mubr.f32.gmra.mrb[24].mxu1 %v5854_v20  ;;  %v2055_v20 = vld [vmem:[#allocation12 + $0x178] sm:$0xff] }
 0x527   : > { %4225 = vmatprep.mubr.f32.mxu1 %v5856_v40  ;;  %4685 = vmatpush3.bf16.msra.mxu1 %v4684_v7  ;;  %v4696_v40 = vpack.c.bf16 %v2055_v20, %v2054_v17 }
 0x528   : > { %4687 = vmatprep.subr.bf16.mxu1 %v4686_v53 }
 0x52a   : > { %4226 = vmatmul.mubr.f32.gmra.mrb[26].mxu1 %v5860_v41 }
 0x52b   : > { %4228 = vmatprep.mubr.f32.mxu1 %v5862_v42  ;;  %4689 = vmatpush3.bf16.msra.mxu1 %v4688_v43 }
 0x52c   : > { %4691 = vmatprep.subr.bf16.mxu1 %v4690_v2 }
 0x52e   : > { %4229 = vmatmul.mubr.f32.gmra.mrb[28].mxu1 %v5866_v27 }
 0x52f   : > { %4231 = vmatprep.mubr.f32.mxu1 %v5868_v28  ;;  %4693 = vmatpush3.bf16.msra.mxu1 %v4692_v29 }
 0x530   : > { %4695 = vmatprep.subr.bf16.mxu1 %v4694_v31 }
 0x532   : > { %4232 = vmatmul.mubr.f32.gmra.mrb[30].mxu1 %v5872_v46 }
 0x533   : > { %2289 = vmatprep.mubr.f32.mxu1 %v2023_v6  ;;  %4697 = vmatpush3.bf16.msra.mxu1 %v4696_v40 }
 0x5e9   : > { %v4212_v41 = vpop.f32.mrb[16].mxu1 }
 0x5ea   : > { %v2140_v42 = vpop.f32.mrb[17].mxu1 }
 0x5eb   : > { %2290 = vmatmul.mubr.f32.vlgmr.msra.gmra.mrb[32].mxu1 %v2140_v42 }
 0x5ec   : > { %2294 = vmatprep.mubr.f32.mxu1 %v2024_v24 }
 0x5ed   : > { %v4215_v60 = vpop.f32.mrb[18].mxu1 }
 0x5ee   : > { %v2150_v3 = vpop.f32.mrb[19].mxu1 }
 0x5ef   : > { %2295 = vmatmul.mubr.f32.gmra.mrb[34].mxu1 %v4212_v41 }
 0x5f0   : > { %2299 = vmatprep.mubr.f32.mxu1 %v2025_v13 }
 0x5f1   : > { %v4218_v27 = vpop.f32.mrb[20].mxu1 }
 0x5f2   : > { %v2160_v28 = vpop.f32.mrb[21].mxu1 }
 0x5f3   : > { %2300 = vmatmul.mubr.f32.gmra.mrb[36].mxu1 %v2150_v3 }
 0x5f4   : > { %2304 = vmatprep.mubr.f32.mxu1 %v2026_v14 }
 0x5f5   : > { %v4221_v46 = vpop.f32.mrb[22].mxu1 }
 0x5f6   : > { %v2170_v16 = vpop.f32.mrb[23].mxu1 }
 0x5f7   : > { %2305 = vmatmul.mubr.f32.gmra.mrb[38].mxu1 %v4215_v60 }
 0x5f8   : > { %2309 = vmatprep.mubr.f32.mxu1 %v2027_v5 }
 0x5f9   : > { %v4224_v18 = vpop.f32.mrb[24].mxu1 }
 0x5fa   : > { %v2180_v6 = vpop.f32.mrb[25].mxu1 }
 0x5fb   : > { %2310 = vmatmul.mubr.f32.gmra.mrb[40].mxu1 %v2160_v28 }
 0x5fc   : > { %2314 = vmatprep.mubr.f32.mxu1 %v2028_v56 }
 0x5fd   : > { %v4227_v24 = vpop.f32.mrb[26].mxu1 }
 0x5fe   : > { %v2190_v45 = vpop.f32.mrb[27].mxu1 }
 0x5ff   : > { %2315 = vmatmul.mubr.f32.gmra.mrb[42].mxu1 %v4218_v27 }
 0x600   : > { %2319 = vmatprep.mubr.f32.mxu1 %v2029_v55 }
 0x601   : > { %v4230_v44 = vpop.f32.mrb[28].mxu1 }
 0x602   : > { %v2200_v13 = vpop.f32.mrb[29].mxu1 }
 0x603   : > { %2320 = vmatmul.mubr.f32.gmra.mrb[44].mxu1 %v2170_v16 }
 0x604   : > { %2324 = vmatprep.mubr.f32.mxu1 %v2030_v0 }
 0x605   : > { %v4233_v14 = vpop.f32.mrb[30].mxu1 }
 0x606   : > { %v2210_v25 = vpop.f32.mrb[31].mxu1 }
 0x607   : > { %2325 = vmatmul.mubr.f32.gmra.mrb[46].mxu1 %v4221_v46 }
 0x608   : > { %2329 = vmatprep.mubr.f32.mxu1 %v2031_v22 }
 0x60b   : > { %2330 = vmatmul.mubr.f32.gmra.mrb[48].mxu1 %v2180_v6 }
 0x60c   : > { %2334 = vmatprep.mubr.f32.mxu1 %v2032_v23 }
 0x60f   : > { %2335 = vmatmul.mubr.f32.gmra.mrb[50].mxu1 %v4224_v18 }
 0x610   : > { %2339 = vmatprep.mubr.f32.mxu1 %v2033_v47 }
 0x613   : > { %2340 = vmatmul.mubr.f32.gmra.mrb[52].mxu1 %v2190_v45 }
 0x614   : > { %2344 = vmatprep.mubr.f32.mxu1 %v2034_v21 }
 0x617   : > { %2345 = vmatmul.mubr.f32.gmra.mrb[54].mxu1 %v4227_v24 }
 0x618   : > { %2349 = vmatprep.mubr.f32.mxu1 %v2035_v48 }
 0x61b   : > { %2350 = vmatmul.mubr.f32.gmra.mrb[56].mxu1 %v2200_v13 }
 0x61c   : > { %2354 = vmatprep.mubr.f32.mxu1 %v2036_v1 }
 0x61f   : > { %2355 = vmatmul.mubr.f32.gmra.mrb[58].mxu1 %v4230_v44 }
 0x620   : > { %2359 = vmatprep.mubr.f32.mxu1 %v2037_v49 }
 0x623   : > { %2360 = vmatmul.mubr.f32.gmra.mrb[60].mxu1 %v2210_v25 }
 0x624   : > { %2364 = vmatprep.mubr.f32.mxu1 %v6500_v4 }
 0x627   : > { %2365 = vmatmul.mubr.f32.gmra.mrb[62].mxu1 %v4233_v14 }
 0x6be   : > { %v3538_v5 = vpop.f32.mrb[32].mxu1 }
 0x6bf   : > { %v3539_v56 = vpop.f32.mrb[33].mxu1 }
 0x6c0   : > { %v3540_v35 = vadd.f32 %v3539_v56, %v3538_v5 }
 0x6c2   : > { %v3541_v55 = vpop.f32.mrb[34].mxu1  ;;  %v6179_v8 = vadd.f32 %v3540_v35, %v6176_v58 }
 0x6c3   : > { %v3542_v0 = vpop.f32.mrb[35].mxu1 }
 0x6c4   : > { %v3543_v52 = vadd.f32 %v3542_v0, %v3541_v55  ;;  %v2370_v10 = vmax.f32 %v6179_v8, 0.0  ;;  %v2741_v8 = vld [vmem:[#allocation13 + $0x40] sm:$0xff] }
 0x6c6   : > { %v6182_v22 = vadd.f32 %v3543_v52, %v6176_v58  ;;  %v3544_v23 = vpop.f32.mrb[36].mxu1 }
 0x6c7   : > { %v3545_v34 = vpop.f32.mrb[37].mxu1 }
 0x6c8   : > { %v2371_v47 = vmax.f32 %v6182_v22, 0.0  ;;  %v3546_v21 = vadd.f32 %v3545_v34, %v3544_v23 }
 0x6ca   : > { %v3547_v63 = vpop.f32.mrb[38].mxu1  ;;  %v4698_v54 = vpack.c.bf16 %v2371_v47, %v2370_v10  ;;  %v6191_v1 = vadd.f32 %v3546_v21, %v6176_v58 }
 0x6cb   : > { %v3548_v48 = vpop.f32.mrb[39].mxu1 }
 0x6cc   : > { %v3549_v15 = vadd.f32 %v3548_v48, %v3547_v63  ;;  %4699 = vmatprep.subr.bf16.mxu0 %v4698_v54  ;;  %v2372_v38 = vmax.f32 %v6191_v1, 0.0 }
 0x6cd   : > { %4701 = vmatpush3.bf16.msra.mxu0 %v4698_v54 }
 0x6ce   : > { %v6194_v26 = vadd.f32 %v3549_v15, %v6176_v58  ;;  %v3550_v49 = vpop.f32.mrb[40].mxu1 }
 0x6cf   : > { %v3551_v32 = vpop.f32.mrb[41].mxu1 }
 0x6d0   : > { %v2373_v11 = vmax.f32 %v6194_v26, 0.0  ;;  %v3552_v62 = vadd.f32 %v3551_v32, %v3550_v49 }
 0x6d2   : > { %v3553_v57 = vpop.f32.mrb[42].mxu1  ;;  %v4702_v9 = vpack.c.bf16 %v2373_v11, %v2372_v38  ;;  %v6203_v50 = vadd.f32 %v3552_v62, %v6176_v58 }
 0x6d3   : > { %v3554_v12 = vpop.f32.mrb[43].mxu1 }
 0x6d4   : > { %v3555_v33 = vadd.f32 %v3554_v12, %v3553_v57  ;;  %4703 = vmatprep.subr.bf16.mxu0 %v4702_v9  ;;  %v2374_v36 = vmax.f32 %v6203_v50, 0.0 }
 0x6d5   : > { %4705 = vmatpush3.bf16.msra.mxu0 %v4702_v9 }
 0x6d6   : > { %v6206_v7 = vadd.f32 %v3555_v33, %v6176_v58  ;;  %v3556_v53 = vpop.f32.mrb[44].mxu1 }
 0x6d7   : > { %v3557_v30 = vpop.f32.mrb[45].mxu1 }
 0x6d8   : > { %v2375_v61 = vmax.f32 %v6206_v7, 0.0  ;;  %v3558_v37 = vadd.f32 %v3557_v30, %v3556_v53  ;;  %v2745_v7 = vld [vmem:[#allocation13 + $0x60] sm:$0xff] }
 0x6da   : > { %v3559_v43 = vpop.f32.mrb[46].mxu1  ;;  %v4706_v2 = vpack.c.bf16 %v2375_v61, %v2374_v36  ;;  %v6215_v39 = vadd.f32 %v3558_v37, %v6176_v58  ;;  %v2403_v37 = vld [vmem:[#allocation12 + $0x280] sm:$0xff] }
 0x6db   : > { %v3560_v51 = vpop.f32.mrb[47].mxu1 }
 0x6dc   : > { %v3561_v59 = vadd.f32 %v3560_v51, %v3559_v43  ;;  %4707 = vmatprep.subr.bf16.mxu0 %v4706_v2  ;;  %v2376_v17 = vmax.f32 %v6215_v39, 0.0  ;;  %v2404_v43 = vld [vmem:[#allocation12 + $0x288] sm:$0xff] }
 0x6dd   : > { %4709 = vmatpush3.bf16.msra.mxu0 %v4706_v2 }
 0x6de   : > { %v6218_v19 = vadd.f32 %v3561_v59, %v6176_v58  ;;  %v3562_v29 = vpop.f32.mrb[48].mxu1 }
 0x6df   : > { %v3563_v31 = vpop.f32.mrb[49].mxu1 }
 0x6e0   : > { %v2377_v20 = vmax.f32 %v6218_v19, 0.0  ;;  %v3564_v40 = vadd.f32 %v3563_v31, %v3562_v29  ;;  %v4730_v29 = vpack.c.bf16 %v2404_v43, %v2403_v37  ;;  %v2387_v31 = vld [vmem:[#allocation12 + $0x200] sm:$0xff]  ;;  %v2747_v19 = vld [vmem:[#allocation13 + $0x70] sm:$0xff] }
 0x6e2   : > { %v3565_v41 = vpop.f32.mrb[50].mxu1  ;;  %v4710_v42 = vpack.c.bf16 %v2377_v20, %v2376_v17  ;;  %v6227_v3 = vadd.f32 %v3564_v40, %v6176_v58  ;;  %v2388_v40 = vld [vmem:[#allocation12 + $0x208] sm:$0xff] }
 0x6e3   : > { %v3566_v60 = vpop.f32.mrb[51].mxu1 }
 0x6e4   : > { %v3567_v27 = vadd.f32 %v3566_v60, %v3565_v41  ;;  %4711 = vmatprep.subr.bf16.mxu0 %v4710_v42  ;;  %v2378_v18 = vmax.f32 %v6227_v3, 0.0  ;;  %v2405_v41 = vld [vmem:[#allocation12 + $0x290] sm:$0xff] }
 0x6e5   : > { %4713 = vmatpush3.bf16.msra.mxu0 %v4710_v42  ;;  %v2406_v42 = vld [vmem:[#allocation12 + $0x298] sm:$0xff] }
 0x6e6   : > { %v6230_v28 = vadd.f32 %v3567_v27, %v6176_v58  ;;  %v3568_v46 = vpop.f32.mrb[52].mxu1  ;;  %v4734_v60 = vpack.c.bf16 %v2406_v42, %v2405_v41  ;;  %v2389_v27 = vld [vmem:[#allocation12 + $0x210] sm:$0xff]  ;;  %v4989_v41 = vld [vmem:[#allocation4 + $0x38] sm:$0xff]  ;;  %v4990_v42 = vld [vmem:[#allocation4 + $0x40] sm:$0xff] }
 0x6e7   : > { %v3569_v16 = vpop.f32.mrb[53].mxu1 }
 0x6e8   : > { %v2379_v6 = vmax.f32 %v6230_v28, 0.0  ;;  %v3570_v24 = vadd.f32 %v3569_v16, %v3568_v46  ;;  %v2390_v46 = vld [vmem:[#allocation12 + $0x218] sm:$0xff]  ;;  %v2407_v16 = vld [vmem:[#allocation12 + $0x2a0] sm:$0xff] }
 0x6e9   : > { %v6309_v28 = vld [vmem:[%s6455_s7 + $0x2] ss:$0 sm:$0xff] }
 0x6ea   : > { %v3571_v45 = vpop.f32.mrb[54].mxu1  ;;  %v4714_v44 = vpack.c.bf16 %v2379_v6, %v2378_v18  ;;  %v6239_v14 = vadd.f32 %v3570_v24, %v6176_v58  ;;  %v2408_v24 = vld [vmem:[#allocation12 + $0x2a8] sm:$0xff] }
 0x6eb   : > { %v3572_v13 = vpop.f32.mrb[55].mxu1 }
 0x6ec   : > { %v3573_v25 = vadd.f32 %v3572_v13, %v3571_v45  ;;  %4715 = vmatprep.subr.bf16.mxu0 %v4714_v44  ;;  %v2380_v35 = vmax.f32 %v6239_v14, 0.0  ;;  %v4983_v45 = vld [vmem:[#allocation4 + $0x8] sm:$0xff]  ;;  %v4736_v13 = vpack.c.bf16 %v2390_v46, %v2389_v27  ;;  %v2397_v27 = vld [vmem:[#allocation12 + $0x250] sm:$0xff]  ;;  %v2398_v46 = vld [vmem:[#allocation12 + $0x258] sm:$0xff] }
 0x6ed   : > { %4717 = vmatpush3.bf16.msra.mxu0 %v4714_v44  ;;  %v4984_v44 = vld [vmem:[#allocation4 + $0x10] sm:$0xff] }
 0x6ee   : > { %v6242_v4 = vadd.f32 %v3573_v25, %v6176_v58  ;;  %v3574_v5 = vpop.f32.mrb[56].mxu1  ;;  %v4738_v25 = vpack.c.bf16 %v2408_v24, %v2407_v16  ;;  %v2415_v16 = vld [vmem:[#allocation12 + $0x2e0] sm:$0xff]  ;;  %v2416_v24 = vld [vmem:[#allocation12 + $0x2e8] sm:$0xff] }
 0x6ef   : > { %v3575_v56 = vpop.f32.mrb[57].mxu1 }
 0x6f0   : > { %v2381_v55 = vmax.f32 %v6242_v4, 0.0  ;;  %v3576_v0 = vadd.f32 %v3575_v56, %v3574_v5  ;;  %v2391_v5 = vld [vmem:[#allocation12 + $0x220] sm:$0xff]  ;;  %v2392_v56 = vld [vmem:[#allocation12 + $0x228] sm:$0xff] }
 0x6f2   : > { %v3577_v52 = vpop.f32.mrb[58].mxu1  ;;  %v4718_v23 = vpack.c.bf16 %v2381_v55, %v2380_v35  ;;  %v6251_v21 = vadd.f32 %v3576_v0, %v6176_v58  ;;  %v2409_v0 = vld [vmem:[#allocation12 + $0x2b0] sm:$0xff] }
 0x6f3   : > { %v3578_v34 = vpop.f32.mrb[59].mxu1 }
 0x6f4   : > { %v3579_v63 = vadd.f32 %v3578_v34, %v3577_v52  ;;  %4719 = vmatprep.subr.bf16.mxu0 %v4718_v23  ;;  %v2382_v49 = vmax.f32 %v6251_v21, 0.0  ;;  %v2410_v52 = vld [vmem:[#allocation12 + $0x2b8] sm:$0xff]  ;;  %v4986_v34 = vld [vmem:[#allocation4 + $0x20] sm:$0xff] }
 0x6f5   : > { %4721 = vmatpush3.bf16.msra.mxu0 %v4718_v23  ;;  %v4985_v23 = vld [vmem:[#allocation4 + $0x18] sm:$0xff] }
 0x6f6   : > { %v6254_v54 = vadd.f32 %v3579_v63, %v6176_v58  ;;  %v3580_v48 = vpop.f32.mrb[60].mxu1  ;;  %v4740_v63 = vpack.c.bf16 %v2392_v56, %v2391_v5  ;;  %v2399_v5 = vld [vmem:[#allocation12 + $0x260] sm:$0xff]  ;;  %v2400_v56 = vld [vmem:[#allocation12 + $0x268] sm:$0xff] }
 0x6f7   : > { %v3581_v15 = vpop.f32.mrb[61].mxu1 }
 0x6f8   : > { %v2383_v32 = vmax.f32 %v6254_v54, 0.0  ;;  %v3582_v62 = vadd.f32 %v3581_v15, %v3580_v48  ;;  %v4742_v48 = vpack.c.bf16 %v2410_v52, %v2409_v0  ;;  %v2393_v15 = vld [vmem:[#allocation12 + $0x230] sm:$0xff]  ;;  %v2418_v52 = vld [vmem:[#allocation12 + $0x2f8] sm:$0xff] }
 0x6f9   : > { %v2417_v0 = vld [vmem:[#allocation12 + $0x2f0] sm:$0xff] }
 0x6fa   : > { %v3583_v57 = vpop.f32.mrb[62].mxu1  ;;  %v4722_v9 = vpack.c.bf16 %v2383_v32, %v2382_v49  ;;  %v6263_v33 = vadd.f32 %v3582_v62, %v6176_v58  ;;  %v2394_v62 = vld [vmem:[#allocation12 + $0x238] sm:$0xff] }
 0x6fb   : > { %v3584_v12 = vpop.f32.mrb[63].mxu1  ;;  %v4744_v37 = vpack.c.bf16 %v2394_v62, %v2393_v15  ;;  %v2401_v15 = vld [vmem:[#allocation12 + $0x270] sm:$0xff]  ;;  %v2402_v62 = vld [vmem:[#allocation12 + $0x278] sm:$0xff] }
 0x6fc   : > { %v3585_v53 = vadd.f32 %v3584_v12, %v3583_v57  ;;  %4723 = vmatprep.subr.bf16.mxu0 %v4722_v9  ;;  %v2384_v2 = vmax.f32 %v6263_v33, 0.0  ;;  %v2411_v57 = vld [vmem:[#allocation12 + $0x2c0] sm:$0xff]  ;;  %v4987_v12 = vld [vmem:[#allocation4 + $0x28] sm:$0xff] }
 0x6fd   : > { %4725 = vmatpush3.bf16.msra.mxu0 %v4722_v9  ;;  %v2412_v9 = vld [vmem:[#allocation12 + $0x2c8] sm:$0xff] }
 0x6fe   : > { %v6266_v30 = vadd.f32 %v3585_v53, %v6176_v58  ;;  %v4732_v58 = vpack.c.bf16 %v2388_v40, %v2387_v31  ;;  %v4988_v53 = vld [vmem:[#allocation4 + $0x30] sm:$0xff]  ;;  %v4746_v43 = vpack.c.bf16 %v2412_v9, %v2411_v57  ;;  %v2414_v40 = vld [vmem:[#allocation12 + $0x2d8] sm:$0xff]  ;;  %v4995_v57 = vld [vmem:[#allocation4 + $0x68] sm:$0xff] }
 0x6ff   : > { %v2413_v31 = vld [vmem:[#allocation12 + $0x2d0] sm:$0xff] }
 0x700   : > { %v2385_v51 = vmax.f32 %v6266_v30, 0.0  ;;  %v4996_v9 = vld [vmem:[#allocation4 + $0x70] sm:$0xff] }
 0x702   : > { %v4726_v59 = vpack.c.bf16 %v2385_v51, %v2384_v2 }
 0x704   : > { %4727 = vmatprep.subr.bf16.mxu0 %v4726_v59 }
 0x705   : > { %4729 = vmatpush3.bf16.msra.mxu0 %v4726_v59  ;;  %v2395_v59 = vld [vmem:[#allocation12 + $0x240] sm:$0xff] }
 0x706   : > { %4731 = vmatprep.subr.bf16.mxu0 %v4730_v29  ;;  %v2396_v29 = vld [vmem:[#allocation12 + $0x248] sm:$0xff] }
 0x708   : > { %4267 = vmatmul.mubr.f32.vlgmr.msra.gmra.mrb[64].mxu0 %v4983_v45  ;;  %v4991_v45 = vld [vmem:[#allocation4 + $0x48] sm:$0xff] }
 0x709   : > { %4269 = vmatprep.mubr.f32.mxu0 %v4984_v44  ;;  %4733 = vmatpush3.bf16.msra.mxu0 %v4732_v58  ;;  %v4748_v58 = vpack.c.bf16 %v2396_v29, %v2395_v59  ;;  %v4992_v44 = vld [vmem:[#allocation4 + $0x50] sm:$0xff] }
 0x70a   : > { %4735 = vmatprep.subr.bf16.mxu0 %v4734_v60  ;;  %v4750_v60 = vpack.c.bf16 %v2414_v40, %v2413_v31  ;;  %v2735_v59 = vld [vmem:[#allocation13 + $0x10] sm:$0xff]  ;;  %v2736_v31 = vld [vmem:[#allocation13 + $0x18] sm:$0xff] }
 0x70b   : > { %v4766_v40 = vpack.c.bf16 %v2736_v31, %v2735_v59 }
 0x70c   : > { %4270 = vmatmul.mubr.f32.gmra.mrb[66].mxu0 %v4985_v23  ;;  %v4993_v23 = vld [vmem:[#allocation4 + $0x58] sm:$0xff] }
 0x70d   : > { %4272 = vmatprep.mubr.f32.mxu0 %v4986_v34  ;;  %4737 = vmatpush3.bf16.msra.mxu0 %v4736_v13  ;;  %v4752_v13 = vpack.c.bf16 %v2398_v46, %v2397_v27  ;;  %v4994_v34 = vld [vmem:[#allocation4 + $0x60] sm:$0xff]  ;;  %v2740_v27 = vld [vmem:[#allocation13 + $0x38] sm:$0xff] }
 0x70e   : > { %4739 = vmatprep.subr.bf16.mxu0 %v4738_v25  ;;  %v4754_v25 = vpack.c.bf16 %v2416_v24, %v2415_v16  ;;  %v2743_v24 = vld [vmem:[#allocation13 + $0x50] sm:$0xff] }
 0x710   : > { %4273 = vmatmul.mubr.f32.gmra.mrb[68].mxu0 %v4987_v12  ;;  %v4760_v12 = vpack.c.bf16 %v2402_v62, %v2401_v15 }
 0x711   : > { %4275 = vmatprep.mubr.f32.mxu0 %v4988_v53  ;;  %4741 = vmatpush3.bf16.msra.mxu0 %v4740_v63  ;;  %v4756_v63 = vpack.c.bf16 %v2400_v56, %v2399_v5  ;;  %v4997_v53 = vld [vmem:[#allocation4 + $0x78] sm:$0xff] }
 0x712   : > { %4743 = vmatprep.subr.bf16.mxu0 %v4742_v48  ;;  %v4758_v48 = vpack.c.bf16 %v2418_v52, %v2417_v0 }
 0x714   : > { %4276 = vmatmul.mubr.f32.gmra.mrb[70].mxu0 %v4989_v41  ;;  %v2737_v41 = vld [vmem:[#allocation13 + $0x20] sm:$0xff] }
 0x715   : > { %4278 = vmatprep.mubr.f32.mxu0 %v4990_v42  ;;  %4745 = vmatpush3.bf16.msra.mxu0 %v4744_v37  ;;  %v2733_v37 = vld [vmem:[#allocation13] sm:$0xff]  ;;  %v2738_v42 = vld [vmem:[#allocation13 + $0x28] sm:$0xff] }
 0x716   : > { %4747 = vmatprep.subr.bf16.mxu0 %v4746_v43  ;;  %v2734_v43 = vld [vmem:[#allocation13 + $0x8] sm:$0xff] }
 0x717   : > { %v4762_v29 = vpack.c.bf16 %v2734_v43, %v2733_v37 }
 0x718   : > { %4279 = vmatmul.mubr.f32.gmra.mrb[72].mxu0 %v4991_v45  ;;  %v2744_v45 = vld [vmem:[#allocation13 + $0x58] sm:$0xff] }
 0x719   : > { %4281 = vmatprep.mubr.f32.mxu0 %v4992_v44  ;;  %4749 = vmatpush3.bf16.msra.mxu0 %v4748_v58  ;;  %v4770_v58 = vpack.c.bf16 %v2738_v42, %v2737_v41  ;;  %v4782_v44 = vpack.c.bf16 %v2744_v45, %v2743_v24 }
 0x71a   : > { %4751 = vmatprep.subr.bf16.mxu0 %v4750_v60  ;;  %4763 = vmatprep.subr.bf16.mxu1 %v4762_v29  ;;  %v2739_v60 = vld [vmem:[#allocation13 + $0x30] sm:$0xff] }
 0x71b   : > { %4765 = vmatpush3.bf16.msra.mxu1 %v4762_v29  ;;  %v4774_v46 = vpack.c.bf16 %v2740_v27, %v2739_v60 }
 0x71c   : > { %4282 = vmatmul.mubr.f32.gmra.mrb[74].mxu0 %v4993_v23  ;;  %4767 = vmatprep.subr.bf16.mxu1 %v4766_v40 }
 0x71d   : > { %4284 = vmatprep.mubr.f32.mxu0 %v4994_v34  ;;  %4753 = vmatpush3.bf16.msra.mxu0 %v4752_v13 }
 0x71e   : > { %4755 = vmatprep.subr.bf16.mxu0 %v4754_v25 }
 0x71f   : > { %4769 = vmatpush3.bf16.msra.mxu1 %v4766_v40 }
 0x720   : > { %4285 = vmatmul.mubr.f32.gmra.mrb[76].mxu0 %v4995_v57  ;;  %4771 = vmatprep.subr.bf16.mxu1 %v4770_v58 }
 0x721   : > { %4287 = vmatprep.mubr.f32.mxu0 %v4996_v9  ;;  %4757 = vmatpush3.bf16.msra.mxu0 %v4756_v63 }
 0x722   : > { %4759 = vmatprep.subr.bf16.mxu0 %v4758_v48 }
 0x723   : > { %4773 = vmatpush3.bf16.msra.mxu1 %v4770_v58 }
 0x724   : > { %4288 = vmatmul.mubr.f32.gmra.mrb[78].mxu0 %v4997_v53  ;;  %4775 = vmatprep.subr.bf16.mxu1 %v4774_v46 }
 0x725   : > { %2636 = vmatprep.mubr.f32.mxu0 %v2370_v10  ;;  %4761 = vmatpush3.bf16.msra.mxu0 %v4760_v12  ;;  %v2742_v10 = vld [vmem:[#allocation13 + $0x48] sm:$0xff] }
 0x726   : > { %v4778_v16 = vpack.c.bf16 %v2742_v10, %v2741_v8 }
 0x727   : > { %4777 = vmatpush3.bf16.msra.mxu1 %v4774_v46 }
 0x728   : > { %4779 = vmatprep.subr.bf16.mxu1 %v4778_v16 }
 0x72b   : > { %4781 = vmatpush3.bf16.msra.mxu1 %v4778_v16 }
 0x72c   : > { %4783 = vmatprep.subr.bf16.mxu1 %v4782_v44 }
 0x72f   : > { %4785 = vmatpush3.bf16.msra.mxu1 %v4782_v44 }
 0x7db   : > { %v4268_v13 = vpop.f32.mrb[64].mxu0 }
 0x7dc   : > { %v2487_v25 = vpop.f32.mrb[65].mxu0 }
 0x7dd   : > { %2637 = vmatmul.mubr.f32.vlgmr.msra.gmra.mrb[80].mxu0 %v2487_v25 }
 0x7de   : > { %2641 = vmatprep.mubr.f32.mxu0 %v2371_v47 }
 0x7df   : > { %v4271_v5 = vpop.f32.mrb[66].mxu0 }
 0x7e0   : > { %v2497_v56 = vpop.f32.mrb[67].mxu0 }
 0x7e1   : > { %2642 = vmatmul.mubr.f32.gmra.mrb[82].mxu0 %v4268_v13 }
 0x7e2   : > { %2646 = vmatprep.mubr.f32.mxu0 %v2372_v38 }
 0x7e3   : > { %v4274_v0 = vpop.f32.mrb[68].mxu0 }
 0x7e4   : > { %v2507_v52 = vpop.f32.mrb[69].mxu0 }
 0x7e5   : > { %2647 = vmatmul.mubr.f32.gmra.mrb[84].mxu0 %v2497_v56 }
 0x7e6   : > { %2651 = vmatprep.mubr.f32.mxu0 %v2373_v11 }
 0x7e7   : > { %v4277_v23 = vpop.f32.mrb[70].mxu0 }
 0x7e8   : > { %v2517_v34 = vpop.f32.mrb[71].mxu0 }
 0x7e9   : > { %2652 = vmatmul.mubr.f32.gmra.mrb[86].mxu0 %v4271_v5 }
 0x7ea   : > { %2656 = vmatprep.mubr.f32.mxu0 %v2374_v36 }
 0x7eb   : > { %v4280_v22 = vpop.f32.mrb[72].mxu0 }
 0x7ec   : > { %v2527_v47 = vpop.f32.mrb[73].mxu0 }
 0x7ed   : > { %2657 = vmatmul.mubr.f32.gmra.mrb[88].mxu0 %v2507_v52 }
 0x7ee   : > { %2661 = vmatprep.mubr.f32.mxu0 %v2375_v61  ;;  %v2746_v61 = vld [vmem:[#allocation13 + $0x68] sm:$0xff] }
 0x7ef   : > { %v4283_v1 = vpop.f32.mrb[74].mxu0  ;;  %v4786_v39 = vpack.c.bf16 %v2746_v61, %v2745_v7 }
 0x7f0   : > { %v2537_v38 = vpop.f32.mrb[75].mxu0 }
 0x7f1   : > { %2662 = vmatmul.mubr.f32.gmra.mrb[90].mxu0 %v4274_v0  ;;  %4787 = vmatprep.subr.bf16.mxu1 %v4786_v39 }
 0x7f2   : > { %2666 = vmatprep.mubr.f32.mxu0 %v2376_v17  ;;  %4789 = vmatpush3.bf16.msra.mxu1 %v4786_v39  ;;  %v2748_v17 = vld [vmem:[#allocation13 + $0x78] sm:$0xff] }
 0x7f3   : > { %v4286_v26 = vpop.f32.mrb[76].mxu0 }
 0x7f4   : > { %v2547_v11 = vpop.f32.mrb[77].mxu0 }
 0x7f5   : > { %2667 = vmatmul.mubr.f32.gmra.mrb[92].mxu0 %v2517_v34 }
 0x7f6   : > { %2671 = vmatprep.mubr.f32.mxu0 %v2377_v20  ;;  %v4790_v20 = vpack.c.bf16 %v2748_v17, %v2747_v19 }
 0x7f7   : > { %v4289_v50 = vpop.f32.mrb[78].mxu0 }
 0x7f8   : > { %v2557_v36 = vpop.f32.mrb[79].mxu0  ;;  %4791 = vmatprep.subr.bf16.mxu1 %v4790_v20 }
 0x7f9   : > { %2672 = vmatmul.mubr.f32.gmra.mrb[94].mxu0 %v4277_v23  ;;  %4793 = vmatpush3.bf16.msra.mxu1 %v4790_v20 }
 0x7fa   : > { %2676 = vmatprep.mubr.f32.mxu0 %v2378_v18 }
 0x7fd   : > { %2677 = vmatmul.mubr.f32.gmra.mrb[96].mxu0 %v2527_v47 }
 0x7fe   : > { %2681 = vmatprep.mubr.f32.mxu0 %v2379_v6 }
 0x801   : > { %2682 = vmatmul.mubr.f32.gmra.mrb[98].mxu0 %v4280_v22 }
 0x802   : > { %2686 = vmatprep.mubr.f32.mxu0 %v2380_v35 }
 0x805   : > { %2687 = vmatmul.mubr.f32.gmra.mrb[100].mxu0 %v2537_v38 }
 0x806   : > { %2691 = vmatprep.mubr.f32.mxu0 %v2381_v55 }
 0x809   : > { %2692 = vmatmul.mubr.f32.gmra.mrb[102].mxu0 %v4283_v1 }
 0x80a   : > { %2696 = vmatprep.mubr.f32.mxu0 %v2382_v49 }
 0x80d   : > { %2697 = vmatmul.mubr.f32.gmra.mrb[104].mxu0 %v2547_v11 }
 0x80e   : > { %2701 = vmatprep.mubr.f32.mxu0 %v2383_v32 }
 0x811   : > { %2702 = vmatmul.mubr.f32.gmra.mrb[106].mxu0 %v4286_v26 }
 0x812   : > { %2706 = vmatprep.mubr.f32.mxu0 %v2384_v2 }
 0x815   : > { %2707 = vmatmul.mubr.f32.gmra.mrb[108].mxu0 %v2557_v36 }
 0x816   : > { %2711 = vmatprep.mubr.f32.mxu0 %v2385_v51 }
 0x819   : > { %2712 = vmatmul.mubr.f32.gmra.mrb[110].mxu0 %v4289_v50 }
 0x8b0   : > { %v3650_v3 = vpop.f32.mrb[80].mxu0 }
 0x8b1   : > { %v3651_v18 = vpop.f32.mrb[81].mxu0 }
 0x8b2   : > { %v3652_v6 = vadd.f32 %v3651_v18, %v3650_v3 }
 0x8b4   : > { %v2639_v14 = vadd.f32 %v3652_v6, %v6309_v28  ;;  %v3653_v4 = vpop.f32.mrb[82].mxu0 }
 0x8b5   : > { %v3654_v35 = vpop.f32.mrb[83].mxu0 }
 0x8b6   : > { %v2717_v55 = vmax.f32 %v2639_v14, 0.0  ;;  %v3655_v21 = vadd.f32 %v3654_v35, %v3653_v4 }
 0x8b8   : > { %v2644_v54 = vadd.f32 %v3655_v21, %v6309_v28  ;;  %v3656_v49 = vpop.f32.mrb[84].mxu0  ;;  %4322 = vmatprep.mubr.f32.mxu1 %v2717_v55 }
 0x8b9   : > { %v3657_v32 = vpop.f32.mrb[85].mxu0 }
 0x8ba   : > { %v2718_v33 = vmax.f32 %v2644_v54, 0.0  ;;  %v3658_v30 = vadd.f32 %v3657_v32, %v3656_v49 }
 0x8bc   : > { %v2649_v2 = vadd.f32 %v3658_v30, %v6309_v28  ;;  %v3659_v51 = vpop.f32.mrb[86].mxu0  ;;  %4323 = vmatmul.mubr.f32.vlgmr.msra.gmra.mrb[64].mxu1 %v2718_v33 }
 0x8bd   : > { %v3660_v63 = vpop.f32.mrb[87].mxu0 }
 0x8be   : > { %v2719_v48 = vmax.f32 %v2649_v2, 0.0  ;;  %v3661_v15 = vadd.f32 %v3660_v63, %v3659_v51 }
 0x8c0   : > { %v2654_v62 = vadd.f32 %v3661_v15, %v6309_v28  ;;  %v3662_v57 = vpop.f32.mrb[88].mxu0  ;;  %4325 = vmatprep.mubr.f32.mxu1 %v2719_v48 }
 0x8c1   : > { %v3663_v9 = vpop.f32.mrb[89].mxu0 }
 0x8c2   : > { %v2720_v12 = vmax.f32 %v2654_v62, 0.0  ;;  %v3664_v53 = vadd.f32 %v3663_v9, %v3662_v57  ;;  %v6330_v62 = vld [vmem:[%s6457_s9] ss:$0 sm:$0xff]  ;;  %v4998_v57 = vld [vmem:[%s5760_s11 + $0x8] sm:$0xff] }
 0x8c4   : > { %v2659_v37 = vadd.f32 %v3664_v53, %v6309_v28  ;;  %v3665_v43 = vpop.f32.mrb[90].mxu0  ;;  %4326 = vmatmul.mubr.f32.gmra.mrb[66].mxu1 %v2720_v12  ;;  %v4999_v53 = vld [vmem:[%s5760_s11] sm:$0xff] }
 0x8c5   : > { %v3666_v59 = vpop.f32.mrb[91].mxu0 }
 0x8c6   : > { %v2721_v29 = vmax.f32 %v2659_v37, 0.0  ;;  %v3667_v31 = vadd.f32 %v3666_v59, %v3665_v43 }
 0x8c8   : > { %v2664_v40 = vadd.f32 %v3667_v31, %v6309_v28  ;;  %v3668_v41 = vpop.f32.mrb[92].mxu0  ;;  %4328 = vmatprep.mubr.f32.mxu1 %v2721_v29 }
 0x8c9   : > { %v3669_v42 = vpop.f32.mrb[93].mxu0 }
 0x8ca   : > { %v2722_v58 = vmax.f32 %v2664_v40, 0.0  ;;  %v3670_v60 = vadd.f32 %v3669_v42, %v3668_v41 }
 0x8cc   : > { %v2669_v27 = vadd.f32 %v3670_v60, %v6309_v28  ;;  %v3671_v46 = vpop.f32.mrb[94].mxu0  ;;  %4329 = vmatmul.mubr.f32.gmra.mrb[68].mxu1 %v2722_v58 }
 0x8cd   : > { %v3672_v8 = vpop.f32.mrb[95].mxu0 }
 0x8ce   : > { %v2723_v10 = vmax.f32 %v2669_v27, 0.0  ;;  %v3673_v16 = vadd.f32 %v3672_v8, %v3671_v46 }
 0x8d0   : > { %v2674_v24 = vadd.f32 %v3673_v16, %v6309_v28  ;;  %v3674_v45 = vpop.f32.mrb[96].mxu0  ;;  %4331 = vmatprep.mubr.f32.mxu1 %v2723_v10 }
 0x8d1   : > { %v3675_v44 = vpop.f32.mrb[97].mxu0 }
 0x8d2   : > { %v2724_v13 = vmax.f32 %v2674_v24, 0.0  ;;  %v3676_v25 = vadd.f32 %v3675_v44, %v3674_v45 }
 0x8d4   : > { %v2679_v5 = vadd.f32 %v3676_v25, %v6309_v28  ;;  %v3677_v56 = vpop.f32.mrb[98].mxu0  ;;  %4332 = vmatmul.mubr.f32.gmra.mrb[70].mxu1 %v2724_v13 }
 0x8d5   : > { %v3678_v0 = vpop.f32.mrb[99].mxu0 }
 0x8d6   : > { %v2725_v52 = vmax.f32 %v2679_v5, 0.0  ;;  %v3679_v23 = vadd.f32 %v3678_v0, %v3677_v56 }
 0x8d8   : > { %v2684_v34 = vadd.f32 %v3679_v23, %v6309_v28  ;;  %v3680_v22 = vpop.f32.mrb[100].mxu0  ;;  %4334 = vmatprep.mubr.f32.mxu1 %v2725_v52 }
 0x8d9   : > { %v3681_v47 = vpop.f32.mrb[101].mxu0 }
 0x8da   : > { %v2726_v1 = vmax.f32 %v2684_v34, 0.0  ;;  %v3682_v38 = vadd.f32 %v3681_v47, %v3680_v22 }
 0x8dc   : > { %v2689_v26 = vadd.f32 %v3682_v38, %v6309_v28  ;;  %v3683_v11 = vpop.f32.mrb[102].mxu0  ;;  %4335 = vmatmul.mubr.f32.gmra.mrb[72].mxu1 %v2726_v1 }
 0x8dd   : > { %v3684_v50 = vpop.f32.mrb[103].mxu0 }
 0x8de   : > { %v2727_v36 = vmax.f32 %v2689_v26, 0.0  ;;  %v3685_v7 = vadd.f32 %v3684_v50, %v3683_v11 }
 0x8e0   : > { %v2694_v61 = vadd.f32 %v3685_v7, %v6309_v28  ;;  %v3686_v39 = vpop.f32.mrb[104].mxu0  ;;  %4337 = vmatprep.mubr.f32.mxu1 %v2727_v36 }
 0x8e1   : > { %v3687_v19 = vpop.f32.mrb[105].mxu0 }
 0x8e2   : > { %v2728_v17 = vmax.f32 %v2694_v61, 0.0  ;;  %v3688_v20 = vadd.f32 %v3687_v19, %v3686_v39 }
 0x8e4   : > { %v2699_v3 = vadd.f32 %v3688_v20, %v6309_v28  ;;  %v3689_v18 = vpop.f32.mrb[106].mxu0  ;;  %4338 = vmatmul.mubr.f32.gmra.mrb[74].mxu1 %v2728_v17 }
 0x8e5   : > { %v3690_v6 = vpop.f32.mrb[107].mxu0 }
 0x8e6   : > { %v2729_v14 = vmax.f32 %v2699_v3, 0.0  ;;  %v3691_v4 = vadd.f32 %v3690_v6, %v3689_v18 }
 0x8e8   : > { %v2704_v35 = vadd.f32 %v3691_v4, %v6309_v28  ;;  %v3692_v55 = vpop.f32.mrb[108].mxu0  ;;  %4340 = vmatprep.mubr.f32.mxu1 %v2729_v14 }
 0x8e9   : > { %v3693_v21 = vpop.f32.mrb[109].mxu0 }
 0x8ea   : > { %v2730_v54 = vmax.f32 %v2704_v35, 0.0  ;;  %v3694_v49 = vadd.f32 %v3693_v21, %v3692_v55 }
 0x8ec   : > { %v2709_v32 = vadd.f32 %v3694_v49, %v6309_v28  ;;  %v3695_v33 = vpop.f32.mrb[110].mxu0  ;;  %4341 = vmatmul.mubr.f32.gmra.mrb[76].mxu1 %v2730_v54 }
 0x8ed   : > { %v3696_v30 = vpop.f32.mrb[111].mxu0 }
 0x8ee   : > { %v2731_v2 = vmax.f32 %v2709_v32, 0.0  ;;  %v3697_v51 = vadd.f32 %v3696_v30, %v3695_v33 }
 0x8f0   : > { %v2714_v63 = vadd.f32 %v3697_v51, %v6309_v28  ;;  %4343 = vmatprep.mubr.f32.mxu1 %v2731_v2 }
 0x8f2   : > { %v2732_v48 = vmax.f32 %v2714_v63, 0.0 }
 0x8f4   : > { %4344 = vmatmul.mubr.f32.gmra.mrb[78].mxu1 %v2732_v48 }
 0x98f   : > { %v4324_v15 = vpop.f32.mrb[64].mxu1 }
 0x990   : > { %v2895_v9 = vadd.f32 %v4998_v57, %v4324_v15  ;;  %v2815_v12 = vpop.f32.mrb[65].mxu1 }
 0x991   : > { %v2894_v37 = vadd.f32 %v4999_v53, %v2815_v12 }
 0x992   : > { %v2918_v28 = vadd.f32 %v6330_v62, %v2895_v9 }
 0x993   : > { %v2917_v43 = vadd.f32 %v6330_v62, %v2894_v37 }
 0x994   : > { %2934 = vst [vmem:[%s5608_s27 + $0x8] sm:$0xff] %v2918_v28  ;;  %2950 = vst [vmem:[%s5617_s18 + $0x8] sm:$0xff] %v2918_v28 }
 0x995   : > { %2933 = vst [vmem:[%s5608_s27] sm:$0xff] %v2917_v43  ;;  %2949 = vst [vmem:[%s5617_s18] sm:$0xff] %v2917_v43 }
 0x997   : > { %v4327_v59 = vpop.f32.mrb[66].mxu1 }
 0x998   : > { %v2825_v40 = vpop.f32.mrb[67].mxu1 }
 0x99c   : > { %v5000_v29 = vld [vmem:[%s5760_s11 + $0x18] sm:$0xff]  ;;  %v5001_v41 = vld [vmem:[%s5760_s11 + $0x10] sm:$0xff] }
 0x99d   : > { %v2897_v31 = vadd.f32 %v5000_v29, %v4327_v59  ;;  %v2896_v42 = vadd.f32 %v5001_v41, %v2825_v40 }
 0x99f   : > { %v2920_v58 = vadd.f32 %v6330_v62, %v2897_v31  ;;  %v2919_v60 = vadd.f32 %v6330_v62, %v2896_v42  ;;  %v4330_v27 = vpop.f32.mrb[68].mxu1 }
 0x9a0   : > { %v2835_v10 = vpop.f32.mrb[69].mxu1 }
 0x9a1   : > { %2936 = vst [vmem:[%s5608_s27 + $0x18] sm:$0xff] %v2920_v58  ;;  %2952 = vst [vmem:[%s5617_s18 + $0x18] sm:$0xff] %v2920_v58 }
 0x9a2   : > { %2935 = vst [vmem:[%s5608_s27 + $0x10] sm:$0xff] %v2919_v60  ;;  %2951 = vst [vmem:[%s5617_s18 + $0x10] sm:$0xff] %v2919_v60 }
 0x9a7   : > { %v4333_v13 = vpop.f32.mrb[70].mxu1 }
 0x9a8   : > { %v2845_v56 = vpop.f32.mrb[71].mxu1 }
 0x9a9   : > { %v5002_v46 = vld [vmem:[%s5760_s11 + $0x28] sm:$0xff]  ;;  %v5003_v16 = vld [vmem:[%s5760_s11 + $0x20] sm:$0xff] }
 0x9aa   : > { %v2899_v8 = vadd.f32 %v5002_v46, %v4330_v27  ;;  %v2898_v24 = vadd.f32 %v5003_v16, %v2835_v10 }
 0x9ac   : > { %v2922_v45 = vadd.f32 %v6330_v62, %v2899_v8  ;;  %v2921_v44 = vadd.f32 %v6330_v62, %v2898_v24 }
 0x9ae   : > { %2938 = vst [vmem:[%s5608_s27 + $0x28] sm:$0xff] %v2922_v45  ;;  %2954 = vst [vmem:[%s5617_s18 + $0x28] sm:$0xff] %v2922_v45 }
 0x9af   : > { %2937 = vst [vmem:[%s5608_s27 + $0x20] sm:$0xff] %v2921_v44  ;;  %2953 = vst [vmem:[%s5617_s18 + $0x20] sm:$0xff] %v2921_v44  ;;  %v4336_v22 = vpop.f32.mrb[72].mxu1 }
 0x9b0   : > { %v2855_v38 = vpop.f32.mrb[73].mxu1 }
 0x9b6   : > { %v5004_v25 = vld [vmem:[%s5760_s11 + $0x38] sm:$0xff]  ;;  %v5005_v0 = vld [vmem:[%s5760_s11 + $0x30] sm:$0xff] }
 0x9b7   : > { %v2901_v5 = vadd.f32 %v5004_v25, %v4333_v13  ;;  %v2900_v52 = vadd.f32 %v5005_v0, %v2845_v56  ;;  %v4339_v7 = vpop.f32.mrb[74].mxu1 }
 0x9b8   : > { %v2865_v19 = vpop.f32.mrb[75].mxu1 }
 0x9b9   : > { %v2924_v23 = vadd.f32 %v6330_v62, %v2901_v5  ;;  %v2923_v34 = vadd.f32 %v6330_v62, %v2900_v52 }
 0x9bb   : > { %2940 = vst [vmem:[%s5608_s27 + $0x38] sm:$0xff] %v2924_v23  ;;  %2956 = vst [vmem:[%s5617_s18 + $0x38] sm:$0xff] %v2924_v23 }
 0x9bc   : > { %2939 = vst [vmem:[%s5608_s27 + $0x30] sm:$0xff] %v2923_v34  ;;  %2955 = vst [vmem:[%s5617_s18 + $0x30] sm:$0xff] %v2923_v34 }
 0x9bf   : > { %v4342_v6 = vpop.f32.mrb[76].mxu1 }
 0x9c0   : > { %v2875_v35 = vpop.f32.mrb[77].mxu1 }
 0x9c3   : > { %v5006_v47 = vld [vmem:[%s5760_s11 + $0x48] sm:$0xff]  ;;  %v5007_v26 = vld [vmem:[%s5760_s11 + $0x40] sm:$0xff] }
 0x9c4   : > { %v2903_v1 = vadd.f32 %v5006_v47, %v4336_v22  ;;  %v2902_v11 = vadd.f32 %v5007_v26, %v2855_v38 }
 0x9c6   : > { %v2926_v50 = vadd.f32 %v6330_v62, %v2903_v1  ;;  %v2925_v36 = vadd.f32 %v6330_v62, %v2902_v11 }
 0x9c7   : > { %v4345_v32 = vpop.f32.mrb[78].mxu1 }
 0x9c8   : > { %2942 = vst [vmem:[%s5608_s27 + $0x48] sm:$0xff] %v2926_v50  ;;  %2958 = vst [vmem:[%s5617_s18 + $0x48] sm:$0xff] %v2926_v50  ;;  %v2885_v2 = vpop.f32.mrb[79].mxu1 }
 0x9c9   : > { %2941 = vst [vmem:[%s5608_s27 + $0x40] sm:$0xff] %v2925_v36  ;;  %2957 = vst [vmem:[%s5617_s18 + $0x40] sm:$0xff] %v2925_v36 }
 0x9d0   : > { %v5008_v61 = vld [vmem:[%s5760_s11 + $0x58] sm:$0xff]  ;;  %v5009_v17 = vld [vmem:[%s5760_s11 + $0x50] sm:$0xff] }
 0x9d1   : > { %v2905_v39 = vadd.f32 %v5008_v61, %v4339_v7  ;;  %v2904_v20 = vadd.f32 %v5009_v17, %v2865_v19 }
 0x9d3   : > { %v2928_v3 = vadd.f32 %v6330_v62, %v2905_v39  ;;  %v2927_v18 = vadd.f32 %v6330_v62, %v2904_v20 }
 0x9d5   : > { %2944 = vst [vmem:[%s5608_s27 + $0x58] sm:$0xff] %v2928_v3  ;;  %2960 = vst [vmem:[%s5617_s18 + $0x58] sm:$0xff] %v2928_v3 }
 0x9d6   : > { %2943 = vst [vmem:[%s5608_s27 + $0x50] sm:$0xff] %v2927_v18  ;;  %2959 = vst [vmem:[%s5617_s18 + $0x50] sm:$0xff] %v2927_v18 }
 0x9dd   : > { %v5010_v14 = vld [vmem:[%s5760_s11 + $0x68] sm:$0xff]  ;;  %v5011_v55 = vld [vmem:[%s5760_s11 + $0x60] sm:$0xff] }
 0x9de   : > { %v2907_v4 = vadd.f32 %v5010_v14, %v4342_v6  ;;  %v2906_v21 = vadd.f32 %v5011_v55, %v2875_v35 }
 0x9e0   : > { %v2930_v54 = vadd.f32 %v6330_v62, %v2907_v4  ;;  %v2929_v49 = vadd.f32 %v6330_v62, %v2906_v21 }
 0x9e2   : > { %2946 = vst [vmem:[%s5608_s27 + $0x68] sm:$0xff] %v2930_v54  ;;  %2962 = vst [vmem:[%s5617_s18 + $0x68] sm:$0xff] %v2930_v54 }
 0x9e3   : > { %2945 = vst [vmem:[%s5608_s27 + $0x60] sm:$0xff] %v2929_v49  ;;  %2961 = vst [vmem:[%s5617_s18 + $0x60] sm:$0xff] %v2929_v49 }
 0x9ea   : > { %v5012_v33 = vld [vmem:[%s5760_s11 + $0x78] sm:$0xff]  ;;  %v5013_v51 = vld [vmem:[%s5760_s11 + $0x70] sm:$0xff]  ;;  %s5208_s11 = scalar_lea.vmem %s6398_s24, 2048 }
 0x9eb   : > { %v2909_v30 = vadd.f32 %v5012_v33, %v4345_v32  ;;  %v2908_v63 = vadd.f32 %v5013_v51, %v2885_v2  ;;  %p5209_p10 = scmp.ne.s32.totalorder %s6398_s24, %s5208_s11  ;;  %p5216_p7 = scmp.lt.s32.totalorder %s5214_s19, %s5208_s11 }
 0x9ed   : > { %v2932_v48 = vadd.f32 %v6330_v62, %v2909_v30  ;;  %v2931_v15 = vadd.f32 %v6330_v62, %v2908_v63  ;;  %p5210_p3 = pnand %p5209_p10, %p6501_p2  ;;  %p5217_p8 = por %p5216_p7, %p5215_p12 }
 0x9ef   : > { %2948 = vst [vmem:[%s5608_s27 + $0x78] sm:$0xff] %v2932_v48  ;;  %2964 = vst [vmem:[%s5617_s18 + $0x78] sm:$0xff] %v2932_v48  ;;  %p5211_p4 = pneg %p5210_p3 }
 0x9f0   : > { %2947 = vst [vmem:[%s5608_s27 + $0x70] sm:$0xff] %v2931_v15  ;;  %2963 = vst [vmem:[%s5617_s18 + $0x70] sm:$0xff] %v2931_v15 }
 0x9f1   : > { %p5218_p11 = pnand %p5217_p8, %p5211_p4 }
 0x9f3   : > { %5221 = shalt.err (!%p5218_p11)
}
 0x9f4   : > { %s5222_s15 = scalar_lea.hbm %s6396_s22, 2048  ;;  %s5226_s28 = scalar_lea.hbm %s6458_s10, 6144 }
 0x9f5   : > { %p5223_p13 = scmp.ne.s32.totalorder %s6396_s22, %s5222_s15  ;;  %p5227_p9 = scmp.lt.u32.totalorder %s6396_s22, %s6458_s10 }
 0x9f6   : > { %p5228_p5 = scmp.lt.u32.totalorder %s5226_s28, %s5222_s15  ;;  %p5230_p10 = scmp.lt.u32.totalorder %s5222_s15, %s6396_s22 }
 0x9f7   : > { %p5224_p1 = pnand %p5223_p13, %p6501_p2 }
 0x9f8   : > { %p5229_p0 = por %p5228_p5, %p5227_p9 }
 0x9f9   : > { %p5225_p6 = pneg %p5224_p1 }
 0x9fa   : > { %p5231_p3 = por %p5230_p10, %p5229_p0 }
 0x9fc   : > { %p5232_p4 = pnand %p5231_p3, %p5225_p6 }
 0x9fe   : > { %5235 = shalt.err (!%p5232_p4)
}
 0x9ff   : > { %s5302_s12 = smov 128   ;;  %s5303_s2 = smov 8  }
 0xa00   : > { %4901 = dma.vmem_to_hbm [thread:$0]  (%p6501_p2), %s6398_s24, 2048, %s6396_s22, %s6407_s17, %s5302_s12, %s5302_s12, %s5303_s2  }
 0xa01 PF: > { %s6502_s13 = sld [smem:[#allocation28_spill]]  ;;  %s6503_s16 = sld [smem:[#allocation26_spill]] }
 0xa02   : > { %s6504_s26 = sld [smem:[#allocation31_spill]] }
 0xa07   : > { %p4939_p12 = scmp.ge.s32.totalorder %s6502_s13, 2  ;;  %s2994_s29 = sand.u32 1, %s6503_s16  }
 0xa08   : > { %p6505_p7 = scmp.ne.s32.totalorder %s6504_s26, 0  ;;  %s2995_s11 = scalar_lea.sflag [#allocation6], %s2994_s29 }
 0xa0a   : > { %p4923_p8 = pnand %p4939_p12, %p6505_p7 }
 0xa0c   : > { %5273 = dma.done.wait (!%p4923_p8), %s2995_s11, 2048  }
 0xa0d   : > { %5275 = vsyncadd (!%p4923_p8), %s2995_s11, 4294965248  ;;  %s6506_s16 = sld [smem:[#allocation29_spill]]  ;;  %s6507_s21 = sld [smem:[#allocation27_spill]] }
 0xa0e   : > { %s6508_s15 = sld [smem:[#allocation30_spill]]  ;;  %s6509_s13 = smov %s5282_s14 }
 0xa13   : > { %p24_p11 = scmp.ge.s32.totalorder %s6506_s16, 5   ;;  %s6510_s14 = smov %s6507_s21 }
 0xa15   :  { %26 = sbr.rel (!%p24_p11) target bundleno = 9 (0x9), region = 127 }
 0xa1c   :  { %3000 = vsyncpa [#allocation5], 1 }
 0xa1d   :  { %3002 = vsyncpa [#allocation5 + $0x1], 1 }
 0xa1e   :  { %3003 = vsyncpa [#allocation8], 1 }
 0xa1f   :  { %3004 = vsyncpa [#allocation11], 1 }
 0xa20   :  { %3005 = vsyncpa [#allocation14], 1 }
 0xa21   :  { %3006 = vsyncpa [#allocation6], 1 }
 0xa22   :  { %3008 = vsyncpa [#allocation6 + $0x1], 1 }
 0xa23   :  { %3009 = vsyncmov [#allocation3] }
 0xa26   :  { %s3010_s23 = vpop.sfrf %3009 }
 0xa27   :  { %p3136_p2 = scmp.ne.s32.totalorder %s3010_s23, 0 }
 0xa29   :  { %3014 = shalt.err (%p3136_p2)  }

</bundles_post_ra>
